<compile_context>
chip_gen: v6e
topology: v6e:2x2x1
jax: 0.10.0
libtpu: 0.0.40
codegen_flags: <defaults>
</compile_context>

<pallas_src>
import functools
import math

import jax
import jax.numpy as jnp
from jax.experimental import pallas as pl
from jax.experimental.pallas import tpu as pltpu


def _fused_conv_block_kernel(*refs, n_layers, neg_slope):
    """refs = (x_ref, w_0, b_0, ..., w_{L-1}, b_{L-1}, o_ref).

    x_ref: (1, C_in0, tn) bf16        w_i: (C_out_i, C_in_i) bf16 (BN scale folded)
    b_i:   (C_out_i, 1)  f32          o_ref: (1, C_out_last, tn)
    """
    x_ref = refs[0]
    o_ref = refs[1 + 2 * n_layers]

    h = x_ref[0]                                   # (C_in0, tn) bf16
    for i in range(n_layers):
        w_ref = refs[1 + 2 * i]
        b_ref = refs[2 + 2 * i]
        # MXU matmul, f32 accumulation.
        z = jnp.dot(w_ref[...], h, preferred_element_type=jnp.float32)  # (C_out_i, tn)
        z = z + b_ref[...]                                              # per-channel bias
        z = jnp.maximum(z, neg_slope * z)                               # LeakyReLU(0.2)
        if i + 1 < n_layers:
            h = z.astype(jnp.bfloat16)             # chain to next layer, stays on-chip
        else:
            o_ref[0] = z.astype(o_ref.dtype)       # lane-dense bf16 store


def _pick_lane_tile(n, cap):
    """Largest lane tile dividing n, multiple of 128, not exceeding cap (or n itself)."""
    if n <= cap:
        return n
    t = (cap // 128) * 128
    while t >= 128:
        if n % t == 0:
            return t
        t -= 128
    # No multiple-of-128 divisor <= cap: fall back to a single full-width block.
    # (Correct; may exceed the VMEM budget for very large awkward N.)
    return n


def conv_block(x, layers, *, eps=1e-5, neg_slope=0.2, out_dtype=jnp.bfloat16,
               vmem_budget_bytes=20 * 1024 * 1024):
    """Fused Pallas implementation of ConvBlock.forward (inference-mode BN).

    x: (B, C_in0, N) float; layers: list of (w, gamma, beta, mean, var), w: (C_out, C_in).
    Returns (B, C_out_last, N) in `out_dtype` (bf16 by default to halve HBM writeback).
    """
    B, c_in0, N = x.shape
    n_layers = len(layers)
    assert n_layers >= 1

    # --- Static BN fold (f32), then cast the folded weight to bf16 for the MXU. ---
    ws, bs, c_outs = [], [], []
    c_in = c_in0
    for (w, gamma, beta, mean, var) in layers:
        c_out, c_in_l = w.shape
        assert c_in_l == c_in, f"layer channel mismatch: {c_in_l} vs {c_in}"
        scale = (gamma.astype(jnp.float32)
                 / jnp.sqrt(var.astype(jnp.float32) + eps))                  # (C_out,)
        w_f = (w.astype(jnp.float32) * scale[:, None]).astype(jnp.bfloat16)  # (C_out, C_in)
        b_f = (beta.astype(jnp.float32)
               - mean.astype(jnp.float32) * scale).reshape(c_out, 1)         # (C_out, 1) f32
        ws.append(w_f)
        bs.append(b_f)
        c_outs.append(c_out)
        c_in = c_out
    c_out_last = c_outs[-1]

    # --- Tile the N (lane) axis from a VMEM budget that works on v5e/v6e/v7x. ---
    weight_bytes = sum(w.size * 2 + b.size * 4 for w, b in zip(ws, bs))
    per_tn = 4 * c_in0 + 4 * c_out_last          # double-buffered bf16 x / out tiles
    per_tn += sum(6 * c for c in c_outs)         # f32 intermediate + bf16 chain per layer
    avail = max(vmem_budget_bytes - 2 * weight_bytes, 1 * 1024 * 1024)
    tn_cap = min(max(avail // per_tn, 128), 2048)
    tn = _pick_lane_tile(N, tn_cap)

    grid = (B, N // tn)

    in_specs = [pl.BlockSpec((1, c_in0, tn), lambda b, n: (b, 0, n))]
    for w_f, b_f in zip(ws, bs):
        # Constant index maps: weights/biases DMA'd once, VMEM-resident across the grid.
        in_specs.append(pl.BlockSpec(w_f.shape, lambda b, n: (0, 0)))
        in_specs.append(pl.BlockSpec(b_f.shape, lambda b, n: (0, 0)))

    kernel = functools.partial(_fused_conv_block_kernel,
                               n_layers=n_layers, neg_slope=neg_slope)

    flat_params = [a for pair in zip(ws, bs) for a in pair]

    return pl.pallas_call(
        kernel,
        out_shape=jax.ShapeDtypeStruct((B, c_out_last, N), out_dtype),
        grid_spec=pltpu.PrefetchScalarGridSpec(
            num_scalar_prefetch=0,
            grid=grid,
            in_specs=in_specs,
            out_specs=pl.BlockSpec((1, c_out_last, tn), lambda b, n: (b, 0, n)),
        ),
        compiler_params=pltpu.CompilerParams(
            dimension_semantics=("parallel", "parallel"),
            vmem_limit_bytes=48 * 1024 * 1024,
        ),
    )(x.astype(jnp.bfloat16), *flat_params)


def conv_block_reference(x, layers, *, eps=1e-5, neg_slope=0.2):
    """Plain-JAX f32 transcription of the PyTorch forward (inference-mode BN)."""
    for (w, gamma, beta, mean, var) in layers:
        z = jnp.einsum('oc,bcn->bon', w, x, precision=jax.lax.Precision.HIGHEST)
        z = (z - mean[None, :, None]) / jnp.sqrt(var[None, :, None] + eps)
        z = gamma[None, :, None] * z + beta[None, :, None]
        x = jnp.where(z > 0, z, neg_slope * z)
    return x


def _make_layers(key, channels_in, channels_out):
    layers = []
    keys = jax.random.split(key, 5 * len(channels_in))
    for i, (ci, co) in enumerate(zip(channels_in, channels_out)):
        kw, kg, kb, km, kv = keys[5 * i: 5 * i + 5]
        w = jax.random.normal(kw, (co, ci), jnp.float32) * (1.0 / math.sqrt(ci))
        gamma = 1.0 + 0.1 * jax.random.normal(kg, (co,), jnp.float32)
        beta = 0.1 * jax.random.normal(kb, (co,), jnp.float32)
        mean = 0.1 * jax.random.normal(km, (co,), jnp.float32)
        var = jnp.abs(1.0 + 0.1 * jax.random.normal(kv, (co,), jnp.float32)) + 0.01
        layers.append((w, gamma, beta, mean, var))
    return layers


def _check(out, ref, name):
    out_f32 = out.astype(jnp.float32)
    assert out.shape == ref.shape, (out.shape, ref.shape)
    max_err = float(jnp.max(jnp.abs(out_f32 - ref)))
    # bf16 operands + bf16 output -> bf16-appropriate tolerance vs the f32 reference.
    ok = jnp.allclose(out_f32, ref, atol=1e-1, rtol=5e-2)
    assert ok, f"{name}: mismatch vs reference, max abs err = {max_err}"


if __name__ == "__main__":
    key = jax.random.PRNGKey(0)
    k1, k2, k3, k4 = jax.random.split(key, 4)

    # Case 1: the module's defaults  ConvBlock(channels_in=(64*3,), channels_out=(1024,))
    B, N = 2, 256
    channels_in = (64 * 3,)
    channels_out = (1024,)
    x1 = jax.random.normal(k1, (B, channels_in[0], N), jnp.float32)
    layers1 = _make_layers(k2, channels_in, channels_out)
    out1 = jax.block_until_ready(conv_block(x1, layers1))
    _check(out1, conv_block_reference(x1, layers1), "default ConvBlock")

    # Case 2: a small 2-layer chain, exercising the fused multi-layer path
    # (intermediate activation never leaves VMEM).
    ci2, co2 = (64, 128), (128, 256)
    x2 = jax.random.normal(k3, (B, ci2[0], 128), jnp.float32)
    layers2 = _make_layers(k4, ci2, co2)
    out2 = jax.block_until_ready(conv_block(x2, layers2))
    _check(out2, conv_block_reference(x2, layers2), "2-layer ConvBlock")

    print("KERNEL_OK")
</pallas_src>

<mosaic_0001>
module attributes {stable_mosaic.version = 11 : i64} {
  func.func @_fused_conv_block_kernel(%arg0: i32, %arg1: i32, %arg2: memref<1x192x256xbf16, #tpu.memory_space<vmem>>, %arg3: memref<1024x192xbf16, #tpu.memory_space<vmem>>, %arg4: memref<1024x1xf32, #tpu.memory_space<vmem>>, %arg5: memref<1x1024x256xbf16, #tpu.memory_space<vmem>>) attributes {dimension_semantics = [#tpu.dimension_semantics<parallel>, #tpu.dimension_semantics<parallel>], iteration_bounds = array<i64: 2, 1>, scalar_prefetch = 0 : i64, scratch_operands = 0 : i64, tpu.core_type = #tpu.core_type<tc>, window_params = [{transform_indices = @transform_0, window_bounds = array<i64: 1, 192, 256>}, {pipeline_mode = #tpu.pipeline_mode<synchronous>, transform_indices = @transform_1, window_bounds = array<i64: 1024, 192>}, {pipeline_mode = #tpu.pipeline_mode<synchronous>, transform_indices = @transform_2, window_bounds = array<i64: 1024, 1>}, {transform_indices = @transform_3, window_bounds = array<i64: 1, 1024, 256>}]} {
    %c0 = arith.constant 0 : index
    %c0_0 = arith.constant 0 : index
    %c0_1 = arith.constant 0 : index
    %0 = vector.load %arg2[%c0, %c0_0, %c0_1] : memref<1x192x256xbf16, #tpu.memory_space<vmem>>, vector<1x192x256xbf16>
    %1 = vector.shape_cast %0 : vector<1x192x256xbf16> to vector<192x256xbf16>
    %c0_2 = arith.constant 0 : index
    %c0_3 = arith.constant 0 : index
    %2 = vector.load %arg3[%c0_2, %c0_3] : memref<1024x192xbf16, #tpu.memory_space<vmem>>, vector<1024x192xbf16>
    %cst = arith.constant dense<0.000000e+00> : vector<1024x256xf32>
    %3 = tpu.matmul %2, %1, %cst {dimension_numbers = #tpu.dot_dimension_numbers<[1], [0], [0], [1], [0, 0, 1, 1], [], []>} : vector<1024x192xbf16>, vector<192x256xbf16>, vector<1024x256xf32> -> vector<1024x256xf32>
    %c0_4 = arith.constant 0 : index
    %c0_5 = arith.constant 0 : index
    %4 = vector.load %arg4[%c0_4, %c0_5] : memref<1024x1xf32, #tpu.memory_space<vmem>>, vector<1024x1xf32>
    %5 = vector.broadcast %4 : vector<1024x1xf32> to vector<1024x256xf32>
    %6 = arith.addf %3, %5 : vector<1024x256xf32>
    %cst_6 = arith.constant 2.000000e-01 : f32
    %7 = vector.broadcast %cst_6 : f32 to vector<1024x256xf32>
    %8 = arith.mulf %7, %6 : vector<1024x256xf32>
    %9 = arith.maximumf %6, %8 : vector<1024x256xf32>
    %10 = arith.truncf %9 : vector<1024x256xf32> to vector<1024x256xbf16>
    %c0_7 = arith.constant 0 : index
    %c0_8 = arith.constant 0 : index
    %c0_9 = arith.constant 0 : index
    %11 = vector.load %arg5[%c0_7, %c0_8, %c0_9] : memref<1x1024x256xbf16, #tpu.memory_space<vmem>>, vector<1x1024x256xbf16>
    %12 = vector.shape_cast %11 : vector<1x1024x256xbf16> to vector<1024x256xbf16>
    %13 = vector.shape_cast %10 : vector<1024x256xbf16> to vector<1x1024x256xbf16>
    tpu.vector_store %arg5[%c0_7, %c0_8, %c0_9], %13 {strides = array<i32>} : memref<1x1024x256xbf16, #tpu.memory_space<vmem>>, vector<1x1024x256xbf16>,
    return
  }
  func.func @transform_0(%arg0: i32, %arg1: i32) -> (i32, i32, i32) {
    %c0_i32 = arith.constant 0 : i32
    %c0_i32_0 = arith.constant 0 : i32
    return %arg0, %c0_i32, %arg1 : i32, i32, i32
  }
  func.func @transform_1(%arg0: i32, %arg1: i32) -> (i32, i32) {
    %c0_i32 = arith.constant 0 : i32
    %c0_i32_0 = arith.constant 0 : i32
    %c0_i32_1 = arith.constant 0 : i32
    return %c0_i32, %c0_i32_0 : i32, i32
  }
  func.func @transform_2(%arg0: i32, %arg1: i32) -> (i32, i32) {
    %c0_i32 = arith.constant 0 : i32
    %c0_i32_0 = arith.constant 0 : i32
    %c0_i32_1 = arith.constant 0 : i32
    return %c0_i32, %c0_i32_0 : i32, i32
  }
  func.func @transform_3(%arg0: i32, %arg1: i32) -> (i32, i32, i32) {
    %c0_i32 = arith.constant 0 : i32
    %c0_i32_0 = arith.constant 0 : i32
    return %arg0, %c0_i32, %arg1 : i32, i32, i32
  }
}

</mosaic_0001>

<bundles_post_ra>
// kernel: tpu_custom_call.1
= control target key start
LH: loop header
LB: loop body
LE: loop exit
PB: predicated region body
PF: predicated region fallthrough
CT: control target
= control target key end

     0   :  { %8 = vsyncpa [#allocation3], 0  ;;  %s6452_s0 = inlined_call_operand.vmem [shape: bf16[2,192,256], index: 0, kind: input, shape index: {}]   ;;  %s6453_s1 = inlined_call_operand.vmem [shape: bf16[1024,192], index: 1, kind: input, shape index: {}]   ;;  %s6454_s2 = inlined_call_operand.vmem [shape: f32[1024,1], index: 2, kind: input, shape index: {}]   ;;  %s6455_s3 = inlined_call_operand.hbm [shape: bf16[2,1024,256], index: 3, kind: output, shape index: {}]  }
   0x1   :  { %10 = vsyncpa [#allocation3 + $0x1], 0  ;;  %s5086_s12 = smov 0   ;;  %s5088_s13 = smov 0  }
   0x2   :  { %s5090_s14 = smov 0   ;;  %s5092_s15 = smov 0  }
   0x3   :  { %s5094_s16 = smov 0   ;;  %s5096_s17 = smov 0  }
   0x4 LB: > { %s4186_s18 = sadd.s32 4294967295, %s5060_s17   ;;  %s4187_s19 = sadd.s32 4294967294, %s5060_s17   ;;  %s5060_s17 = sphi %s5096_s17, %s16_s17   ;;  %s5056_s16 = sphi %s5094_s16, %s6549_s16   ;;  %s5052_s15 = sphi %s5092_s15, %s6548_s15   ;;  %s5048_s14 = sphi %s5090_s14, %s6547_s14   ;;  %s5044_s13 = sphi %s5088_s13, %s6546_s13   ;;  %s5040_s12 = sphi %s5086_s12, %s6545_s12  }
   0x5   : > { %s28_s20 = sadd.s32 1, %s5056_s16  ;;  %s107_s21 = sadd.s32 1, %s5048_s14 }
   0x6   : > { %p30_p0 = scmp.ge.s32.totalorder %s28_s20, 2  ;;  %p117_p1 = scmp.ne.s32.totalorder %s5048_s14, %s5044_s13 }
   0x7   : > { %p118_p2 = scmp.eq.s32.totalorder %s4186_s18, 1  ;;  %p123_p3 = scmp.ne.s32.totalorder %s5044_s13, %s5040_s12 }
   0x8   : > { %s6551_s20 = smov (%p30_p0, %s28_s20), 0  ;;  %p124_p5 = scmp.eq.s32.totalorder %s4187_s19, 1 }
   0x9   : > { %p5126_p4 = por %p118_p2, %p117_p1  ;;  %s102_s23 = ssub.s32 %s5056_s16, %s6551_s20 }
   0xa   : > { %p4190_p6 = scmp.ge.s32.totalorder %s5060_s17, 1  ;;  %p105_p7 = scmp.eq.s32.totalorder %s102_s23, 0 }
   0xb   : > { %p5133_p8 = por %p124_p5, %p123_p3  ;;  %p161_p9 = scmp.lt.s32.totalorder %s5060_s17, 3 }
   0xc   : > { %s5139_s25 = scalar_select %p105_p7, %s5048_s14, %s107_s21  }
   0xd   : > { %p162_p10 = pnand %p4190_p6, %p161_p9 }
   0xf   : > { %165 = sbr.rel (%p162_p10) target bundleno = 546 (0x222), region = 32 }
  0x14   : > { %v355_v0 = vld [vmem:[%s6454_s2 + $0x10] sm:$0xff]  ;;  %v353_v1 = vld [vmem:[%s6454_s2] sm:$0xff]  ;;  %p190_p11 = scmp.lt.s32.totalorder %s5052_s15, 1  ;;  %v5062_v2 = vmov 0   ;;  %v356_v3 = vld [vmem:[%s6454_s2 + $0x18] sm:$0xff]  ;;  %vm1817_vm0 = vcmask 523264  }
  0x15   : > { %4755 = vset.pattern.permute.xlu1 %v5062_v2  ;;  %4754 = vset.pattern.permute.xlu0 %v5062_v2  ;;  %v354_v4 = vld [vmem:[%s6454_s2 + $0x8] sm:$0xff]  ;;  %v357_v6 = vld [vmem:[%s6454_s2 + $0x20] sm:$0xff]  ;;  %v360_v10 = vld [vmem:[%s6454_s2 + $0x38] sm:$0xff]  ;;  %s186_s7 = sand.u32 1, %s5044_s13   ;;  %s4670_s27 = sshll.u32 %s5052_s15, 14 }
  0x16   : > { %493 = vperm.xlu1 %4755, %v355_v0   ;;  %483 = vperm.xlu0 %4754, %v353_v1   ;;  %s191_s30 = scalar_select %p190_p11, %s5052_s15, 1  ;;  %v358_v5 = vld [vmem:[%s6454_s2 + $0x28] sm:$0xff]  ;;  %v359_v11 = vld [vmem:[%s6454_s2 + $0x30] sm:$0xff]  ;;  %v361_v15 = vld [vmem:[%s6454_s2 + $0x40] sm:$0xff] }
  0x17   : > { %v362_v14 = vld [vmem:[%s6454_s2 + $0x48] sm:$0xff]  ;;  %v364_v18 = vld [vmem:[%s6454_s2 + $0x58] sm:$0xff]  ;;  %v363_v19 = vld [vmem:[%s6454_s2 + $0x50] sm:$0xff]  ;;  %s6399_s5 = scalar_lea.hbm %s6455_s3, %s4670_s27  ;;  %s6407_s15 = scalar_lea.sflag [#allocation3], %s186_s7 }
  0x18   : > { %s4695_s8 = smul.u32 192, %s191_s30  ;;  %v366_v22 = vld [vmem:[%s6454_s2 + $0x68] sm:$0xff]  ;;  %v365_v23 = vld [vmem:[%s6454_s2 + $0x60] sm:$0xff]  ;;  %v368_v26 = vld [vmem:[%s6454_s2 + $0x78] sm:$0xff]  ;;  %s5063_s6 = smov [#allocation2]  }
  0x19   : > { %v367_v27 = vld [vmem:[%s6454_s2 + $0x70] sm:$0xff]  ;;  %v4794_v28 = vld [vmem:[%s6453_s1 + $0x4] ss:$8 sps:$4 sm:$0xff]   ;;  %v372_v36 = vld [vmem:[%s6454_s2 + $0x98] sm:$0xff] }
  0x1a   : > { %498 = vperm.xlu1 %4755, %v356_v3   ;;  %488 = vperm.xlu0 %4754, %v354_v4   ;;  %s5164_s23 = scalar_lea.vmem %s6452_s0, %s4695_s8  ;;  %v4797_v30 = vld [vmem:[%s6453_s1 + $0x204] ss:$8 sps:$4 sm:$0xff]   ;;  %v371_v37 = vld [vmem:[%s6454_s2 + $0x90] sm:$0xff]  ;;  %v376_v44 = vld [vmem:[%s6454_s2 + $0xb8] sm:$0xff]  ;;  %s6047_s8 = sshll.u32 %s186_s7, 10 }
  0x1b   : > { %v4756_v7 = vld [vmem:[%s5164_s23 + $0x74] ss:$8 sps:$4 sm:$0xff]   ;;  %v4758_v8 = vld [vmem:[%s5164_s23 + $0x70] ss:$8 sps:$4 sm:$0xff]   ;;  %v4759_v9 = vld [vmem:[%s5164_s23 + $0x64] ss:$8 sps:$4 sm:$0xff]   ;;  %4345 = vmatprep.mubr.msk.bf16.mxu0 %vm1817_vm0, %v4794_v28  ;;  %4377 = vmatprep.mubr.msk.bf16.mxu1 %vm1817_vm0, %v4797_v30 }
  0x1c   : > { %2010 = vmatprep.subr.bf16.mxu0 %v4756_v7  ;;  %4671 = vmatprep.subr.bf16.mxu1 %v4756_v7  ;;  %v4761_v12 = vld [vmem:[%s5164_s23 + $0x60] ss:$8 sps:$4 sm:$0xff]   ;;  %v4762_v13 = vld [vmem:[%s5164_s23 + $0x54] ss:$8 sps:$4 sm:$0xff]   ;;  %v4764_v16 = vld [vmem:[%s5164_s23 + $0x50] ss:$8 sps:$4 sm:$0xff]  }
  0x1d   : > { %2011 = vmatpush1.bf16.msra.mxu0 %v4758_v8  ;;  %4683 = vmatpush1.bf16.msra.mxu1 %v4758_v8  ;;  %v4765_v17 = vld [vmem:[%s5164_s23 + $0x44] ss:$8 sps:$4 sm:$0xff]   ;;  %v4767_v20 = vld [vmem:[%s5164_s23 + $0x40] ss:$8 sps:$4 sm:$0xff]   ;;  %v4768_v21 = vld [vmem:[%s5164_s23 + $0x34] ss:$8 sps:$4 sm:$0xff]  }
  0x1e   : > { %508 = vperm.xlu1 %4755, %v358_v5   ;;  %503 = vperm.xlu0 %4754, %v357_v6   ;;  %v4770_v24 = vld [vmem:[%s5164_s23 + $0x30] ss:$8 sps:$4 sm:$0xff]   ;;  %v4771_v25 = vld [vmem:[%s5164_s23 + $0x24] ss:$8 sps:$4 sm:$0xff]   ;;  %v4773_v29 = vld [vmem:[%s5164_s23 + $0x20] ss:$8 sps:$4 sm:$0xff]  }
  0x1f   : > { %2012 = vmatprep.subr.bf16.mxu0 %v4759_v9  ;;  %4672 = vmatprep.subr.bf16.mxu1 %v4759_v9  ;;  %v4774_v31 = vld [vmem:[%s5164_s23 + $0x14] ss:$8 sps:$4 sm:$0xff]   ;;  %v370_v32 = vld [vmem:[%s6454_s2 + $0x88] sm:$0xff]  ;;  %v369_v33 = vld [vmem:[%s6454_s2 + $0x80] sm:$0xff]  ;;  %s6067_s28 = scalar_lea.vmem [#allocation2], %s6047_s8  ;;  %s4988_s8 = sshll.u32 %s5063_s6, 4  ;;  %s4989_s8 = int_to_ptr.vmem [resolvable:$false] %s4988_s8 }
  0x20   : > { %v4776_v34 = vld [vmem:[%s5164_s23 + $0x10] ss:$8 sps:$4 sm:$0xff]   ;;  %v4777_v35 = vld [vmem:[%s5164_s23 + $0x4] ss:$8 sps:$4 sm:$0xff]   ;;  %v4779_v38 = vld [vmem:[%s5164_s23] ss:$8 sps:$4 sm:$0xff]  }
  0x21   : > { %2013 = vmatpush1.bf16.msra.mxu0 %v4761_v12  ;;  %4684 = vmatpush1.bf16.msra.mxu1 %v4761_v12  ;;  %v4780_v39 = vld [vmem:[%s5164_s23 + $0xb4] ss:$8 sps:$4 sm:$0xff]   ;;  %v374_v40 = vld [vmem:[%s6454_s2 + $0xa8] sm:$0xff]  ;;  %v373_v41 = vld [vmem:[%s6454_s2 + $0xa0] sm:$0xff]  ;;  %s4107_s29 = sshll.u32 %s6067_s28, 4  ;;  %s4990_s9 = scalar_lea.vmem %s4989_s8, 32768  ;;  %s6401_s29 = int_to_ptr.vmem [resolvable:$true] %s4107_s29 }
  0x22   : > { %518 = vperm.xlu1 %4755, %v360_v10   ;;  %513 = vperm.xlu0 %4754, %v359_v11   ;;  %v4782_v42 = vld [vmem:[%s5164_s23 + $0xb0] ss:$8 sps:$4 sm:$0xff]   ;;  %v4783_v43 = vld [vmem:[%s5164_s23 + $0xa4] ss:$8 sps:$4 sm:$0xff]   ;;  %v4785_v46 = vld [vmem:[%s5164_s23 + $0xa0] ss:$8 sps:$4 sm:$0xff]   ;;  %p4991_p1 = scmp.lt.s32.totalorder %s6401_s29, %s4989_s8 }
  0x23   : > { %2014 = vmatprep.subr.bf16.mxu0 %v4762_v13  ;;  %4673 = vmatprep.subr.bf16.mxu1 %v4762_v13  ;;  %v375_v45 = vld [vmem:[%s6454_s2 + $0xb0] sm:$0xff]  ;;  %v378_v48 = vld [vmem:[%s6454_s2 + $0xc8] sm:$0xff]  ;;  %v377_v49 = vld [vmem:[%s6454_s2 + $0xc0] sm:$0xff] }
  0x24   : > { %v4786_v47 = vld [vmem:[%s5164_s23 + $0x94] ss:$8 sps:$4 sm:$0xff]   ;;  %v4788_v50 = vld [vmem:[%s5164_s23 + $0x90] ss:$8 sps:$4 sm:$0xff]   ;;  %v4789_v51 = vld [vmem:[%s5164_s23 + $0x84] ss:$8 sps:$4 sm:$0xff]  }
  0x25   : > { %2015 = vmatpush1.bf16.msra.mxu0 %v4764_v16  ;;  %4685 = vmatpush1.bf16.msra.mxu1 %v4764_v16  ;;  %v380_v52 = vld [vmem:[%s6454_s2 + $0xd8] sm:$0xff]  ;;  %v379_v53 = vld [vmem:[%s6454_s2 + $0xd0] sm:$0xff]  ;;  %v4791_v54 = vld [vmem:[%s5164_s23 + $0x80] ss:$8 sps:$4 sm:$0xff]   ;;  %s4984_s23 = scalar_lea.vmem %s6401_s29, 16384 }
  0x26   : > { %528 = vperm.xlu1 %4755, %v362_v14   ;;  %523 = vperm.xlu0 %4754, %v361_v15   ;;  %v4792_v55 = vld [vmem:[%s6453_s1] ss:$8 sps:$4 sm:$0xff]   ;;  %v4798_v59 = vld [vmem:[%s6453_s1 + $0x14] ss:$8 sps:$4 sm:$0xff]   ;;  %v4802_v1 = vld [vmem:[%s6453_s1 + $0x10] ss:$8 sps:$4 sm:$0xff]   ;;  %p4985_p12 = scmp.ne.s32.totalorder %s6401_s29, %s4984_s23  ;;  %p4992_p2 = scmp.lt.s32.totalorder %s4990_s9, %s4984_s23 }
  0x27   : > { %2016 = vmatprep.subr.bf16.mxu0 %v4765_v17  ;;  %4674 = vmatprep.subr.bf16.mxu1 %v4765_v17  ;;  %v4795_v56 = vld [vmem:[%s6453_s1 + $0x200] ss:$8 sps:$4 sm:$0xff]   ;;  %v4800_v60 = vld [vmem:[%s6453_s1 + $0x214] ss:$8 sps:$4 sm:$0xff]   ;;  %v4803_v2 = vld [vmem:[%s6453_s1 + $0x210] ss:$8 sps:$4 sm:$0xff]  }
  0x28   : > { %v382_v57 = vld [vmem:[%s6454_s2 + $0xe8] sm:$0xff]  ;;  %v381_v58 = vld [vmem:[%s6454_s2 + $0xe0] sm:$0xff]  ;;  %v384_v61 = vld [vmem:[%s6454_s2 + $0xf8] sm:$0xff]  ;;  %p4986_p13 = pnand %p4985_p12, %p5126_p4  ;;  %p4993_p3 = por %p4992_p2, %p4991_p1 }
  0x29   : > { %2017 = vmatpush1.bf16.msra.mxu0 %v4767_v20  ;;  %4686 = vmatpush1.bf16.msra.mxu1 %v4767_v20  ;;  %v383_v62 = vld [vmem:[%s6454_s2 + $0xf0] sm:$0xff]  ;;  %v386_v63 = vld [vmem:[%s6454_s2 + $0x108] sm:$0xff]  ;;  %v385_v0 = vld [vmem:[%s6454_s2 + $0x100] sm:$0xff] }
  0x2a   : > { %538 = vperm.xlu1 %4755, %v364_v18   ;;  %533 = vperm.xlu0 %4754, %v363_v19   ;;  %v4804_v3 = vld [vmem:[%s6453_s1 + $0x24] ss:$8 sps:$4 sm:$0xff]   ;;  %v388_v5 = vld [vmem:[%s6454_s2 + $0x118] sm:$0xff]  ;;  %v387_v6 = vld [vmem:[%s6454_s2 + $0x110] sm:$0xff]  ;;  %p4987_p0 = pneg %p4986_p13 }
  0x2b   : > { %2018 = vmatprep.subr.bf16.mxu0 %v4768_v21  ;;  %4675 = vmatprep.subr.bf16.mxu1 %v4768_v21  ;;  %v4806_v4 = vld [vmem:[%s6453_s1 + $0x224] ss:$8 sps:$4 sm:$0xff]   ;;  %v4808_v9 = vld [vmem:[%s6453_s1 + $0x20] ss:$8 sps:$4 sm:$0xff]   ;;  %v4810_v11 = vld [vmem:[%s6453_s1 + $0x34] ss:$8 sps:$4 sm:$0xff]  }
  0x2c   : > { %v390_v7 = vld [vmem:[%s6454_s2 + $0x128] sm:$0xff]  ;;  %v389_v8 = vld [vmem:[%s6454_s2 + $0x120] sm:$0xff]  ;;  %v4812_v12 = vld [vmem:[%s6453_s1 + $0x234] ss:$8 sps:$4 sm:$0xff]   ;;  %p4994_p5 = pnand %p4993_p3, %p4987_p0 }
  0x2d   : > { %2019 = vmatpush1.bf16.msra.mxu0 %v4770_v24  ;;  %4687 = vmatpush1.bf16.msra.mxu1 %v4770_v24  ;;  %v4809_v10 = vld [vmem:[%s6453_s1 + $0x220] ss:$8 sps:$4 sm:$0xff]   ;;  %v392_v13 = vld [vmem:[%s6454_s2 + $0x138] sm:$0xff]  ;;  %v391_v14 = vld [vmem:[%s6454_s2 + $0x130] sm:$0xff] }
  0x2e   : > { %548 = vperm.xlu1 %4755, %v366_v22   ;;  %543 = vperm.xlu0 %4754, %v365_v23   ;;  %v394_v15 = vld [vmem:[%s6454_s2 + $0x148] sm:$0xff]  ;;  %v393_v16 = vld [vmem:[%s6454_s2 + $0x140] sm:$0xff]  ;;  %v4814_v17 = vld [vmem:[%s6453_s1 + $0x30] ss:$8 sps:$4 sm:$0xff]  }
  0x2f   : > { %2020 = vmatprep.subr.bf16.mxu0 %v4771_v25  ;;  %4676 = vmatprep.subr.bf16.mxu1 %v4771_v25  ;;  %v4815_v18 = vld [vmem:[%s6453_s1 + $0x230] ss:$8 sps:$4 sm:$0xff]   ;;  %v4816_v19 = vld [vmem:[%s6453_s1 + $0x44] ss:$8 sps:$4 sm:$0xff]   ;;  %v4820_v25 = vld [vmem:[%s6453_s1 + $0x40] ss:$8 sps:$4 sm:$0xff]  }
  0x30   : > { %v4818_v20 = vld [vmem:[%s6453_s1 + $0x244] ss:$8 sps:$4 sm:$0xff]   ;;  %v396_v21 = vld [vmem:[%s6454_s2 + $0x158] sm:$0xff]  ;;  %v395_v22 = vld [vmem:[%s6454_s2 + $0x150] sm:$0xff] }
  0x31   : > { %2021 = vmatpush1.bf16.msra.mxu0 %v4773_v29  ;;  %4688 = vmatpush1.bf16.msra.mxu1 %v4773_v29  ;;  %v398_v23 = vld [vmem:[%s6454_s2 + $0x168] sm:$0xff]  ;;  %v397_v24 = vld [vmem:[%s6454_s2 + $0x160] sm:$0xff]  ;;  %v4824_v28 = vld [vmem:[%s6453_s1 + $0x254] ss:$8 sps:$4 sm:$0xff]  }
  0x32   : > { %558 = vperm.xlu1 %4755, %v368_v26   ;;  %553 = vperm.xlu0 %4754, %v367_v27   ;;  %v4821_v26 = vld [vmem:[%s6453_s1 + $0x240] ss:$8 sps:$4 sm:$0xff]   ;;  %v4822_v27 = vld [vmem:[%s6453_s1 + $0x54] ss:$8 sps:$4 sm:$0xff]  }
  0x33   : > { %2022 = vmatprep.subr.bf16.mxu0 %v4774_v31  ;;  %4677 = vmatprep.subr.bf16.mxu1 %v4774_v31  ;;  %v400_v29 = vld [vmem:[%s6454_s2 + $0x178] sm:$0xff]  ;;  %v399_v30 = vld [vmem:[%s6454_s2 + $0x170] sm:$0xff]  ;;  %v402_v31 = vld [vmem:[%s6454_s2 + $0x188] sm:$0xff] }
  0x35   : > { %2023 = vmatpush1.bf16.msra.mxu0 %v4776_v34  ;;  %4689 = vmatpush1.bf16.msra.mxu1 %v4776_v34  ;;  %v4827_v34 = vld [vmem:[%s6453_s1 + $0x250] ss:$8 sps:$4 sm:$0xff]  }
  0x36   : > { %568 = vperm.xlu1 %4755, %v370_v32   ;;  %563 = vperm.xlu0 %4754, %v369_v33   ;;  %v401_v32 = vld [vmem:[%s6454_s2 + $0x180] sm:$0xff]  ;;  %v4826_v33 = vld [vmem:[%s6453_s1 + $0x50] ss:$8 sps:$4 sm:$0xff]  }
  0x37   : > { %2024 = vmatprep.subr.bf16.mxu0 %v4777_v35  ;;  %4678 = vmatprep.subr.bf16.mxu1 %v4777_v35  ;;  %v4828_v35 = vld [vmem:[%s6453_s1 + $0x64] ss:$8 sps:$4 sm:$0xff]  }
  0x39   : > { %2025 = vmatpush1.bf16.msra.mxu0 %v4779_v38  ;;  %4690 = vmatpush1.bf16.msra.mxu1 %v4779_v38  ;;  %v403_v38 = vld [vmem:[%s6454_s2 + $0x190] sm:$0xff] }
  0x3a   : > { %578 = vperm.xlu1 %4755, %v372_v36   ;;  %573 = vperm.xlu0 %4754, %v371_v37   ;;  %v4830_v36 = vld [vmem:[%s6453_s1 + $0x264] ss:$8 sps:$4 sm:$0xff]   ;;  %v404_v37 = vld [vmem:[%s6454_s2 + $0x198] sm:$0xff] }
  0x3b   : > { %2034 = vmatprep.subr.bf16.mxu0 %v4780_v39  ;;  %4679 = vmatprep.subr.bf16.mxu1 %v4780_v39  ;;  %v406_v39 = vld [vmem:[%s6454_s2 + $0x1a8] sm:$0xff] }
  0x3d   : > { %2035 = vmatpush2.bf16.msra.mxu0 %v4782_v42  ;;  %4691 = vmatpush2.bf16.msra.mxu1 %v4782_v42  ;;  %v4833_v42 = vld [vmem:[%s6453_s1 + $0x260] ss:$8 sps:$4 sm:$0xff]  }
  0x3e   : > { %588 = vperm.xlu1 %4755, %v374_v40   ;;  %583 = vperm.xlu0 %4754, %v373_v41   ;;  %v405_v40 = vld [vmem:[%s6454_s2 + $0x1a0] sm:$0xff] }
  0x3f   : > { %2036 = vmatprep.subr.bf16.mxu0 %v4783_v43  ;;  %4680 = vmatprep.subr.bf16.mxu1 %v4783_v43  ;;  %v4832_v41 = vld [vmem:[%s6453_s1 + $0x60] ss:$8 sps:$4 sm:$0xff]   ;;  %v4834_v43 = vld [vmem:[%s6453_s1 + $0x74] ss:$8 sps:$4 sm:$0xff]  }
  0x41   : > { %2037 = vmatpush2.bf16.msra.mxu0 %v4785_v46  ;;  %4692 = vmatpush2.bf16.msra.mxu1 %v4785_v46  ;;  %v407_v46 = vld [vmem:[%s6454_s2 + $0x1b0] sm:$0xff] }
  0x42   : > { %598 = vperm.xlu1 %4755, %v376_v44   ;;  %593 = vperm.xlu0 %4754, %v375_v45   ;;  %v4836_v44 = vld [vmem:[%s6453_s1 + $0x274] ss:$8 sps:$4 sm:$0xff]  }
  0x43   : > { %2038 = vmatprep.subr.bf16.mxu0 %v4786_v47  ;;  %4681 = vmatprep.subr.bf16.mxu1 %v4786_v47  ;;  %v408_v45 = vld [vmem:[%s6454_s2 + $0x1b8] sm:$0xff]  ;;  %v410_v47 = vld [vmem:[%s6454_s2 + $0x1c8] sm:$0xff] }
  0x45   : > { %2039 = vmatpush2.bf16.msra.mxu0 %v4788_v50  ;;  %4693 = vmatpush2.bf16.msra.mxu1 %v4788_v50  ;;  %v4839_v50 = vld [vmem:[%s6453_s1 + $0x270] ss:$8 sps:$4 sm:$0xff]  }
  0x46   : > { %608 = vperm.xlu1 %4755, %v378_v48   ;;  %603 = vperm.xlu0 %4754, %v377_v49   ;;  %v409_v48 = vld [vmem:[%s6454_s2 + $0x1c0] sm:$0xff]  ;;  %v4838_v49 = vld [vmem:[%s6453_s1 + $0x70] ss:$8 sps:$4 sm:$0xff]  }
  0x47   : > { %2040 = vmatprep.subr.bf16.mxu0 %v4789_v51  ;;  %4682 = vmatprep.subr.bf16.mxu1 %v4789_v51  ;;  %v4840_v51 = vld [vmem:[%s6453_s1 + $0x84] ss:$8 sps:$4 sm:$0xff]  }
  0x49   : > { %2041 = vmatpush2.bf16.msra.mxu0 %v4791_v54  ;;  %4694 = vmatpush2.bf16.msra.mxu1 %v4791_v54  ;;  %v411_v54 = vld [vmem:[%s6454_s2 + $0x1d0] sm:$0xff] }
  0x4a   : > { %618 = vperm.xlu1 %4755, %v380_v52   ;;  %613 = vperm.xlu0 %4754, %v379_v53   ;;  %v4842_v52 = vld [vmem:[%s6453_s1 + $0x284] ss:$8 sps:$4 sm:$0xff]   ;;  %v412_v53 = vld [vmem:[%s6454_s2 + $0x1d8] sm:$0xff] }
  0x4c   : > { %2043 = vmatmul.mubr.bf16.vlgmr.msra.gmra.mxu0 %v4792_v55  ;;  %2363 = vmatmul.mubr.bf16.vlgmr.msra.gmra.mxu1 %v4795_v56  ;;  %v414_v55 = vld [vmem:[%s6454_s2 + $0x1e8] sm:$0xff]  ;;  %v413_v56 = vld [vmem:[%s6454_s2 + $0x1e0] sm:$0xff] }
  0x4d   : > { %4346 = vmatprep.mubr.msk.bf16.mxu0 %vm1817_vm0, %v4798_v59  ;;  %4378 = vmatprep.mubr.msk.bf16.mxu1 %vm1817_vm0, %v4800_v60  ;;  %v4846_v59 = vld [vmem:[%s6453_s1 + $0x94] ss:$8 sps:$4 sm:$0xff]  }
  0x4e   : > { %628 = vperm.xlu1 %4755, %v382_v57   ;;  %623 = vperm.xlu0 %4754, %v381_v58   ;;  %v4844_v57 = vld [vmem:[%s6453_s1 + $0x80] ss:$8 sps:$4 sm:$0xff]   ;;  %v4848_v60 = vld [vmem:[%s6453_s1 + $0x294] ss:$8 sps:$4 sm:$0xff]  }
  0x4f   : > { %v4845_v58 = vld [vmem:[%s6453_s1 + $0x280] ss:$8 sps:$4 sm:$0xff]  }
  0x52   : > { %638 = vperm.xlu1 %4755, %v384_v61   ;;  %633 = vperm.xlu0 %4754, %v383_v62   ;;  %v416_v61 = vld [vmem:[%s6454_s2 + $0x1f8] sm:$0xff]  ;;  %v415_v62 = vld [vmem:[%s6454_s2 + $0x1f0] sm:$0xff] }
  0x54   : > { %2053 = vmatmul.mubr.bf16.gmra.mxu0 %v4802_v1  ;;  %2373 = vmatmul.mubr.bf16.gmra.mxu1 %v4803_v2  ;;  %v418_v1 = vld [vmem:[%s6454_s2 + $0x208] sm:$0xff]  ;;  %v417_v2 = vld [vmem:[%s6454_s2 + $0x200] sm:$0xff] }
  0x55   : > { %4347 = vmatprep.mubr.msk.bf16.mxu0 %vm1817_vm0, %v4804_v3  ;;  %4379 = vmatprep.mubr.msk.bf16.mxu1 %vm1817_vm0, %v4806_v4  ;;  %v4850_v3 = vld [vmem:[%s6453_s1 + $0x90] ss:$8 sps:$4 sm:$0xff]  }
  0x56   : > { %648 = vperm.xlu1 %4755, %v386_v63   ;;  %643 = vperm.xlu0 %4754, %v385_v0   ;;  %v4851_v4 = vld [vmem:[%s6453_s1 + $0x290] ss:$8 sps:$4 sm:$0xff]  }
  0x5a   : > { %658 = vperm.xlu1 %4755, %v388_v5   ;;  %653 = vperm.xlu0 %4754, %v387_v6   ;;  %v4852_v5 = vld [vmem:[%s6453_s1 + $0xa4] ss:$8 sps:$4 sm:$0xff]  }
  0x5b   : > { %v4854_v6 = vld [vmem:[%s6453_s1 + $0x2a4] ss:$8 sps:$4 sm:$0xff]  }
  0x5c   : > { %2063 = vmatmul.mubr.bf16.gmra.mxu0 %v4808_v9  ;;  %2383 = vmatmul.mubr.bf16.gmra.mxu1 %v4809_v10  ;;  %v420_v9 = vld [vmem:[%s6454_s2 + $0x218] sm:$0xff]  ;;  %v419_v10 = vld [vmem:[%s6454_s2 + $0x210] sm:$0xff] }
  0x5d   : > { %4348 = vmatprep.mubr.msk.bf16.mxu0 %vm1817_vm0, %v4810_v11  ;;  %4380 = vmatprep.mubr.msk.bf16.mxu1 %vm1817_vm0, %v4812_v12 }
  0x5e   : > { %668 = vperm.xlu1 %4755, %v390_v7   ;;  %663 = vperm.xlu0 %4754, %v389_v8  }
  0x62   : > { %678 = vperm.xlu1 %4755, %v392_v13   ;;  %673 = vperm.xlu0 %4754, %v391_v14   ;;  %v422_v13 = vld [vmem:[%s6454_s2 + $0x228] sm:$0xff]  ;;  %v421_v14 = vld [vmem:[%s6454_s2 + $0x220] sm:$0xff] }
  0x64   : > { %2073 = vmatmul.mubr.bf16.gmra.mxu0 %v4814_v17  ;;  %2393 = vmatmul.mubr.bf16.gmra.mxu1 %v4815_v18  ;;  %v4858_v17 = vld [vmem:[%s6453_s1 + $0xb4] ss:$8 sps:$4 sm:$0xff]  }
  0x65   : > { %4349 = vmatprep.mubr.msk.bf16.mxu0 %vm1817_vm0, %v4816_v19  ;;  %4381 = vmatprep.mubr.msk.bf16.mxu1 %vm1817_vm0, %v4818_v20  ;;  %v4860_v18 = vld [vmem:[%s6453_s1 + $0x2b4] ss:$8 sps:$4 sm:$0xff]  }
  0x66   : > { %688 = vperm.xlu1 %4755, %v394_v15   ;;  %683 = vperm.xlu0 %4754, %v393_v16   ;;  %v4856_v15 = vld [vmem:[%s6453_s1 + $0xa0] ss:$8 sps:$4 sm:$0xff]  }
  0x67   : > { %v4857_v16 = vld [vmem:[%s6453_s1 + $0x2a0] ss:$8 sps:$4 sm:$0xff]  }
  0x6a   : > { %698 = vperm.xlu1 %4755, %v396_v21   ;;  %693 = vperm.xlu0 %4754, %v395_v22   ;;  %v424_v21 = vld [vmem:[%s6454_s2 + $0x238] sm:$0xff]  ;;  %v423_v22 = vld [vmem:[%s6454_s2 + $0x230] sm:$0xff] }
  0x6c   : > { %2083 = vmatmul.mubr.bf16.gmra.mxu0 %v4820_v25  ;;  %2403 = vmatmul.mubr.bf16.gmra.mxu1 %v4821_v26  ;;  %v426_v25 = vld [vmem:[%s6454_s2 + $0x248] sm:$0xff]  ;;  %v425_v26 = vld [vmem:[%s6454_s2 + $0x240] sm:$0xff] }
  0x6d   : > { %4350 = vmatprep.mubr.msk.bf16.mxu0 %vm1817_vm0, %v4822_v27  ;;  %4382 = vmatprep.mubr.msk.bf16.mxu1 %vm1817_vm0, %v4824_v28  ;;  %v4862_v27 = vld [vmem:[%s6453_s1 + $0xb0] ss:$8 sps:$4 sm:$0xff]  }
  0x6e   : > { %708 = vperm.xlu1 %4755, %v398_v23   ;;  %703 = vperm.xlu0 %4754, %v397_v24   ;;  %v4863_v28 = vld [vmem:[%s6453_s1 + $0x2b0] ss:$8 sps:$4 sm:$0xff]  }
  0x72   : > { %718 = vperm.xlu1 %4755, %v400_v29   ;;  %713 = vperm.xlu0 %4754, %v399_v30   ;;  %v4864_v29 = vld [vmem:[%s6453_s1 + $0xc4] ss:$8 sps:$4 sm:$0xff]  }
  0x73   : > { %v4866_v30 = vld [vmem:[%s6453_s1 + $0x2c4] ss:$8 sps:$4 sm:$0xff]  }
  0x74   : > { %2093 = vmatmul.mubr.bf16.gmra.mxu0 %v4826_v33  ;;  %2413 = vmatmul.mubr.bf16.gmra.mxu1 %v4827_v34  ;;  %v428_v33 = vld [vmem:[%s6454_s2 + $0x258] sm:$0xff]  ;;  %v427_v34 = vld [vmem:[%s6454_s2 + $0x250] sm:$0xff] }
  0x75   : > { %4351 = vmatprep.mubr.msk.bf16.mxu0 %vm1817_vm0, %v4828_v35  ;;  %4383 = vmatprep.mubr.msk.bf16.mxu1 %vm1817_vm0, %v4830_v36 }
  0x76   : > { %728 = vperm.xlu1 %4755, %v402_v31   ;;  %723 = vperm.xlu0 %4754, %v401_v32  }
  0x7a   : > { %738 = vperm.xlu1 %4755, %v404_v37   ;;  %733 = vperm.xlu0 %4754, %v403_v38   ;;  %v430_v37 = vld [vmem:[%s6454_s2 + $0x268] sm:$0xff]  ;;  %v429_v38 = vld [vmem:[%s6454_s2 + $0x260] sm:$0xff] }
  0x7c   : > { %2103 = vmatmul.mubr.bf16.gmra.mxu0 %v4832_v41  ;;  %2423 = vmatmul.mubr.bf16.gmra.mxu1 %v4833_v42  ;;  %v4870_v41 = vld [vmem:[%s6453_s1 + $0xd4] ss:$8 sps:$4 sm:$0xff]  }
  0x7d   : > { %4352 = vmatprep.mubr.msk.bf16.mxu0 %vm1817_vm0, %v4834_v43  ;;  %4384 = vmatprep.mubr.msk.bf16.mxu1 %vm1817_vm0, %v4836_v44  ;;  %v4872_v42 = vld [vmem:[%s6453_s1 + $0x2d4] ss:$8 sps:$4 sm:$0xff]  }
  0x7e   : > { %748 = vperm.xlu1 %4755, %v406_v39   ;;  %743 = vperm.xlu0 %4754, %v405_v40   ;;  %v4868_v39 = vld [vmem:[%s6453_s1 + $0xc0] ss:$8 sps:$4 sm:$0xff]  }
  0x7f   : > { %v4869_v40 = vld [vmem:[%s6453_s1 + $0x2c0] ss:$8 sps:$4 sm:$0xff]  }
  0x82   : > { %758 = vperm.xlu1 %4755, %v408_v45   ;;  %753 = vperm.xlu0 %4754, %v407_v46   ;;  %v432_v45 = vld [vmem:[%s6454_s2 + $0x278] sm:$0xff]  ;;  %v431_v46 = vld [vmem:[%s6454_s2 + $0x270] sm:$0xff] }
  0x84   : > { %2113 = vmatmul.mubr.bf16.gmra.mxu0 %v4838_v49  ;;  %2433 = vmatmul.mubr.bf16.gmra.mxu1 %v4839_v50  ;;  %v434_v49 = vld [vmem:[%s6454_s2 + $0x288] sm:$0xff]  ;;  %v433_v50 = vld [vmem:[%s6454_s2 + $0x280] sm:$0xff] }
  0x85   : > { %4353 = vmatprep.mubr.msk.bf16.mxu0 %vm1817_vm0, %v4840_v51  ;;  %4385 = vmatprep.mubr.msk.bf16.mxu1 %vm1817_vm0, %v4842_v52  ;;  %v4874_v51 = vld [vmem:[%s6453_s1 + $0xd0] ss:$8 sps:$4 sm:$0xff]  }
  0x86   : > { %768 = vperm.xlu1 %4755, %v410_v47   ;;  %763 = vperm.xlu0 %4754, %v409_v48   ;;  %v4875_v52 = vld [vmem:[%s6453_s1 + $0x2d0] ss:$8 sps:$4 sm:$0xff]  }
  0x8a   : > { %778 = vperm.xlu1 %4755, %v412_v53   ;;  %773 = vperm.xlu0 %4754, %v411_v54   ;;  %v4876_v53 = vld [vmem:[%s6453_s1 + $0xe4] ss:$8 sps:$4 sm:$0xff]  }
  0x8b   : > { %v4878_v54 = vld [vmem:[%s6453_s1 + $0x2e4] ss:$8 sps:$4 sm:$0xff]  }
  0x8c   : > { %2123 = vmatmul.mubr.bf16.gmra.mxu0 %v4844_v57  ;;  %2443 = vmatmul.mubr.bf16.gmra.mxu1 %v4845_v58  ;;  %v436_v57 = vld [vmem:[%s6454_s2 + $0x298] sm:$0xff]  ;;  %v435_v58 = vld [vmem:[%s6454_s2 + $0x290] sm:$0xff] }
  0x8d   : > { %4354 = vmatprep.mubr.msk.bf16.mxu0 %vm1817_vm0, %v4846_v59  ;;  %4386 = vmatprep.mubr.msk.bf16.mxu1 %vm1817_vm0, %v4848_v60 }
  0x8e   : > { %788 = vperm.xlu1 %4755, %v414_v55   ;;  %783 = vperm.xlu0 %4754, %v413_v56  }
  0x91   : > { %v5498_v63 = vpop.permute.xlu1 %493  ;;  %v5500_v0 = vpop.permute.xlu0 %483 }
  0x92   : > { %798 = vperm.xlu1 %4755, %v416_v61   ;;  %793 = vperm.xlu0 %4754, %v415_v62   ;;  %v438_v61 = vld [vmem:[%s6454_s2 + $0x2a8] sm:$0xff]  ;;  %v437_v62 = vld [vmem:[%s6454_s2 + $0x2a0] sm:$0xff] }
  0x94   : > { %2133 = vmatmul.mubr.bf16.gmra.mxu0 %v4850_v3  ;;  %2453 = vmatmul.mubr.bf16.gmra.mxu1 %v4851_v4  ;;  %v4882_v3 = vld [vmem:[%s6453_s1 + $0xf4] ss:$8 sps:$4 sm:$0xff]  }
  0x95   : > { %v5520_v7 = vpop.permute.xlu1 %498  ;;  %v5522_v8 = vpop.permute.xlu0 %488  ;;  %4355 = vmatprep.mubr.msk.bf16.mxu0 %vm1817_vm0, %v4852_v5  ;;  %4387 = vmatprep.mubr.msk.bf16.mxu1 %vm1817_vm0, %v4854_v6  ;;  %v4884_v4 = vld [vmem:[%s6453_s1 + $0x2f4] ss:$8 sps:$4 sm:$0xff]  }
  0x96   : > { %808 = vperm.xlu1 %4755, %v418_v1   ;;  %803 = vperm.xlu0 %4754, %v417_v2   ;;  %v4880_v1 = vld [vmem:[%s6453_s1 + $0xe0] ss:$8 sps:$4 sm:$0xff]  }
  0x97   : > { %v4881_v2 = vld [vmem:[%s6453_s1 + $0x2e0] ss:$8 sps:$4 sm:$0xff]  }
  0x99   : > { %v5532_v11 = vpop.permute.xlu1 %508  ;;  %v5534_v12 = vpop.permute.xlu0 %503 }
  0x9a   : > { %818 = vperm.xlu1 %4755, %v420_v9   ;;  %813 = vperm.xlu0 %4754, %v419_v10   ;;  %v440_v9 = vld [vmem:[%s6454_s2 + $0x2b8] sm:$0xff]  ;;  %v439_v10 = vld [vmem:[%s6454_s2 + $0x2b0] sm:$0xff] }
  0x9c   : > { %2143 = vmatmul.mubr.bf16.gmra.mxu0 %v4856_v15  ;;  %2463 = vmatmul.mubr.bf16.gmra.mxu1 %v4857_v16  ;;  %v442_v15 = vld [vmem:[%s6454_s2 + $0x2c8] sm:$0xff]  ;;  %v441_v16 = vld [vmem:[%s6454_s2 + $0x2c0] sm:$0xff] }
  0x9d   : > { %v5554_v19 = vpop.permute.xlu1 %518  ;;  %v5556_v20 = vpop.permute.xlu0 %513  ;;  %4356 = vmatprep.mubr.msk.bf16.mxu0 %vm1817_vm0, %v4858_v17  ;;  %4388 = vmatprep.mubr.msk.bf16.mxu1 %vm1817_vm0, %v4860_v18  ;;  %v4886_v17 = vld [vmem:[%s6453_s1 + $0xf0] ss:$8 sps:$4 sm:$0xff]  }
  0x9e   : > { %828 = vperm.xlu1 %4755, %v422_v13   ;;  %823 = vperm.xlu0 %4754, %v421_v14   ;;  %v4887_v18 = vld [vmem:[%s6453_s1 + $0x2f0] ss:$8 sps:$4 sm:$0xff]  }
  0xa1   : > { %v5566_v23 = vpop.permute.xlu1 %528  ;;  %v5568_v24 = vpop.permute.xlu0 %523 }
  0xa2   : > { %838 = vperm.xlu1 %4755, %v424_v21   ;;  %833 = vperm.xlu0 %4754, %v423_v22   ;;  %v4888_v21 = vld [vmem:[%s6453_s1 + $0x104] ss:$8 sps:$4 sm:$0xff]  }
  0xa3   : > { %v4890_v22 = vld [vmem:[%s6453_s1 + $0x304] ss:$8 sps:$4 sm:$0xff]  }
  0xa4   : > { %2153 = vmatmul.mubr.bf16.gmra.mxu0 %v4862_v27  ;;  %2473 = vmatmul.mubr.bf16.gmra.mxu1 %v4863_v28  ;;  %v444_v27 = vld [vmem:[%s6454_s2 + $0x2d8] sm:$0xff]  ;;  %v443_v28 = vld [vmem:[%s6454_s2 + $0x2d0] sm:$0xff] }
  0xa5   : > { %v5588_v31 = vpop.permute.xlu1 %538  ;;  %v5590_v32 = vpop.permute.xlu0 %533  ;;  %4357 = vmatprep.mubr.msk.bf16.mxu0 %vm1817_vm0, %v4864_v29  ;;  %4389 = vmatprep.mubr.msk.bf16.mxu1 %vm1817_vm0, %v4866_v30 }
  0xa6   : > { %848 = vperm.xlu1 %4755, %v426_v25   ;;  %843 = vperm.xlu0 %4754, %v425_v26  }
  0xa9   : > { %v5600_v35 = vpop.permute.xlu1 %548  ;;  %v5602_v36 = vpop.permute.xlu0 %543 }
  0xaa   : > { %858 = vperm.xlu1 %4755, %v428_v33   ;;  %853 = vperm.xlu0 %4754, %v427_v34   ;;  %v446_v33 = vld [vmem:[%s6454_s2 + $0x2e8] sm:$0xff]  ;;  %v445_v34 = vld [vmem:[%s6454_s2 + $0x2e0] sm:$0xff] }
  0xac   : > { %2163 = vmatmul.mubr.bf16.gmra.mxu0 %v4868_v39  ;;  %2483 = vmatmul.mubr.bf16.gmra.mxu1 %v4869_v40  ;;  %v4894_v39 = vld [vmem:[%s6453_s1 + $0x114] ss:$8 sps:$4 sm:$0xff]  }
  0xad   : > { %v5622_v43 = vpop.permute.xlu1 %558  ;;  %v5624_v44 = vpop.permute.xlu0 %553  ;;  %4358 = vmatprep.mubr.msk.bf16.mxu0 %vm1817_vm0, %v4870_v41  ;;  %4390 = vmatprep.mubr.msk.bf16.mxu1 %vm1817_vm0, %v4872_v42  ;;  %v4896_v40 = vld [vmem:[%s6453_s1 + $0x314] ss:$8 sps:$4 sm:$0xff]  }
  0xae   : > { %868 = vperm.xlu1 %4755, %v430_v37   ;;  %863 = vperm.xlu0 %4754, %v429_v38   ;;  %v4892_v37 = vld [vmem:[%s6453_s1 + $0x100] ss:$8 sps:$4 sm:$0xff]  }
  0xaf   : > { %v4893_v38 = vld [vmem:[%s6453_s1 + $0x300] ss:$8 sps:$4 sm:$0xff]  }
  0xb1   : > { %v5634_v47 = vpop.permute.xlu1 %568  ;;  %v5636_v48 = vpop.permute.xlu0 %563 }
  0xb2   : > { %878 = vperm.xlu1 %4755, %v432_v45   ;;  %873 = vperm.xlu0 %4754, %v431_v46   ;;  %v448_v45 = vld [vmem:[%s6454_s2 + $0x2f8] sm:$0xff]  ;;  %v447_v46 = vld [vmem:[%s6454_s2 + $0x2f0] sm:$0xff] }
  0xb4   : > { %2173 = vmatmul.mubr.bf16.gmra.mxu0 %v4874_v51  ;;  %2493 = vmatmul.mubr.bf16.gmra.mxu1 %v4875_v52  ;;  %v450_v51 = vld [vmem:[%s6454_s2 + $0x308] sm:$0xff]  ;;  %v449_v52 = vld [vmem:[%s6454_s2 + $0x300] sm:$0xff] }
  0xb5   : > { %v5656_v55 = vpop.permute.xlu1 %578  ;;  %v5658_v56 = vpop.permute.xlu0 %573  ;;  %4359 = vmatprep.mubr.msk.bf16.mxu0 %vm1817_vm0, %v4876_v53  ;;  %4391 = vmatprep.mubr.msk.bf16.mxu1 %vm1817_vm0, %v4878_v54  ;;  %v4898_v53 = vld [vmem:[%s6453_s1 + $0x110] ss:$8 sps:$4 sm:$0xff]  }
  0xb6   : > { %888 = vperm.xlu1 %4755, %v434_v49   ;;  %883 = vperm.xlu0 %4754, %v433_v50   ;;  %v4899_v54 = vld [vmem:[%s6453_s1 + $0x310] ss:$8 sps:$4 sm:$0xff]  }
  0xb9   : > { %v5668_v59 = vpop.permute.xlu1 %588  ;;  %v5670_v60 = vpop.permute.xlu0 %583 }
  0xba   : > { %898 = vperm.xlu1 %4755, %v436_v57   ;;  %893 = vperm.xlu0 %4754, %v435_v58   ;;  %v4900_v57 = vld [vmem:[%s6453_s1 + $0x124] ss:$8 sps:$4 sm:$0xff]  }
  0xbb   : > { %v4902_v58 = vld [vmem:[%s6453_s1 + $0x324] ss:$8 sps:$4 sm:$0xff]  }
  0xbc   : > { %2183 = vmatmul.mubr.bf16.gmra.mxu0 %v4880_v1  ;;  %2503 = vmatmul.mubr.bf16.gmra.mxu1 %v4881_v2  ;;  %v452_v1 = vld [vmem:[%s6454_s2 + $0x318] sm:$0xff]  ;;  %v451_v2 = vld [vmem:[%s6454_s2 + $0x310] sm:$0xff] }
  0xbd   : > { %v5690_v5 = vpop.permute.xlu1 %598  ;;  %v5692_v6 = vpop.permute.xlu0 %593  ;;  %4360 = vmatprep.mubr.msk.bf16.mxu0 %vm1817_vm0, %v4882_v3  ;;  %4392 = vmatprep.mubr.msk.bf16.mxu1 %vm1817_vm0, %v4884_v4 }
  0xbe   : > { %908 = vperm.xlu1 %4755, %v438_v61   ;;  %903 = vperm.xlu0 %4754, %v437_v62  }
  0xc1   : > { %v5702_v13 = vpop.permute.xlu1 %608  ;;  %v5704_v14 = vpop.permute.xlu0 %603 }
  0xc2   : > { %918 = vperm.xlu1 %4755, %v440_v9   ;;  %913 = vperm.xlu0 %4754, %v439_v10   ;;  %v454_v9 = vld [vmem:[%s6454_s2 + $0x328] sm:$0xff]  ;;  %v453_v10 = vld [vmem:[%s6454_s2 + $0x320] sm:$0xff] }
  0xc4   : > { %2193 = vmatmul.mubr.bf16.gmra.mxu0 %v4886_v17  ;;  %2513 = vmatmul.mubr.bf16.gmra.mxu1 %v4887_v18  ;;  %v4906_v17 = vld [vmem:[%s6453_s1 + $0x134] ss:$8 sps:$4 sm:$0xff]  }
  0xc5   : > { %v5724_v25 = vpop.permute.xlu1 %618  ;;  %v5726_v26 = vpop.permute.xlu0 %613  ;;  %4361 = vmatprep.mubr.msk.bf16.mxu0 %vm1817_vm0, %v4888_v21  ;;  %4393 = vmatprep.mubr.msk.bf16.mxu1 %vm1817_vm0, %v4890_v22  ;;  %v4908_v18 = vld [vmem:[%s6453_s1 + $0x334] ss:$8 sps:$4 sm:$0xff]  }
  0xc6   : > { %928 = vperm.xlu1 %4755, %v442_v15   ;;  %923 = vperm.xlu0 %4754, %v441_v16   ;;  %v4904_v15 = vld [vmem:[%s6453_s1 + $0x120] ss:$8 sps:$4 sm:$0xff]  }
  0xc7   : > { %v4905_v16 = vld [vmem:[%s6453_s1 + $0x320] ss:$8 sps:$4 sm:$0xff]  }
  0xc9   : > { %v5736_v29 = vpop.permute.xlu1 %628  ;;  %v5738_v30 = vpop.permute.xlu0 %623 }
  0xca   : > { %938 = vperm.xlu1 %4755, %v444_v27   ;;  %933 = vperm.xlu0 %4754, %v443_v28   ;;  %v456_v27 = vld [vmem:[%s6454_s2 + $0x338] sm:$0xff]  ;;  %v455_v28 = vld [vmem:[%s6454_s2 + $0x330] sm:$0xff] }
  0xcc   : > { %2203 = vmatmul.mubr.bf16.gmra.mxu0 %v4892_v37  ;;  %2523 = vmatmul.mubr.bf16.gmra.mxu1 %v4893_v38  ;;  %v458_v37 = vld [vmem:[%s6454_s2 + $0x348] sm:$0xff]  ;;  %v457_v38 = vld [vmem:[%s6454_s2 + $0x340] sm:$0xff] }
  0xcd   : > { %v5758_v41 = vpop.permute.xlu1 %638  ;;  %v5760_v42 = vpop.permute.xlu0 %633  ;;  %4362 = vmatprep.mubr.msk.bf16.mxu0 %vm1817_vm0, %v4894_v39  ;;  %4394 = vmatprep.mubr.msk.bf16.mxu1 %vm1817_vm0, %v4896_v40  ;;  %v4910_v39 = vld [vmem:[%s6453_s1 + $0x130] ss:$8 sps:$4 sm:$0xff]  }
  0xce   : > { %948 = vperm.xlu1 %4755, %v446_v33   ;;  %943 = vperm.xlu0 %4754, %v445_v34   ;;  %v4911_v40 = vld [vmem:[%s6453_s1 + $0x330] ss:$8 sps:$4 sm:$0xff]  }
  0xd1   : > { %v5770_v49 = vpop.permute.xlu1 %648  ;;  %v5772_v50 = vpop.permute.xlu0 %643 }
  0xd2   : > { %958 = vperm.xlu1 %4755, %v448_v45   ;;  %953 = vperm.xlu0 %4754, %v447_v46   ;;  %v4912_v45 = vld [vmem:[%s6453_s1 + $0x144] ss:$8 sps:$4 sm:$0xff]  }
  0xd3   : > { %v4914_v46 = vld [vmem:[%s6453_s1 + $0x344] ss:$8 sps:$4 sm:$0xff]  }
  0xd4   : > { %2213 = vmatmul.mubr.bf16.gmra.mxu0 %v4898_v53  ;;  %2533 = vmatmul.mubr.bf16.gmra.mxu1 %v4899_v54  ;;  %v460_v53 = vld [vmem:[%s6454_s2 + $0x358] sm:$0xff]  ;;  %v459_v54 = vld [vmem:[%s6454_s2 + $0x350] sm:$0xff] }
  0xd5   : > { %v5792_v61 = vpop.permute.xlu1 %658  ;;  %v5794_v62 = vpop.permute.xlu0 %653  ;;  %4363 = vmatprep.mubr.msk.bf16.mxu0 %vm1817_vm0, %v4900_v57  ;;  %4395 = vmatprep.mubr.msk.bf16.mxu1 %vm1817_vm0, %v4902_v58 }
  0xd6   : > { %6487 = vst [vmem:[#allocation5_spill] sm:$0xff] %v5792_v61  ;;  %968 = vperm.xlu1 %4755, %v450_v51   ;;  %963 = vperm.xlu0 %4754, %v449_v52  }
  0xd9   : > { %v5804_v3 = vpop.permute.xlu1 %668  ;;  %v5806_v4 = vpop.permute.xlu0 %663 }
  0xda   : > { %6488 = vst [vmem:[#allocation6_spill] sm:$0xff] %v5804_v3  ;;  %6489 = vst [vmem:[#allocation7_spill] sm:$0xff] %v5806_v4  ;;  %978 = vperm.xlu1 %4755, %v452_v1   ;;  %973 = vperm.xlu0 %4754, %v451_v2   ;;  %v462_v1 = vld [vmem:[%s6454_s2 + $0x368] sm:$0xff]  ;;  %v461_v2 = vld [vmem:[%s6454_s2 + $0x360] sm:$0xff] }
  0xdc   : > { %2223 = vmatmul.mubr.bf16.gmra.mxu0 %v4904_v15  ;;  %2543 = vmatmul.mubr.bf16.gmra.mxu1 %v4905_v16  ;;  %v4918_v15 = vld [vmem:[%s6453_s1 + $0x154] ss:$8 sps:$4 sm:$0xff]  }
  0xdd   : > { %v5826_v21 = vpop.permute.xlu1 %678  ;;  %v5828_v22 = vpop.permute.xlu0 %673  ;;  %4364 = vmatprep.mubr.msk.bf16.mxu0 %vm1817_vm0, %v4906_v17  ;;  %4396 = vmatprep.mubr.msk.bf16.mxu1 %vm1817_vm0, %v4908_v18  ;;  %v4920_v16 = vld [vmem:[%s6453_s1 + $0x354] ss:$8 sps:$4 sm:$0xff]  }
  0xde   : > { %6490 = vst [vmem:[#allocation8_spill] sm:$0xff] %v5826_v21  ;;  %6491 = vst [vmem:[#allocation9_spill] sm:$0xff] %v5828_v22  ;;  %988 = vperm.xlu1 %4755, %v454_v9   ;;  %983 = vperm.xlu0 %4754, %v453_v10   ;;  %v4916_v9 = vld [vmem:[%s6453_s1 + $0x140] ss:$8 sps:$4 sm:$0xff]  }
  0xdf   : > { %v4917_v10 = vld [vmem:[%s6453_s1 + $0x340] ss:$8 sps:$4 sm:$0xff]  }
  0xe1   : > { %v5838_v33 = vpop.permute.xlu1 %688  ;;  %v5840_v34 = vpop.permute.xlu0 %683 }
  0xe2   : > { %6492 = vst [vmem:[#allocation10_spill] sm:$0xff] %v5838_v33  ;;  %6493 = vst [vmem:[#allocation11_spill] sm:$0xff] %v5840_v34  ;;  %998 = vperm.xlu1 %4755, %v456_v27   ;;  %993 = vperm.xlu0 %4754, %v455_v28   ;;  %v464_v27 = vld [vmem:[%s6454_s2 + $0x378] sm:$0xff]  ;;  %v463_v28 = vld [vmem:[%s6454_s2 + $0x370] sm:$0xff] }
  0xe4   : > { %2233 = vmatmul.mubr.bf16.gmra.mxu0 %v4910_v39  ;;  %2553 = vmatmul.mubr.bf16.gmra.mxu1 %v4911_v40  ;;  %v466_v39 = vld [vmem:[%s6454_s2 + $0x388] sm:$0xff]  ;;  %v465_v40 = vld [vmem:[%s6454_s2 + $0x380] sm:$0xff] }
  0xe5   : > { %v5860_v51 = vpop.permute.xlu1 %698  ;;  %v5862_v52 = vpop.permute.xlu0 %693  ;;  %4365 = vmatprep.mubr.msk.bf16.mxu0 %vm1817_vm0, %v4912_v45  ;;  %4397 = vmatprep.mubr.msk.bf16.mxu1 %vm1817_vm0, %v4914_v46  ;;  %v4922_v45 = vld [vmem:[%s6453_s1 + $0x150] ss:$8 sps:$4 sm:$0xff]  }
  0xe6   : > { %6494 = vst [vmem:[#allocation12_spill] sm:$0xff] %v5860_v51  ;;  %6495 = vst [vmem:[#allocation13_spill] sm:$0xff] %v5862_v52  ;;  %1008 = vperm.xlu1 %4755, %v458_v37   ;;  %1003 = vperm.xlu0 %4754, %v457_v38   ;;  %v4923_v46 = vld [vmem:[%s6453_s1 + $0x350] ss:$8 sps:$4 sm:$0xff]  }
  0xe9   : > { %v5872_v57 = vpop.permute.xlu1 %708  ;;  %v5874_v58 = vpop.permute.xlu0 %703 }
  0xea   : > { %6496 = vst [vmem:[#allocation14_spill] sm:$0xff] %v5872_v57  ;;  %6497 = vst [vmem:[#allocation15_spill] sm:$0xff] %v5874_v58  ;;  %1018 = vperm.xlu1 %4755, %v460_v53   ;;  %1013 = vperm.xlu0 %4754, %v459_v54   ;;  %v4924_v53 = vld [vmem:[%s6453_s1 + $0x164] ss:$8 sps:$4 sm:$0xff]  }
  0xeb   : > { %v4926_v54 = vld [vmem:[%s6453_s1 + $0x364] ss:$8 sps:$4 sm:$0xff]  }
  0xec   : > { %2243 = vmatmul.mubr.bf16.gmra.mxu0 %v4916_v9  ;;  %2563 = vmatmul.mubr.bf16.gmra.mxu1 %v4917_v10  ;;  %v468_v9 = vld [vmem:[%s6454_s2 + $0x398] sm:$0xff]  ;;  %v467_v10 = vld [vmem:[%s6454_s2 + $0x390] sm:$0xff] }
  0xed   : > { %v5894_v17 = vpop.permute.xlu1 %718  ;;  %v5896_v18 = vpop.permute.xlu0 %713  ;;  %4366 = vmatprep.mubr.msk.bf16.mxu0 %vm1817_vm0, %v4918_v15  ;;  %4398 = vmatprep.mubr.msk.bf16.mxu1 %vm1817_vm0, %v4920_v16 }
  0xee   : > { %6498 = vst [vmem:[#allocation16_spill] sm:$0xff] %v5894_v17  ;;  %6499 = vst [vmem:[#allocation17_spill] sm:$0xff] %v5896_v18  ;;  %1028 = vperm.xlu1 %4755, %v462_v1   ;;  %1023 = vperm.xlu0 %4754, %v461_v2  }
  0xf1   : > { %v5906_v37 = vpop.permute.xlu1 %728  ;;  %v5908_v38 = vpop.permute.xlu0 %723 }
  0xf2   : > { %6500 = vst [vmem:[#allocation18_spill] sm:$0xff] %v5906_v37  ;;  %6501 = vst [vmem:[#allocation19_spill] sm:$0xff] %v5908_v38  ;;  %1038 = vperm.xlu1 %4755, %v464_v27   ;;  %1033 = vperm.xlu0 %4754, %v463_v28   ;;  %v470_v27 = vld [vmem:[%s6454_s2 + $0x3a8] sm:$0xff]  ;;  %v469_v28 = vld [vmem:[%s6454_s2 + $0x3a0] sm:$0xff] }
  0xf4   : > { %2253 = vmatmul.mubr.bf16.gmra.mxu0 %v4922_v45  ;;  %2573 = vmatmul.mubr.bf16.gmra.mxu1 %v4923_v46  ;;  %v4930_v45 = vld [vmem:[%s6453_s1 + $0x174] ss:$8 sps:$4 sm:$0xff]  }
  0xf5   : > { %v5928_v1 = vpop.permute.xlu1 %738  ;;  %v5930_v2 = vpop.permute.xlu0 %733  ;;  %4367 = vmatprep.mubr.msk.bf16.mxu0 %vm1817_vm0, %v4924_v53  ;;  %4399 = vmatprep.mubr.msk.bf16.mxu1 %vm1817_vm0, %v4926_v54  ;;  %v4932_v46 = vld [vmem:[%s6453_s1 + $0x374] ss:$8 sps:$4 sm:$0xff]  }
  0xf6   : > { %6502 = vst [vmem:[#allocation20_spill] sm:$0xff] %v5928_v1  ;;  %6503 = vst [vmem:[#allocation21_spill] sm:$0xff] %v5930_v2  ;;  %1048 = vperm.xlu1 %4755, %v466_v39   ;;  %1043 = vperm.xlu0 %4754, %v465_v40   ;;  %v4928_v39 = vld [vmem:[%s6453_s1 + $0x160] ss:$8 sps:$4 sm:$0xff]  }
  0xf7   : > { %v4929_v40 = vld [vmem:[%s6453_s1 + $0x360] ss:$8 sps:$4 sm:$0xff]  }
  0xf9   : > { %v5940_v15 = vpop.permute.xlu1 %748  ;;  %v5942_v16 = vpop.permute.xlu0 %743 }
  0xfa   : > { %6504 = vst [vmem:[#allocation22_spill] sm:$0xff] %v5940_v15  ;;  %6505 = vst [vmem:[#allocation23_spill] sm:$0xff] %v5942_v16  ;;  %1058 = vperm.xlu1 %4755, %v468_v9   ;;  %1053 = vperm.xlu0 %4754, %v467_v10   ;;  %v472_v9 = vld [vmem:[%s6454_s2 + $0x3b8] sm:$0xff]  ;;  %v471_v10 = vld [vmem:[%s6454_s2 + $0x3b0] sm:$0xff] }
  0xfb   : > { %v479_v16 = vld [vmem:[%s6454_s2 + $0x3f0] sm:$0xff] }
  0xfc   : > { %2263 = vmatmul.mubr.bf16.gmra.mxu0 %v4928_v39  ;;  %2583 = vmatmul.mubr.bf16.gmra.mxu1 %v4929_v40  ;;  %v4934_v39 = vld [vmem:[%s6453_s1 + $0x170] ss:$8 sps:$4 sm:$0xff]  }
  0xfd   : > { %v5962_v53 = vpop.permute.xlu1 %758  ;;  %v5964_v54 = vpop.permute.xlu0 %753  ;;  %4368 = vmatprep.mubr.msk.bf16.mxu0 %vm1817_vm0, %v4930_v45  ;;  %4400 = vmatprep.mubr.msk.bf16.mxu1 %vm1817_vm0, %v4932_v46  ;;  %v4935_v40 = vld [vmem:[%s6453_s1 + $0x370] ss:$8 sps:$4 sm:$0xff]   ;;  %v4936_v45 = vld [vmem:[%s6453_s1 + $0x184] ss:$8 sps:$4 sm:$0xff]  }
  0xfe   : > { %6506 = vst [vmem:[#allocation24_spill] sm:$0xff] %v5962_v53  ;;  %6507 = vst [vmem:[#allocation25_spill] sm:$0xff] %v5964_v54  ;;  %1068 = vperm.xlu1 %4755, %v470_v27   ;;  %1063 = vperm.xlu0 %4754, %v469_v28   ;;  %v474_v27 = vld [vmem:[%s6454_s2 + $0x3c8] sm:$0xff]  ;;  %v473_v28 = vld [vmem:[%s6454_s2 + $0x3c0] sm:$0xff] }
  0xff   : > { %v4938_v46 = vld [vmem:[%s6453_s1 + $0x384] ss:$8 sps:$4 sm:$0xff]  }
 0x101   : > { %v5974_v15 = vpop.permute.xlu1 %768  ;;  %v5976_v53 = vpop.permute.xlu0 %763 }
 0x102   : > { %6508 = vst [vmem:[#allocation26_spill] sm:$0xff] %v5974_v15  ;;  %6509 = vst [vmem:[#allocation27_spill] sm:$0xff] %v5976_v53  ;;  %1078 = vperm.xlu1 %4755, %v472_v9   ;;  %1073 = vperm.xlu0 %4754, %v471_v10   ;;  %v476_v15 = vld [vmem:[%s6454_s2 + $0x3d8] sm:$0xff]  ;;  %v475_v53 = vld [vmem:[%s6454_s2 + $0x3d0] sm:$0xff] }
 0x104   : > { %2273 = vmatmul.mubr.bf16.gmra.mxu0 %v4934_v39  ;;  %2593 = vmatmul.mubr.bf16.gmra.mxu1 %v4935_v40  ;;  %v4940_v39 = vld [vmem:[%s6453_s1 + $0x180] ss:$8 sps:$4 sm:$0xff]  }
 0x105   : > { %v5996_v9 = vpop.permute.xlu1 %778  ;;  %v5998_v10 = vpop.permute.xlu0 %773  ;;  %4369 = vmatprep.mubr.msk.bf16.mxu0 %vm1817_vm0, %v4936_v45  ;;  %4401 = vmatprep.mubr.msk.bf16.mxu1 %vm1817_vm0, %v4938_v46  ;;  %v4941_v40 = vld [vmem:[%s6453_s1 + $0x380] ss:$8 sps:$4 sm:$0xff]  }
 0x106   : > { %6510 = vst [vmem:[#allocation28_spill] sm:$0xff] %v5996_v9  ;;  %6511 = vst [vmem:[#allocation29_spill] sm:$0xff] %v5998_v10  ;;  %1088 = vperm.xlu1 %4755, %v474_v27   ;;  %1083 = vperm.xlu0 %4754, %v473_v28   ;;  %v478_v27 = vld [vmem:[%s6454_s2 + $0x3e8] sm:$0xff]  ;;  %v477_v28 = vld [vmem:[%s6454_s2 + $0x3e0] sm:$0xff] }
 0x107   : > { %v480_v10 = vld [vmem:[%s6454_s2 + $0x3f8] sm:$0xff] }
 0x109   : > { %v6008_v54 = vpop.permute.xlu1 %788  ;;  %v6010_v9 = vpop.permute.xlu0 %783 }
 0x10a   : > { %6512 = vst [vmem:[#allocation30_spill] sm:$0xff] %v6008_v54  ;;  %6513 = vst [vmem:[#allocation31_spill] sm:$0xff] %v6010_v9  ;;  %1098 = vperm.xlu1 %4755, %v476_v15   ;;  %1093 = vperm.xlu0 %4754, %v475_v53   ;;  %v4942_v15 = vld [vmem:[%s6453_s1 + $0x194] ss:$8 sps:$4 sm:$0xff]  }
 0x10b   : > { %v4944_v53 = vld [vmem:[%s6453_s1 + $0x394] ss:$8 sps:$4 sm:$0xff]  }
 0x10c   : > { %v2044_v54 = vpop.f32.mrf.mxu0  ;;  %2283 = vmatmul.mubr.bf16.gmra.mxu0 %v4940_v39  ;;  %v2364_v9 = vpop.f32.mrf.mxu1  ;;  %2603 = vmatmul.mubr.bf16.gmra.mxu1 %v4941_v40 }
 0x10d   : > { %v6030_v45 = vpop.permute.xlu1 %798  ;;  %v6032_v46 = vpop.permute.xlu0 %793  ;;  %v2045_v1 = vadd.f32 %v2044_v54, %v5500_v0  ;;  %4370 = vmatprep.mubr.msk.bf16.mxu0 %vm1817_vm0, %v4942_v15  ;;  %4402 = vmatprep.mubr.msk.bf16.mxu1 %vm1817_vm0, %v4944_v53  ;;  %v4946_v15 = vld [vmem:[%s6453_s1 + $0x190] ss:$8 sps:$4 sm:$0xff]  }
 0x10e   : > { %6514 = vst [vmem:[#allocation32_spill] sm:$0xff] %v6030_v45  ;;  %6515 = vst [vmem:[#allocation33_spill] sm:$0xff] %v6032_v46  ;;  %1108 = vperm.xlu1 %4755, %v478_v27   ;;  %1103 = vperm.xlu0 %4754, %v477_v28   ;;  %v2046_v27 = vpop.f32.mrf.mxu0  ;;  %v2366_v28 = vpop.f32.mrf.mxu1  ;;  %v4947_v53 = vld [vmem:[%s6453_s1 + $0x390] ss:$8 sps:$4 sm:$0xff]  }
 0x10f   : > { %v2683_v39 = vmul.f32 0.2, %v2045_v1  ;;  %v2047_v40 = vadd.f32 %v2046_v27, %v5500_v0 }
 0x110   : > { %v2048_v54 = vpop.f32.mrf.mxu0  ;;  %v2368_v38 = vpop.f32.mrf.mxu1 }
 0x111   : > { %v809_v45 = vpop.permute.xlu1 %808  ;;  %v804_v46 = vpop.permute.xlu0 %803  ;;  %v2684_v0 = vmul.f32 0.2, %v2047_v40  ;;  %v2049_v27 = vadd.f32 %v2048_v54, %v5522_v8  ;;  %v2939_v57 = vmax.f32 %v2045_v1, %v2683_v39 }
 0x112   : > { %1118 = vperm.xlu1 %4755, %v480_v10   ;;  %1113 = vperm.xlu0 %4754, %v479_v16   ;;  %v2365_v2 = vadd.f32 %v2364_v9, %v804_v46  ;;  %v2367_v37 = vadd.f32 %v2366_v28, %v804_v46  ;;  %v2369_v10 = vadd.f32 %v2368_v38, %v809_v45  ;;  %v4948_v16 = vld [vmem:[%s6453_s1 + $0x1a4] ss:$8 sps:$4 sm:$0xff]   ;;  %v2050_v17 = vpop.f32.mrf.mxu0  ;;  %v2370_v18 = vpop.f32.mrf.mxu1 }
 0x113   : > { %v4950_v9 = vld [vmem:[%s6453_s1 + $0x3a4] ss:$8 sps:$4 sm:$0xff]   ;;  %v2940_v58 = vmax.f32 %v2047_v40, %v2684_v0  ;;  %v2685_v51 = vmul.f32 0.2, %v2049_v27  ;;  %v2051_v52 = vadd.f32 %v2050_v17, %v5522_v8  ;;  %v2371_v21 = vadd.f32 %v2370_v18, %v809_v45  ;;  %v4952_v40 = vld [vmem:[%s6453_s1 + $0x1a0] ss:$8 sps:$4 sm:$0xff]  }
 0x114   : > { %v2811_v46 = vmul.f32 0.2, %v2365_v2  ;;  %v2812_v28 = vmul.f32 0.2, %v2367_v37  ;;  %v2813_v34 = vmul.f32 0.2, %v2369_v10  ;;  %v2054_v22 = vpop.f32.mrf.mxu0  ;;  %2293 = vmatmul.mubr.bf16.gmra.mxu0 %v4946_v15  ;;  %v2374_v3 = vpop.f32.mrf.mxu1  ;;  %2613 = vmatmul.mubr.bf16.gmra.mxu1 %v4947_v53 }
 0x115   : > { %v814_v33 = vpop.permute.xlu0 %813  ;;  %v4542_v4 = vpack.c.bf16 %v2940_v58, %v2939_v57  ;;  %v2686_v61 = vmul.f32 0.2, %v2051_v52  ;;  %4371 = vmatprep.mubr.msk.bf16.mxu0 %vm1817_vm0, %v4948_v16  ;;  %4403 = vmatprep.mubr.msk.bf16.mxu1 %vm1817_vm0, %v4950_v9  ;;  %v2814_v39 = vmul.f32 0.2, %v2371_v21  ;;  %v2055_v8 = vadd.f32 %v2054_v22, %v5498_v63 }
 0x116   : > { %v3067_v54 = vmax.f32 %v2365_v2, %v2811_v46  ;;  %v3068_v38 = vmax.f32 %v2367_v37, %v2812_v28  ;;  %v2375_v17 = vadd.f32 %v2374_v3, %v814_v33  ;;  %v2056_v2 = vpop.f32.mrf.mxu0  ;;  %v2376_v37 = vpop.f32.mrf.mxu1  ;;  %v2941_v18 = vmax.f32 %v2049_v27, %v2685_v51  ;;  %v4953_v3 = vld [vmem:[%s6453_s1 + $0x3a0] ss:$8 sps:$4 sm:$0xff]  }
 0x117   : > { %3963 = vst [vmem:[%s6067_s28] sm:$0xff] %v4542_v4  ;;  %v2942_v45 = vmax.f32 %v2051_v52, %v2686_v61  ;;  %v2057_v57 = vadd.f32 %v2056_v2, %v5498_v63  ;;  %v2377_v58 = vadd.f32 %v2376_v37, %v814_v33  ;;  %v3069_v22 = vmax.f32 %v2369_v10, %v2813_v34  ;;  %v4954_v63 = vld [vmem:[%s6453_s1 + $0x1b4] ss:$8 sps:$4 sm:$0xff]   ;;  %v819_v33 = vpop.permute.xlu1 %818 }
 0x118   : > { %v4606_v1 = vpack.c.bf16 %v3068_v38, %v3067_v54  ;;  %v3070_v15 = vmax.f32 %v2371_v21, %v2814_v39  ;;  %v2687_v53 = vmul.f32 0.2, %v2055_v8  ;;  %v2815_v0 = vmul.f32 0.2, %v2375_v17  ;;  %v2058_v4 = vpop.f32.mrf.mxu0  ;;  %v2378_v51 = vpop.f32.mrf.mxu1  ;;  %v4956_v21 = vld [vmem:[%s6453_s1 + $0x3b4] ss:$8 sps:$4 sm:$0xff]  }
 0x119   : > { %v4543_v61 = vpack.c.bf16 %v2942_v45, %v2941_v18  ;;  %v2688_v52 = vmul.f32 0.2, %v2057_v57  ;;  %v2816_v27 = vmul.f32 0.2, %v2377_v58  ;;  %v2059_v16 = vadd.f32 %v2058_v4, %v5520_v7 }
 0x11a   : > { %4027 = vst [vmem:[%s6067_s28 + $0x200] sm:$0xff] %v4606_v1  ;;  %v4607_v34 = vpack.c.bf16 %v3070_v15, %v3069_v22  ;;  %v2943_v10 = vmax.f32 %v2055_v8, %v2687_v53  ;;  %v3071_v9 = vmax.f32 %v2375_v17, %v2815_v0  ;;  %v2379_v46 = vadd.f32 %v2378_v51, %v819_v33  ;;  %v2060_v28 = vpop.f32.mrf.mxu0  ;;  %v2380_v54 = vpop.f32.mrf.mxu1 }
 0x11b   : > { %3964 = vst [vmem:[%s6067_s28 + $0x8] sm:$0xff] %v4543_v61  ;;  %v2944_v38 = vmax.f32 %v2057_v57, %v2688_v52  ;;  %v3072_v1 = vmax.f32 %v2377_v58, %v2816_v27  ;;  %v2689_v39 = vmul.f32 0.2, %v2059_v16  ;;  %v2061_v2 = vadd.f32 %v2060_v28, %v5520_v7  ;;  %v824_v22 = vpop.permute.xlu0 %823 }
 0x11c   : > { %4028 = vst [vmem:[%s6067_s28 + $0x208] sm:$0xff] %v4607_v34  ;;  %v2817_v37 = vmul.f32 0.2, %v2379_v46  ;;  %v2381_v18 = vadd.f32 %v2380_v54, %v819_v33  ;;  %v2064_v45 = vpop.f32.mrf.mxu0  ;;  %2303 = vmatmul.mubr.bf16.gmra.mxu0 %v4952_v40  ;;  %v2384_v4 = vpop.f32.mrf.mxu1  ;;  %2623 = vmatmul.mubr.bf16.gmra.mxu1 %v4953_v3  ;;  %v4958_v33 = vld [vmem:[%s6453_s1 + $0x1b0] ss:$8 sps:$4 sm:$0xff]  }
 0x11d   : > { %v4544_v8 = vpack.c.bf16 %v2944_v38, %v2943_v10  ;;  %v4608_v17 = vpack.c.bf16 %v3072_v1, %v3071_v9  ;;  %v2690_v15 = vmul.f32 0.2, %v2061_v2  ;;  %4372 = vmatprep.mubr.msk.bf16.mxu0 %vm1817_vm0, %v4954_v63  ;;  %4404 = vmatprep.mubr.msk.bf16.mxu1 %vm1817_vm0, %v4956_v21  ;;  %v2065_v7 = vadd.f32 %v2064_v45, %v5534_v12  ;;  %v4959_v63 = vld [vmem:[%s6453_s1 + $0x3b0] ss:$8 sps:$4 sm:$0xff]  }
 0x11e   : > { %v2818_v57 = vmul.f32 0.2, %v2381_v18  ;;  %v2385_v58 = vadd.f32 %v2384_v4, %v824_v22  ;;  %v2066_v53 = vpop.f32.mrf.mxu0  ;;  %v2386_v0 = vpop.f32.mrf.mxu1  ;;  %v2945_v51 = vmax.f32 %v2059_v16, %v2689_v39  ;;  %v3073_v52 = vmax.f32 %v2379_v46, %v2817_v37  ;;  %v4962_v46 = vld [vmem:[%s6453_s1 + $0x3c4] ss:$8 sps:$4 sm:$0xff]  }
 0x11f   : > { %3965 = vst [vmem:[%s6067_s28 + $0x10] sm:$0xff] %v4544_v8  ;;  %4029 = vst [vmem:[%s6067_s28 + $0x210] sm:$0xff] %v4608_v17  ;;  %v2946_v40 = vmax.f32 %v2061_v2, %v2690_v15  ;;  %v2067_v3 = vadd.f32 %v2066_v53, %v5534_v12  ;;  %v2387_v61 = vadd.f32 %v2386_v0, %v824_v22  ;;  %v2691_v21 = vmul.f32 0.2, %v2065_v7  ;;  %v4960_v12 = vld [vmem:[%s6453_s1 + $0x1c4] ss:$8 sps:$4 sm:$0xff]   ;;  %v829_v16 = vpop.permute.xlu1 %828 }
 0x120   : > { %v3074_v27 = vmax.f32 %v2381_v18, %v2818_v57  ;;  %v2819_v34 = vmul.f32 0.2, %v2385_v58  ;;  %v2068_v10 = vpop.f32.mrf.mxu0  ;;  %v2388_v9 = vpop.f32.mrf.mxu1 }
 0x121   : > { %v4545_v28 = vpack.c.bf16 %v2946_v40, %v2945_v51  ;;  %v2692_v54 = vmul.f32 0.2, %v2067_v3  ;;  %v2820_v38 = vmul.f32 0.2, %v2387_v61  ;;  %v2069_v1 = vadd.f32 %v2068_v10, %v5532_v11 }
 0x122   : > { %v4609_v39 = vpack.c.bf16 %v3074_v27, %v3073_v52  ;;  %v2947_v2 = vmax.f32 %v2065_v7, %v2691_v21  ;;  %v3075_v37 = vmax.f32 %v2385_v58, %v2819_v34  ;;  %v2389_v18 = vadd.f32 %v2388_v9, %v829_v16  ;;  %v2070_v45 = vpop.f32.mrf.mxu0  ;;  %v2390_v4 = vpop.f32.mrf.mxu1  ;;  %v4964_v9 = vld [vmem:[%s6453_s1 + $0x1c0] ss:$8 sps:$4 sm:$0xff]  }
 0x123   : > { %3966 = vst [vmem:[%s6067_s28 + $0x18] sm:$0xff] %v4545_v28  ;;  %v2948_v8 = vmax.f32 %v2067_v3, %v2692_v54  ;;  %v3076_v17 = vmax.f32 %v2387_v61, %v2820_v38  ;;  %v2693_v22 = vmul.f32 0.2, %v2069_v1  ;;  %v2071_v15 = vadd.f32 %v2070_v45, %v5532_v11  ;;  %v834_v7 = vpop.permute.xlu0 %833 }
 0x124   : > { %4030 = vst [vmem:[%s6067_s28 + $0x218] sm:$0xff] %v4609_v39  ;;  %v2821_v57 = vmul.f32 0.2, %v2389_v18  ;;  %v2391_v53 = vadd.f32 %v2390_v4, %v829_v16  ;;  %v2074_v0 = vpop.f32.mrf.mxu0  ;;  %2313 = vmatmul.mubr.bf16.gmra.mxu0 %v4958_v33  ;;  %v2394_v51 = vpop.f32.mrf.mxu1  ;;  %2633 = vmatmul.mubr.bf16.gmra.mxu1 %v4959_v63 }
 0x125   : > { %v4546_v58 = vpack.c.bf16 %v2948_v8, %v2947_v2  ;;  %v4610_v40 = vpack.c.bf16 %v3076_v17, %v3075_v37  ;;  %v2694_v52 = vmul.f32 0.2, %v2071_v15  ;;  %4373 = vmatprep.mubr.msk.bf16.mxu0 %vm1817_vm0, %v4960_v12  ;;  %4405 = vmatprep.mubr.msk.bf16.mxu1 %vm1817_vm0, %v4962_v46  ;;  %v2075_v11 = vadd.f32 %v2074_v0, %v5556_v20  ;;  %v4965_v12 = vld [vmem:[%s6453_s1 + $0x3c0] ss:$8 sps:$4 sm:$0xff]  }
 0x126   : > { %v2822_v3 = vmul.f32 0.2, %v2391_v53  ;;  %v2395_v61 = vadd.f32 %v2394_v51, %v834_v7  ;;  %v2076_v27 = vpop.f32.mrf.mxu0  ;;  %v2396_v21 = vpop.f32.mrf.mxu1  ;;  %v2949_v34 = vmax.f32 %v2069_v1, %v2693_v22  ;;  %v3077_v16 = vmax.f32 %v2389_v18, %v2821_v57  ;;  %v4968_v18 = vld [vmem:[%s6453_s1 + $0x3d4] ss:$8 sps:$4 sm:$0xff]  }
 0x127   : > { %3967 = vst [vmem:[%s6067_s28 + $0x20] sm:$0xff] %v4546_v58  ;;  %4031 = vst [vmem:[%s6067_s28 + $0x220] sm:$0xff] %v4610_v40  ;;  %v2950_v33 = vmax.f32 %v2071_v15, %v2694_v52  ;;  %v2077_v63 = vadd.f32 %v2076_v27, %v5556_v20  ;;  %v2397_v10 = vadd.f32 %v2396_v21, %v834_v7  ;;  %v2695_v54 = vmul.f32 0.2, %v2075_v11  ;;  %v4966_v20 = vld [vmem:[%s6453_s1 + $0x1d4] ss:$8 sps:$4 sm:$0xff]   ;;  %v839_v1 = vpop.permute.xlu1 %838 }
 0x128   : > { %v3078_v28 = vmax.f32 %v2391_v53, %v2822_v3  ;;  %v2823_v38 = vmul.f32 0.2, %v2395_v61  ;;  %v2078_v46 = vpop.f32.mrf.mxu0  ;;  %v2398_v39 = vpop.f32.mrf.mxu1 }
 0x129   : > { %v4547_v2 = vpack.c.bf16 %v2950_v33, %v2949_v34  ;;  %v2696_v37 = vmul.f32 0.2, %v2077_v63  ;;  %v2824_v45 = vmul.f32 0.2, %v2397_v10  ;;  %v2079_v4 = vadd.f32 %v2078_v46, %v5554_v19  ;;  %v4971_v46 = vld [vmem:[%s6453_s1 + $0x3d0] ss:$8 sps:$4 sm:$0xff]  }
 0x12a   : > { %v4611_v8 = vpack.c.bf16 %v3078_v28, %v3077_v16  ;;  %v2951_v17 = vmax.f32 %v2075_v11, %v2695_v54  ;;  %v3079_v22 = vmax.f32 %v2395_v61, %v2823_v38  ;;  %v2399_v15 = vadd.f32 %v2398_v39, %v839_v1  ;;  %v2080_v57 = vpop.f32.mrf.mxu0  ;;  %v2400_v53 = vpop.f32.mrf.mxu1  ;;  %v4970_v38 = vld [vmem:[%s6453_s1 + $0x1d0] ss:$8 sps:$4 sm:$0xff]  }
 0x12b   : > { %3968 = vst [vmem:[%s6067_s28 + $0x28] sm:$0xff] %v4547_v2  ;;  %v2952_v0 = vmax.f32 %v2077_v63, %v2696_v37  ;;  %v3080_v51 = vmax.f32 %v2397_v10, %v2824_v45  ;;  %v2697_v7 = vmul.f32 0.2, %v2079_v4  ;;  %v2081_v58 = vadd.f32 %v2080_v57, %v5554_v19  ;;  %v844_v11 = vpop.permute.xlu0 %843 }
 0x12c   : > { %4032 = vst [vmem:[%s6067_s28 + $0x228] sm:$0xff] %v4611_v8  ;;  %v2825_v40 = vmul.f32 0.2, %v2399_v15  ;;  %v2401_v52 = vadd.f32 %v2400_v53, %v839_v1  ;;  %v2084_v3 = vpop.f32.mrf.mxu0  ;;  %2323 = vmatmul.mubr.bf16.gmra.mxu0 %v4964_v9  ;;  %v2404_v27 = vpop.f32.mrf.mxu1  ;;  %2643 = vmatmul.mubr.bf16.gmra.mxu1 %v4965_v12 }
 0x12d   : > { %v4548_v61 = vpack.c.bf16 %v2952_v0, %v2951_v17  ;;  %v4612_v21 = vpack.c.bf16 %v3080_v51, %v3079_v22  ;;  %v2698_v34 = vmul.f32 0.2, %v2081_v58  ;;  %4374 = vmatprep.mubr.msk.bf16.mxu0 %vm1817_vm0, %v4966_v20  ;;  %4406 = vmatprep.mubr.msk.bf16.mxu1 %vm1817_vm0, %v4968_v18  ;;  %v2085_v19 = vadd.f32 %v2084_v3, %v5568_v24 }
 0x12e   : > { %v2826_v33 = vmul.f32 0.2, %v2401_v52  ;;  %v2405_v63 = vadd.f32 %v2404_v27, %v844_v11  ;;  %v2086_v10 = vpop.f32.mrf.mxu0  ;;  %v2406_v16 = vpop.f32.mrf.mxu1  ;;  %v2953_v28 = vmax.f32 %v2079_v4, %v2697_v7  ;;  %v3081_v39 = vmax.f32 %v2399_v15, %v2825_v40  ;;  %v4974_v15 = vld [vmem:[%s6453_s1 + $0x3e4] ss:$8 sps:$4 sm:$0xff]  }
 0x12f   : > { %3969 = vst [vmem:[%s6067_s28 + $0x30] sm:$0xff] %v4548_v61  ;;  %4033 = vst [vmem:[%s6067_s28 + $0x230] sm:$0xff] %v4612_v21  ;;  %v2954_v9 = vmax.f32 %v2081_v58, %v2698_v34  ;;  %v2087_v12 = vadd.f32 %v2086_v10, %v5568_v24  ;;  %v2407_v54 = vadd.f32 %v2406_v16, %v844_v11  ;;  %v2699_v1 = vmul.f32 0.2, %v2085_v19  ;;  %v4972_v24 = vld [vmem:[%s6453_s1 + $0x1e4] ss:$8 sps:$4 sm:$0xff]   ;;  %v849_v4 = vpop.permute.xlu1 %848 }
 0x130   : > { %v3082_v20 = vmax.f32 %v2401_v52, %v2826_v33  ;;  %v2827_v2 = vmul.f32 0.2, %v2405_v63  ;;  %v2088_v37 = vpop.f32.mrf.mxu0  ;;  %v2408_v45 = vpop.f32.mrf.mxu1 }
 0x131   : > { %v4549_v18 = vpack.c.bf16 %v2954_v9, %v2953_v28  ;;  %v2700_v8 = vmul.f32 0.2, %v2087_v12  ;;  %v2828_v17 = vmul.f32 0.2, %v2407_v54  ;;  %v2089_v22 = vadd.f32 %v2088_v37, %v5566_v23  ;;  %v854_v33 = vpop.permute.xlu0 %853 }
 0x132   : > { %v4613_v57 = vpack.c.bf16 %v3082_v20, %v3081_v39  ;;  %v2955_v53 = vmax.f32 %v2085_v19, %v2699_v1  ;;  %v3083_v0 = vmax.f32 %v2405_v63, %v2827_v2  ;;  %v2409_v51 = vadd.f32 %v2408_v45, %v849_v4  ;;  %v2090_v7 = vpop.f32.mrf.mxu0  ;;  %v2410_v58 = vpop.f32.mrf.mxu1  ;;  %v4976_v20 = vld [vmem:[%s6453_s1 + $0x1e0] ss:$8 sps:$4 sm:$0xff]  }
 0x133   : > { %3970 = vst [vmem:[%s6067_s28 + $0x38] sm:$0xff] %v4549_v18  ;;  %v2956_v40 = vmax.f32 %v2087_v12, %v2700_v8  ;;  %v3084_v52 = vmax.f32 %v2407_v54, %v2828_v17  ;;  %v2701_v3 = vmul.f32 0.2, %v2089_v22  ;;  %v2091_v27 = vadd.f32 %v2090_v7, %v5566_v23  ;;  %v4977_v1 = vld [vmem:[%s6453_s1 + $0x3e0] ss:$8 sps:$4 sm:$0xff]   ;;  %v859_v8 = vpop.permute.xlu1 %858 }
 0x134   : > { %4034 = vst [vmem:[%s6067_s28 + $0x238] sm:$0xff] %v4613_v57  ;;  %v2829_v11 = vmul.f32 0.2, %v2409_v51  ;;  %v2411_v61 = vadd.f32 %v2410_v58, %v849_v4  ;;  %v2094_v21 = vpop.f32.mrf.mxu0  ;;  %2333 = vmatmul.mubr.bf16.gmra.mxu0 %v4970_v38  ;;  %v2414_v34 = vpop.f32.mrf.mxu1  ;;  %2653 = vmatmul.mubr.bf16.gmra.mxu1 %v4971_v46 }
 0x135   : > { %v4550_v19 = vpack.c.bf16 %v2956_v40, %v2955_v53  ;;  %v4614_v63 = vpack.c.bf16 %v3084_v52, %v3083_v0  ;;  %v2702_v10 = vmul.f32 0.2, %v2091_v27  ;;  %4375 = vmatprep.mubr.msk.bf16.mxu0 %vm1817_vm0, %v4972_v24  ;;  %4407 = vmatprep.mubr.msk.bf16.mxu1 %vm1817_vm0, %v4974_v15  ;;  %v2095_v23 = vadd.f32 %v2094_v21, %v5590_v32  ;;  %v4980_v53 = vld [vmem:[%s6453_s1 + $0x3f4] ss:$8 sps:$4 sm:$0xff]  }
 0x136   : > { %v2830_v16 = vmul.f32 0.2, %v2411_v61  ;;  %v2415_v28 = vadd.f32 %v2414_v34, %v854_v33  ;;  %v2096_v9 = vpop.f32.mrf.mxu0  ;;  %v2416_v12 = vpop.f32.mrf.mxu1  ;;  %v2957_v54 = vmax.f32 %v2089_v22, %v2701_v3  ;;  %v3085_v2 = vmax.f32 %v2409_v51, %v2829_v11 }
 0x137   : > { %3971 = vst [vmem:[%s6067_s28 + $0x40] sm:$0xff] %v4550_v19  ;;  %4035 = vst [vmem:[%s6067_s28 + $0x240] sm:$0xff] %v4614_v63  ;;  %v2958_v38 = vmax.f32 %v2091_v27, %v2702_v10  ;;  %v2097_v46 = vadd.f32 %v2096_v9, %v5590_v32  ;;  %v2417_v39 = vadd.f32 %v2416_v12, %v854_v33  ;;  %v2703_v45 = vmul.f32 0.2, %v2095_v23  ;;  %v4978_v32 = vld [vmem:[%s6453_s1 + $0x1f4] ss:$8 sps:$4 sm:$0xff]   ;;  %v864_v63 = vpop.permute.xlu0 %863 }
 0x138   : > { %v3086_v37 = vmax.f32 %v2411_v61, %v2830_v16  ;;  %v2831_v24 = vmul.f32 0.2, %v2415_v28  ;;  %v2098_v4 = vpop.f32.mrf.mxu0  ;;  %v2418_v18 = vpop.f32.mrf.mxu1 }
 0x139   : > { %v4551_v17 = vpack.c.bf16 %v2958_v38, %v2957_v54  ;;  %v2704_v22 = vmul.f32 0.2, %v2097_v46  ;;  %v2832_v15 = vmul.f32 0.2, %v2417_v39  ;;  %v2099_v57 = vadd.f32 %v2098_v4, %v5588_v31 }
 0x13a   : > { %v4615_v0 = vpack.c.bf16 %v3086_v37, %v3085_v2  ;;  %v2959_v51 = vmax.f32 %v2095_v23, %v2703_v45  ;;  %v3087_v7 = vmax.f32 %v2415_v28, %v2831_v24  ;;  %v2419_v58 = vadd.f32 %v2418_v18, %v859_v8  ;;  %v2100_v40 = vpop.f32.mrf.mxu0  ;;  %v2420_v52 = vpop.f32.mrf.mxu1 }
 0x13b   : > { %3972 = vst [vmem:[%s6067_s28 + $0x48] sm:$0xff] %v4551_v17  ;;  %v2960_v3 = vmax.f32 %v2097_v46, %v2704_v22  ;;  %v3088_v27 = vmax.f32 %v2417_v39, %v2832_v15  ;;  %v2705_v11 = vmul.f32 0.2, %v2099_v57  ;;  %v2101_v61 = vadd.f32 %v2100_v40, %v5588_v31 }
 0x13c   : > { %4036 = vst [vmem:[%s6067_s28 + $0x248] sm:$0xff] %v4615_v0  ;;  %v2833_v21 = vmul.f32 0.2, %v2419_v58  ;;  %v2421_v34 = vadd.f32 %v2420_v52, %v859_v8  ;;  %v2104_v33 = vpop.f32.mrf.mxu0  ;;  %2343 = vmatmul.mubr.bf16.gmra.mxu0 %v4976_v20  ;;  %v2424_v19 = vpop.f32.mrf.mxu1  ;;  %2663 = vmatmul.mubr.bf16.gmra.mxu1 %v4977_v1  ;;  %v4982_v1 = vld [vmem:[%s6453_s1 + $0x1f0] ss:$8 sps:$4 sm:$0xff]  }
 0x13d   : > { %v4552_v10 = vpack.c.bf16 %v2960_v3, %v2959_v51  ;;  %v4616_v16 = vpack.c.bf16 %v3088_v27, %v3087_v7  ;;  %v2706_v23 = vmul.f32 0.2, %v2101_v61  ;;  %4376 = vmatprep.mubr.msk.bf16.mxu0 %vm1817_vm0, %v4978_v32  ;;  %4408 = vmatprep.mubr.msk.bf16.mxu1 %vm1817_vm0, %v4980_v53  ;;  %v2105_v31 = vadd.f32 %v2104_v33, %v5602_v36  ;;  %v4983_v32 = vld [vmem:[%s6453_s1 + $0x3f0] ss:$8 sps:$4 sm:$0xff]   ;;  %v869_v8 = vpop.permute.xlu1 %868  ;;  %v874_v33 = vpop.permute.xlu0 %873 }
 0x13e   : > { %v2834_v28 = vmul.f32 0.2, %v2421_v34  ;;  %v2425_v9 = vadd.f32 %v2424_v19, %v864_v63  ;;  %v2106_v12 = vpop.f32.mrf.mxu0  ;;  %v2426_v54 = vpop.f32.mrf.mxu1  ;;  %v2961_v38 = vmax.f32 %v2099_v57, %v2705_v11  ;;  %v3089_v2 = vmax.f32 %v2419_v58, %v2833_v21 }
 0x13f   : > { %3973 = vst [vmem:[%s6067_s28 + $0x50] sm:$0xff] %v4552_v10  ;;  %4037 = vst [vmem:[%s6067_s28 + $0x250] sm:$0xff] %v4616_v16  ;;  %v2962_v46 = vmax.f32 %v2101_v61, %v2706_v23  ;;  %v2107_v39 = vadd.f32 %v2106_v12, %v5602_v36  ;;  %v2427_v20 = vadd.f32 %v2426_v54, %v864_v63  ;;  %v2707_v45 = vmul.f32 0.2, %v2105_v31 }
 0x140   : > { %v3090_v37 = vmax.f32 %v2421_v34, %v2834_v28  ;;  %v2835_v24 = vmul.f32 0.2, %v2425_v9  ;;  %v2108_v4 = vpop.f32.mrf.mxu0  ;;  %v2428_v18 = vpop.f32.mrf.mxu1 }
 0x141   : > { %v4553_v17 = vpack.c.bf16 %v2962_v46, %v2961_v38  ;;  %v2708_v36 = vmul.f32 0.2, %v2107_v39  ;;  %v2836_v22 = vmul.f32 0.2, %v2427_v20  ;;  %v2109_v15 = vadd.f32 %v2108_v4, %v5600_v35 }
 0x142   : > { %v4617_v57 = vpack.c.bf16 %v3090_v37, %v3089_v2  ;;  %v2963_v53 = vmax.f32 %v2105_v31, %v2707_v45  ;;  %v3091_v0 = vmax.f32 %v2425_v9, %v2835_v24  ;;  %v2429_v51 = vadd.f32 %v2428_v18, %v869_v8  ;;  %v2110_v7 = vpop.f32.mrf.mxu0  ;;  %v2430_v58 = vpop.f32.mrf.mxu1 }
 0x143   : > { %3974 = vst [vmem:[%s6067_s28 + $0x58] sm:$0xff] %v4553_v17  ;;  %v2964_v40 = vmax.f32 %v2107_v39, %v2708_v36  ;;  %v3092_v52 = vmax.f32 %v2427_v20, %v2836_v22  ;;  %v2709_v3 = vmul.f32 0.2, %v2109_v15  ;;  %v2111_v27 = vadd.f32 %v2110_v7, %v5600_v35  ;;  %v879_v45 = vpop.permute.xlu1 %878 }
 0x144   : > { %4038 = vst [vmem:[%s6067_s28 + $0x258] sm:$0xff] %v4617_v57  ;;  %v2837_v11 = vmul.f32 0.2, %v2429_v51  ;;  %v2431_v61 = vadd.f32 %v2430_v58, %v869_v8  ;;  %v2114_v21 = vpop.f32.mrf.mxu0  ;;  %2353 = vmatmul.mubr.bf16.gmra.mxu0 %v4982_v1  ;;  %v2434_v34 = vpop.f32.mrf.mxu1  ;;  %2673 = vmatmul.mubr.bf16.gmra.mxu1 %v4983_v32 }
 0x145   : > { %v4554_v19 = vpack.c.bf16 %v2964_v40, %v2963_v53  ;;  %v4618_v63 = vpack.c.bf16 %v3092_v52, %v3091_v0  ;;  %v2710_v10 = vmul.f32 0.2, %v2111_v27  ;;  %v2115_v23 = vadd.f32 %v2114_v21, %v5624_v44 }
 0x146   : > { %v2838_v16 = vmul.f32 0.2, %v2431_v61  ;;  %v2435_v28 = vadd.f32 %v2434_v34, %v874_v33  ;;  %v2116_v31 = vpop.f32.mrf.mxu0  ;;  %v2436_v9 = vpop.f32.mrf.mxu1  ;;  %v2965_v35 = vmax.f32 %v2109_v15, %v2709_v3  ;;  %v3093_v46 = vmax.f32 %v2429_v51, %v2837_v11 }
 0x147   : > { %3975 = vst [vmem:[%s6067_s28 + $0x60] sm:$0xff] %v4554_v19  ;;  %4039 = vst [vmem:[%s6067_s28 + $0x260] sm:$0xff] %v4618_v63  ;;  %v2966_v12 = vmax.f32 %v2111_v27, %v2710_v10  ;;  %v2117_v54 = vadd.f32 %v2116_v31, %v5624_v44  ;;  %v2437_v38 = vadd.f32 %v2436_v9, %v874_v33  ;;  %v2711_v20 = vmul.f32 0.2, %v2115_v23  ;;  %v884_v3 = vpop.permute.xlu0 %883 }
 0x148   : > { %v3094_v39 = vmax.f32 %v2431_v61, %v2838_v16  ;;  %v2839_v1 = vmul.f32 0.2, %v2435_v28  ;;  %v2118_v2 = vpop.f32.mrf.mxu0  ;;  %v2438_v37 = vpop.f32.mrf.mxu1 }
 0x149   : > { %v4555_v24 = vpack.c.bf16 %v2966_v12, %v2965_v35  ;;  %v2712_v4 = vmul.f32 0.2, %v2117_v54  ;;  %v2840_v18 = vmul.f32 0.2, %v2437_v38  ;;  %v2119_v32 = vadd.f32 %v2118_v2, %v5622_v43 }
 0x14a   : > { %v4619_v8 = vpack.c.bf16 %v3094_v39, %v3093_v46  ;;  %v2967_v17 = vmax.f32 %v2115_v23, %v2711_v20  ;;  %v3095_v36 = vmax.f32 %v2435_v28, %v2839_v1  ;;  %v2439_v22 = vadd.f32 %v2438_v37, %v879_v45  ;;  %v2120_v44 = vpop.f32.mrf.mxu0  ;;  %v2440_v15 = vpop.f32.mrf.mxu1 }
 0x14b   : > { %3976 = vst [vmem:[%s6067_s28 + $0x68] sm:$0xff] %v4555_v24  ;;  %v2968_v57 = vmax.f32 %v2117_v54, %v2712_v4  ;;  %v3096_v53 = vmax.f32 %v2437_v38, %v2840_v18  ;;  %v2713_v0 = vmul.f32 0.2, %v2119_v32  ;;  %v2121_v51 = vadd.f32 %v2120_v44, %v5622_v43  ;;  %v889_v38 = vpop.permute.xlu1 %888 }
 0x14c   : > { %4040 = vst [vmem:[%s6067_s28 + $0x268] sm:$0xff] %v4619_v8  ;;  %v2841_v7 = vmul.f32 0.2, %v2439_v22  ;;  %v2441_v58 = vadd.f32 %v2440_v15, %v879_v45  ;;  %v2124_v40 = vpop.f32.mrf.mxu0  ;;  %v2444_v52 = vpop.f32.mrf.mxu1 }
 0x14d   : > { %v4556_v27 = vpack.c.bf16 %v2968_v57, %v2967_v17  ;;  %v4620_v11 = vpack.c.bf16 %v3096_v53, %v3095_v36  ;;  %v2714_v61 = vmul.f32 0.2, %v2121_v51  ;;  %v2125_v34 = vadd.f32 %v2124_v40, %v5636_v48  ;;  %v894_v57 = vpop.permute.xlu0 %893 }
 0x14e   : > { %v2842_v21 = vmul.f32 0.2, %v2441_v58  ;;  %v2445_v33 = vadd.f32 %v2444_v52, %v884_v3  ;;  %v2126_v19 = vpop.f32.mrf.mxu0  ;;  %v2446_v63 = vpop.f32.mrf.mxu1  ;;  %v2969_v10 = vmax.f32 %v2119_v32, %v2713_v0  ;;  %v3097_v28 = vmax.f32 %v2439_v22, %v2841_v7 }
 0x14f   : > { %3977 = vst [vmem:[%s6067_s28 + $0x70] sm:$0xff] %v4556_v27  ;;  %4041 = vst [vmem:[%s6067_s28 + $0x270] sm:$0xff] %v4620_v11  ;;  %v2970_v43 = vmax.f32 %v2121_v51, %v2714_v61  ;;  %v2127_v16 = vadd.f32 %v2126_v19, %v5636_v48  ;;  %v2447_v23 = vadd.f32 %v2446_v63, %v884_v3  ;;  %v2715_v9 = vmul.f32 0.2, %v2125_v34 }
 0x150   : > { %v3098_v31 = vmax.f32 %v2441_v58, %v2842_v21  ;;  %v2843_v35 = vmul.f32 0.2, %v2445_v33  ;;  %v2128_v12 = vpop.f32.mrf.mxu0  ;;  %v2448_v54 = vpop.f32.mrf.mxu1 }
 0x151   : > { %v4557_v46 = vpack.c.bf16 %v2970_v43, %v2969_v10  ;;  %v2716_v39 = vmul.f32 0.2, %v2127_v16  ;;  %v2844_v20 = vmul.f32 0.2, %v2447_v23  ;;  %v2129_v1 = vadd.f32 %v2128_v12, %v5634_v47  ;;  %v899_v43 = vpop.permute.xlu1 %898 }
 0x152   : > { %v4621_v2 = vpack.c.bf16 %v3098_v31, %v3097_v28  ;;  %v2971_v37 = vmax.f32 %v2125_v34, %v2715_v9  ;;  %v3099_v45 = vmax.f32 %v2445_v33, %v2843_v35  ;;  %v2449_v24 = vadd.f32 %v2448_v54, %v889_v38  ;;  %v2130_v48 = vpop.f32.mrf.mxu0  ;;  %v2450_v4 = vpop.f32.mrf.mxu1 }
 0x153   : > { %3978 = vst [vmem:[%s6067_s28 + $0x78] sm:$0xff] %v4557_v46  ;;  %v2972_v18 = vmax.f32 %v2127_v16, %v2716_v39  ;;  %v3100_v32 = vmax.f32 %v2447_v23, %v2844_v20  ;;  %v2717_v8 = vmul.f32 0.2, %v2129_v1  ;;  %v2131_v17 = vadd.f32 %v2130_v48, %v5634_v47  ;;  %v904_v48 = vpop.permute.xlu0 %903 }
 0x154   : > { %4042 = vst [vmem:[%s6067_s28 + $0x278] sm:$0xff] %v4621_v2  ;;  %v2845_v36 = vmul.f32 0.2, %v2449_v24  ;;  %v2451_v22 = vadd.f32 %v2450_v4, %v889_v38  ;;  %v2134_v44 = vpop.f32.mrf.mxu0  ;;  %v2454_v15 = vpop.f32.mrf.mxu1 }
 0x155   : > { %v4558_v53 = vpack.c.bf16 %v2972_v18, %v2971_v37  ;;  %v4622_v0 = vpack.c.bf16 %v3100_v32, %v3099_v45  ;;  %v2718_v51 = vmul.f32 0.2, %v2131_v17  ;;  %v2135_v58 = vadd.f32 %v2134_v44, %v5658_v56 }
 0x156   : > { %v2846_v7 = vmul.f32 0.2, %v2451_v22  ;;  %v2455_v40 = vadd.f32 %v2454_v15, %v894_v57  ;;  %v2136_v52 = vpop.f32.mrf.mxu0  ;;  %v2456_v3 = vpop.f32.mrf.mxu1  ;;  %v2973_v27 = vmax.f32 %v2129_v1, %v2717_v8  ;;  %v3101_v21 = vmax.f32 %v2449_v24, %v2845_v36 }
 0x157   : > { %3979 = vst [vmem:[%s6067_s28 + $0x80] sm:$0xff] %v4558_v53  ;;  %4043 = vst [vmem:[%s6067_s28 + $0x280] sm:$0xff] %v4622_v0  ;;  %v2974_v47 = vmax.f32 %v2131_v17, %v2718_v51  ;;  %v2137_v11 = vadd.f32 %v2136_v52, %v5658_v56  ;;  %v2457_v61 = vadd.f32 %v2456_v3, %v894_v57  ;;  %v2719_v33 = vmul.f32 0.2, %v2135_v58  ;;  %v909_v3 = vpop.permute.xlu1 %908 }
 0x158   : > { %v3102_v34 = vmax.f32 %v2451_v22, %v2846_v7  ;;  %v2847_v19 = vmul.f32 0.2, %v2455_v40  ;;  %v2138_v63 = vpop.f32.mrf.mxu0  ;;  %v2458_v10 = vpop.f32.mrf.mxu1 }
 0x159   : > { %v4559_v16 = vpack.c.bf16 %v2974_v47, %v2973_v27  ;;  %v2720_v23 = vmul.f32 0.2, %v2137_v11  ;;  %v2848_v28 = vmul.f32 0.2, %v2457_v61  ;;  %v2139_v31 = vadd.f32 %v2138_v63, %v5656_v55 }
 0x15a   : > { %v4623_v9 = vpack.c.bf16 %v3102_v34, %v3101_v21  ;;  %v2975_v35 = vmax.f32 %v2135_v58, %v2719_v33  ;;  %v3103_v12 = vmax.f32 %v2455_v40, %v2847_v19  ;;  %v2459_v54 = vadd.f32 %v2458_v10, %v899_v43  ;;  %v2140_v56 = vpop.f32.mrf.mxu0  ;;  %v2460_v38 = vpop.f32.mrf.mxu1 }
 0x15b   : > { %3980 = vst [vmem:[%s6067_s28 + $0x88] sm:$0xff] %v4559_v16  ;;  %v2976_v46 = vmax.f32 %v2137_v11, %v2720_v23  ;;  %v3104_v39 = vmax.f32 %v2457_v61, %v2848_v28  ;;  %v2721_v20 = vmul.f32 0.2, %v2139_v31  ;;  %v2141_v1 = vadd.f32 %v2140_v56, %v5656_v55 }
 0x15c   : > { %4044 = vst [vmem:[%s6067_s28 + $0x288] sm:$0xff] %v4623_v9  ;;  %v2849_v2 = vmul.f32 0.2, %v2459_v54  ;;  %v2461_v37 = vadd.f32 %v2460_v38, %v899_v43  ;;  %v2144_v45 = vpop.f32.mrf.mxu0  ;;  %v2464_v24 = vpop.f32.mrf.mxu1 }
 0x15d   : > { %v4560_v4 = vpack.c.bf16 %v2976_v46, %v2975_v35  ;;  %v4624_v18 = vpack.c.bf16 %v3104_v39, %v3103_v12  ;;  %v2722_v32 = vmul.f32 0.2, %v2141_v1  ;;  %v2145_v17 = vadd.f32 %v2144_v45, %v5670_v60  ;;  %v914_v12 = vpop.permute.xlu0 %913 }
 0x15e   : > { %v2850_v8 = vmul.f32 0.2, %v2461_v37  ;;  %v2465_v36 = vadd.f32 %v2464_v24, %v904_v48  ;;  %v2146_v22 = vpop.f32.mrf.mxu0  ;;  %v2466_v44 = vpop.f32.mrf.mxu1  ;;  %v2977_v15 = vmax.f32 %v2139_v31, %v2721_v20  ;;  %v3105_v0 = vmax.f32 %v2459_v54, %v2849_v2 }
 0x15f   : > { %3981 = vst [vmem:[%s6067_s28 + $0x90] sm:$0xff] %v4560_v4  ;;  %4045 = vst [vmem:[%s6067_s28 + $0x290] sm:$0xff] %v4624_v18  ;;  %v2978_v55 = vmax.f32 %v2141_v1, %v2722_v32  ;;  %v2147_v57 = vadd.f32 %v2146_v22, %v5670_v60  ;;  %v2467_v53 = vadd.f32 %v2466_v44, %v904_v48  ;;  %v2723_v7 = vmul.f32 0.2, %v2145_v17 }
 0x160   : > { %v3106_v51 = vmax.f32 %v2461_v37, %v2850_v8  ;;  %v2851_v58 = vmul.f32 0.2, %v2465_v36  ;;  %v2148_v40 = vpop.f32.mrf.mxu0  ;;  %v2468_v52 = vpop.f32.mrf.mxu1 }
 0x161   : > { %v4561_v27 = vpack.c.bf16 %v2978_v55, %v2977_v15  ;;  %v2724_v47 = vmul.f32 0.2, %v2147_v57  ;;  %v2852_v11 = vmul.f32 0.2, %v2467_v53  ;;  %v2149_v61 = vadd.f32 %v2148_v40, %v5668_v59 }
 0x162   : > { %v4625_v21 = vpack.c.bf16 %v3106_v51, %v3105_v0  ;;  %v2979_v34 = vmax.f32 %v2145_v17, %v2723_v7  ;;  %v3107_v33 = vmax.f32 %v2465_v36, %v2851_v58  ;;  %v2469_v19 = vadd.f32 %v2468_v52, %v909_v3  ;;  %v2150_v60 = vpop.f32.mrf.mxu0  ;;  %v2470_v63 = vpop.f32.mrf.mxu1 }
 0x163   : > { %3982 = vst [vmem:[%s6067_s28 + $0x98] sm:$0xff] %v4561_v27  ;;  %v2980_v10 = vmax.f32 %v2147_v57, %v2724_v47  ;;  %v3108_v43 = vmax.f32 %v2467_v53, %v2852_v11  ;;  %v2725_v16 = vmul.f32 0.2, %v2149_v61  ;;  %v2151_v23 = vadd.f32 %v2150_v60, %v5668_v59  ;;  %v919_v36 = vpop.permute.xlu1 %918 }
 0x164   : > { %4046 = vst [vmem:[%s6067_s28 + $0x298] sm:$0xff] %v4625_v21  ;;  %v2853_v28 = vmul.f32 0.2, %v2469_v19  ;;  %v2471_v31 = vadd.f32 %v2470_v63, %v909_v3  ;;  %v2154_v9 = vpop.f32.mrf.mxu0  ;;  %v2474_v35 = vpop.f32.mrf.mxu1 }
 0x165   : > { %v4562_v54 = vpack.c.bf16 %v2980_v10, %v2979_v34  ;;  %v4626_v56 = vpack.c.bf16 %v3108_v43, %v3107_v33  ;;  %v2726_v38 = vmul.f32 0.2, %v2151_v23  ;;  %v2155_v39 = vadd.f32 %v2154_v9, %v5692_v6  ;;  %v924_v21 = vpop.permute.xlu0 %923 }
 0x166   : > { %v2854_v46 = vmul.f32 0.2, %v2471_v31  ;;  %v2475_v20 = vadd.f32 %v2474_v35, %v914_v12  ;;  %v2156_v1 = vpop.f32.mrf.mxu0  ;;  %v2476_v2 = vpop.f32.mrf.mxu1  ;;  %v2981_v37 = vmax.f32 %v2149_v61, %v2725_v16  ;;  %v3109_v48 = vmax.f32 %v2469_v19, %v2853_v28 }
 0x167   : > { %3983 = vst [vmem:[%s6067_s28 + $0xa0] sm:$0xff] %v4562_v54  ;;  %4047 = vst [vmem:[%s6067_s28 + $0x2a0] sm:$0xff] %v4626_v56  ;;  %v2982_v59 = vmax.f32 %v2151_v23, %v2726_v38  ;;  %v2157_v45 = vadd.f32 %v2156_v1, %v5692_v6  ;;  %v2477_v24 = vadd.f32 %v2476_v2, %v914_v12  ;;  %v2727_v18 = vmul.f32 0.2, %v2155_v39 }
 0x168   : > { %v3110_v4 = vmax.f32 %v2471_v31, %v2854_v46  ;;  %v2855_v32 = vmul.f32 0.2, %v2475_v20  ;;  %v2158_v8 = vpop.f32.mrf.mxu0  ;;  %v2478_v17 = vpop.f32.mrf.mxu1 }
 0x169   : > { %v4563_v22 = vpack.c.bf16 %v2982_v59, %v2981_v37  ;;  %v2728_v44 = vmul.f32 0.2, %v2157_v45  ;;  %v2856_v15 = vmul.f32 0.2, %v2477_v24  ;;  %v2159_v55 = vadd.f32 %v2158_v8, %v5690_v5  ;;  %v929_v46 = vpop.permute.xlu1 %928 }
 0x16a   : > { %v4627_v57 = vpack.c.bf16 %v3110_v4, %v3109_v48  ;;  %v2983_v53 = vmax.f32 %v2155_v39, %v2727_v18  ;;  %v3111_v0 = vmax.f32 %v2475_v20, %v2855_v32  ;;  %v2479_v51 = vadd.f32 %v2478_v17, %v919_v36  ;;  %v2160_v6 = vpop.f32.mrf.mxu0  ;;  %v2480_v7 = vpop.f32.mrf.mxu1 }
 0x16b   : > { %3984 = vst [vmem:[%s6067_s28 + $0xa8] sm:$0xff] %v4563_v22  ;;  %v2984_v58 = vmax.f32 %v2157_v45, %v2728_v44  ;;  %v3112_v40 = vmax.f32 %v2477_v24, %v2856_v15  ;;  %v2729_v52 = vmul.f32 0.2, %v2159_v55  ;;  %v2161_v3 = vadd.f32 %v2160_v6, %v5690_v5  ;;  %v934_v15 = vpop.permute.xlu0 %933 }
 0x16c   : > { %4048 = vst [vmem:[%s6067_s28 + $0x2a8] sm:$0xff] %v4627_v57  ;;  %v2857_v27 = vmul.f32 0.2, %v2479_v51  ;;  %v2481_v47 = vadd.f32 %v2480_v7, %v919_v36  ;;  %v2164_v11 = vpop.f32.mrf.mxu0  ;;  %v2484_v61 = vpop.f32.mrf.mxu1 }
 0x16d   : > { %v4564_v34 = vpack.c.bf16 %v2984_v58, %v2983_v53  ;;  %v4628_v33 = vpack.c.bf16 %v3112_v40, %v3111_v0  ;;  %v2730_v19 = vmul.f32 0.2, %v2161_v3  ;;  %v2165_v63 = vadd.f32 %v2164_v11, %v5704_v14 }
 0x16e   : > { %v2858_v60 = vmul.f32 0.2, %v2481_v47  ;;  %v2485_v10 = vadd.f32 %v2484_v61, %v924_v21  ;;  %v2166_v43 = vpop.f32.mrf.mxu0  ;;  %v2486_v16 = vpop.f32.mrf.mxu1  ;;  %v2985_v23 = vmax.f32 %v2159_v55, %v2729_v52  ;;  %v3113_v9 = vmax.f32 %v2479_v51, %v2857_v27 }
 0x16f   : > { %3985 = vst [vmem:[%s6067_s28 + $0xb0] sm:$0xff] %v4564_v34  ;;  %4049 = vst [vmem:[%s6067_s28 + $0x2b0] sm:$0xff] %v4628_v33  ;;  %v2986_v5 = vmax.f32 %v2161_v3, %v2730_v19  ;;  %v2167_v28 = vadd.f32 %v2166_v43, %v5704_v14  ;;  %v2487_v31 = vadd.f32 %v2486_v16, %v924_v21  ;;  %v2731_v12 = vmul.f32 0.2, %v2165_v63  ;;  %v939_v33 = vpop.permute.xlu1 %938 }
 0x170   : > { %v3114_v35 = vmax.f32 %v2481_v47, %v2858_v60  ;;  %v2859_v54 = vmul.f32 0.2, %v2485_v10  ;;  %v2168_v56 = vpop.f32.mrf.mxu0  ;;  %v2488_v38 = vpop.f32.mrf.mxu1 }
 0x171   : > { %v4565_v39 = vpack.c.bf16 %v2986_v5, %v2985_v23  ;;  %v2732_v20 = vmul.f32 0.2, %v2167_v28  ;;  %v2860_v1 = vmul.f32 0.2, %v2487_v31  ;;  %v2169_v2 = vadd.f32 %v2168_v56, %v5702_v13 }
 0x172   : > { %v4629_v37 = vpack.c.bf16 %v3114_v35, %v3113_v9  ;;  %v2987_v59 = vmax.f32 %v2165_v63, %v2731_v12  ;;  %v3115_v45 = vmax.f32 %v2485_v10, %v2859_v54  ;;  %v2489_v24 = vadd.f32 %v2488_v38, %v929_v46  ;;  %v2170_v14 = vpop.f32.mrf.mxu0  ;;  %v2490_v48 = vpop.f32.mrf.mxu1 }
 0x173   : > { %3986 = vst [vmem:[%s6067_s28 + $0xb8] sm:$0xff] %v4565_v39  ;;  %v2988_v4 = vmax.f32 %v2167_v28, %v2732_v20  ;;  %v3116_v18 = vmax.f32 %v2487_v31, %v2860_v1  ;;  %v2733_v32 = vmul.f32 0.2, %v2169_v2  ;;  %v2171_v8 = vadd.f32 %v2170_v14, %v5702_v13  ;;  %v944_v39 = vpop.permute.xlu0 %943 }
 0x174   : > { %4050 = vst [vmem:[%s6067_s28 + $0x2b8] sm:$0xff] %v4629_v37  ;;  %v2861_v17 = vmul.f32 0.2, %v2489_v24  ;;  %v2491_v36 = vadd.f32 %v2490_v48, %v929_v46  ;;  %v2174_v22 = vpop.f32.mrf.mxu0  ;;  %v2494_v44 = vpop.f32.mrf.mxu1 }
 0x175   : > { %v4566_v55 = vpack.c.bf16 %v2988_v4, %v2987_v59  ;;  %v4630_v57 = vpack.c.bf16 %v3116_v18, %v3115_v45  ;;  %v2734_v53 = vmul.f32 0.2, %v2171_v8  ;;  %v2175_v51 = vadd.f32 %v2174_v22, %v5726_v26 }
 0x176   : > { %v2862_v0 = vmul.f32 0.2, %v2491_v36  ;;  %v2495_v6 = vadd.f32 %v2494_v44, %v934_v15  ;;  %v2176_v7 = vpop.f32.mrf.mxu0  ;;  %v2496_v58 = vpop.f32.mrf.mxu1  ;;  %v2989_v40 = vmax.f32 %v2169_v2, %v2733_v32  ;;  %v3117_v27 = vmax.f32 %v2489_v24, %v2861_v17 }
 0x177   : > { %3987 = vst [vmem:[%s6067_s28 + $0xc0] sm:$0xff] %v4566_v55  ;;  %4051 = vst [vmem:[%s6067_s28 + $0x2c0] sm:$0xff] %v4630_v57  ;;  %v2990_v13 = vmax.f32 %v2171_v8, %v2734_v53  ;;  %v2177_v52 = vadd.f32 %v2176_v7, %v5726_v26  ;;  %v2497_v3 = vadd.f32 %v2496_v58, %v934_v15  ;;  %v2735_v11 = vmul.f32 0.2, %v2175_v51  ;;  %v949_v15 = vpop.permute.xlu1 %948 }
 0x178   : > { %v3118_v47 = vmax.f32 %v2491_v36, %v2862_v0  ;;  %v2863_v61 = vmul.f32 0.2, %v2495_v6  ;;  %v2178_v21 = vpop.f32.mrf.mxu0  ;;  %v2498_v34 = vpop.f32.mrf.mxu1 }
 0x179   : > { %v4567_v19 = vpack.c.bf16 %v2990_v13, %v2989_v40  ;;  %v2736_v60 = vmul.f32 0.2, %v2177_v52  ;;  %v2864_v63 = vmul.f32 0.2, %v2497_v3  ;;  %v2179_v10 = vadd.f32 %v2178_v21, %v5724_v25 }
 0x17a   : > { %v4631_v43 = vpack.c.bf16 %v3118_v47, %v3117_v27  ;;  %v2991_v16 = vmax.f32 %v2175_v51, %v2735_v11  ;;  %v3119_v23 = vmax.f32 %v2495_v6, %v2863_v61  ;;  %v2499_v5 = vadd.f32 %v2498_v34, %v939_v33  ;;  %v2180_v26 = vpop.f32.mrf.mxu0  ;;  %v2500_v28 = vpop.f32.mrf.mxu1 }
 0x17b   : > { %3988 = vst [vmem:[%s6067_s28 + $0xc8] sm:$0xff] %v4567_v19  ;;  %v2992_v31 = vmax.f32 %v2177_v52, %v2736_v60  ;;  %v3120_v9 = vmax.f32 %v2497_v3, %v2864_v63  ;;  %v2737_v35 = vmul.f32 0.2, %v2179_v10  ;;  %v2181_v12 = vadd.f32 %v2180_v26, %v5724_v25  ;;  %v954_v34 = vpop.permute.xlu0 %953 }
 0x17c   : > { %4052 = vst [vmem:[%s6067_s28 + $0x2c8] sm:$0xff] %v4631_v43  ;;  %v2865_v54 = vmul.f32 0.2, %v2499_v5  ;;  %v2501_v56 = vadd.f32 %v2500_v28, %v939_v33  ;;  %v2184_v38 = vpop.f32.mrf.mxu0  ;;  %v2504_v46 = vpop.f32.mrf.mxu1 }
 0x17d   : > { %v4568_v20 = vpack.c.bf16 %v2992_v31, %v2991_v16  ;;  %v4632_v1 = vpack.c.bf16 %v3120_v9, %v3119_v23  ;;  %v2738_v2 = vmul.f32 0.2, %v2181_v12  ;;  %v2185_v59 = vadd.f32 %v2184_v38, %v5738_v30  ;;  %v959_v38 = vpop.permute.xlu1 %958 }
 0x17e   : > { %v2866_v37 = vmul.f32 0.2, %v2501_v56  ;;  %v2505_v45 = vadd.f32 %v2504_v46, %v944_v39  ;;  %v2186_v24 = vpop.f32.mrf.mxu0  ;;  %v2506_v14 = vpop.f32.mrf.mxu1  ;;  %v2993_v48 = vmax.f32 %v2179_v10, %v2737_v35  ;;  %v3121_v32 = vmax.f32 %v2499_v5, %v2865_v54 }
 0x17f   : > { %3989 = vst [vmem:[%s6067_s28 + $0xd0] sm:$0xff] %v4568_v20  ;;  %4053 = vst [vmem:[%s6067_s28 + $0x2d0] sm:$0xff] %v4632_v1  ;;  %v2994_v25 = vmax.f32 %v2181_v12, %v2738_v2  ;;  %v2187_v4 = vadd.f32 %v2186_v24, %v5738_v30  ;;  %v2507_v18 = vadd.f32 %v2506_v14, %v944_v39  ;;  %v2739_v17 = vmul.f32 0.2, %v2185_v59 }
 0x180   : > { %v3122_v8 = vmax.f32 %v2501_v56, %v2866_v37  ;;  %v2867_v36 = vmul.f32 0.2, %v2505_v45  ;;  %v2188_v22 = vpop.f32.mrf.mxu0  ;;  %v2508_v44 = vpop.f32.mrf.mxu1 }
 0x181   : > { %v4569_v55 = vpack.c.bf16 %v2994_v25, %v2993_v48  ;;  %v2740_v57 = vmul.f32 0.2, %v2187_v4  ;;  %v2868_v53 = vmul.f32 0.2, %v2507_v18  ;;  %v2189_v0 = vadd.f32 %v2188_v22, %v5736_v29 }
 0x182   : > { %v4633_v51 = vpack.c.bf16 %v3122_v8, %v3121_v32  ;;  %v2995_v6 = vmax.f32 %v2185_v59, %v2739_v17  ;;  %v3123_v7 = vmax.f32 %v2505_v45, %v2867_v36  ;;  %v2509_v58 = vadd.f32 %v2508_v44, %v949_v15  ;;  %v2190_v30 = vpop.f32.mrf.mxu0  ;;  %v2510_v40 = vpop.f32.mrf.mxu1 }
 0x183   : > { %3990 = vst [vmem:[%s6067_s28 + $0xd8] sm:$0xff] %v4569_v55  ;;  %v2996_v13 = vmax.f32 %v2187_v4, %v2740_v57  ;;  %v3124_v52 = vmax.f32 %v2507_v18, %v2868_v53  ;;  %v2741_v3 = vmul.f32 0.2, %v2189_v0  ;;  %v2191_v27 = vadd.f32 %v2190_v30, %v5736_v29  ;;  %v964_v36 = vpop.permute.xlu0 %963 }
 0x184   : > { %4054 = vst [vmem:[%s6067_s28 + $0x2d8] sm:$0xff] %v4633_v51  ;;  %v2869_v47 = vmul.f32 0.2, %v2509_v58  ;;  %v2511_v11 = vadd.f32 %v2510_v40, %v949_v15  ;;  %v2194_v61 = vpop.f32.mrf.mxu0  ;;  %v2514_v21 = vpop.f32.mrf.mxu1 }
 0x185   : > { %v4570_v33 = vpack.c.bf16 %v2996_v13, %v2995_v6  ;;  %v4634_v19 = vpack.c.bf16 %v3124_v52, %v3123_v7  ;;  %v2742_v60 = vmul.f32 0.2, %v2191_v27  ;;  %v2195_v10 = vadd.f32 %v2194_v61, %v5760_v42 }
 0x186   : > { %v2870_v63 = vmul.f32 0.2, %v2511_v11  ;;  %v2515_v43 = vadd.f32 %v2514_v21, %v954_v34  ;;  %v2196_v16 = vpop.f32.mrf.mxu0  ;;  %v2516_v23 = vpop.f32.mrf.mxu1  ;;  %v2997_v5 = vmax.f32 %v2189_v0, %v2741_v3  ;;  %v3125_v31 = vmax.f32 %v2509_v58, %v2869_v47 }
 0x187   : > { %3991 = vst [vmem:[%s6067_s28 + $0xe0] sm:$0xff] %v4570_v33  ;;  %4055 = vst [vmem:[%s6067_s28 + $0x2e0] sm:$0xff] %v4634_v19  ;;  %v2998_v29 = vmax.f32 %v2191_v27, %v2742_v60  ;;  %v2197_v26 = vadd.f32 %v2196_v16, %v5760_v42  ;;  %v2517_v28 = vadd.f32 %v2516_v23, %v954_v34  ;;  %v2743_v35 = vmul.f32 0.2, %v2195_v10  ;;  %v969_v47 = vpop.permute.xlu1 %968 }
 0x188   : > { %v3126_v9 = vmax.f32 %v2511_v11, %v2870_v63  ;;  %v2871_v12 = vmul.f32 0.2, %v2515_v43  ;;  %v2198_v54 = vpop.f32.mrf.mxu0  ;;  %v2518_v56 = vpop.f32.mrf.mxu1 }
 0x189   : > { %v4571_v46 = vpack.c.bf16 %v2998_v29, %v2997_v5  ;;  %v2744_v39 = vmul.f32 0.2, %v2197_v26  ;;  %v2872_v20 = vmul.f32 0.2, %v2517_v28  ;;  %v2199_v1 = vadd.f32 %v2198_v54, %v5758_v41 }
 0x18a   : > { %v4635_v2 = vpack.c.bf16 %v3126_v9, %v3125_v31  ;;  %v2999_v37 = vmax.f32 %v2195_v10, %v2743_v35  ;;  %v3127_v59 = vmax.f32 %v2515_v43, %v2871_v12  ;;  %v2519_v45 = vadd.f32 %v2518_v56, %v959_v38  ;;  %v2200_v42 = vpop.f32.mrf.mxu0  ;;  %v2520_v24 = vpop.f32.mrf.mxu1 }
 0x18b   : > { %3992 = vst [vmem:[%s6067_s28 + $0xe8] sm:$0xff] %v4571_v46  ;;  %v3000_v14 = vmax.f32 %v2197_v26, %v2744_v39  ;;  %v3128_v48 = vmax.f32 %v2517_v28, %v2872_v20  ;;  %v2745_v25 = vmul.f32 0.2, %v2199_v1  ;;  %v2201_v4 = vadd.f32 %v2200_v42, %v5758_v41  ;;  %v974_v9 = vpop.permute.xlu0 %973 }
 0x18c   : > { %4056 = vst [vmem:[%s6067_s28 + $0x2e8] sm:$0xff] %v4635_v2  ;;  %v2873_v18 = vmul.f32 0.2, %v2519_v45  ;;  %v2521_v32 = vadd.f32 %v2520_v24, %v959_v38  ;;  %v2204_v8 = vpop.f32.mrf.mxu0  ;;  %v2524_v17 = vpop.f32.mrf.mxu1 }
 0x18d   : > { %v4572_v22 = vpack.c.bf16 %v3000_v14, %v2999_v37  ;;  %v4636_v44 = vpack.c.bf16 %v3128_v48, %v3127_v59  ;;  %v2746_v15 = vmul.f32 0.2, %v2201_v4  ;;  %v2205_v57 = vadd.f32 %v2204_v8, %v5772_v50  ;;  %v6516_v8 = vld [vmem:[#allocation5_spill] sm:$0xff] }
 0x18e   : > { %v2874_v55 = vmul.f32 0.2, %v2521_v32  ;;  %v2525_v53 = vadd.f32 %v2524_v17, %v964_v36  ;;  %v2206_v0 = vpop.f32.mrf.mxu0  ;;  %v2526_v51 = vpop.f32.mrf.mxu1  ;;  %v3001_v6 = vmax.f32 %v2199_v1, %v2745_v25  ;;  %v3129_v30 = vmax.f32 %v2519_v45, %v2873_v18 }
 0x18f   : > { %3993 = vst [vmem:[%s6067_s28 + $0xf0] sm:$0xff] %v4572_v22  ;;  %4057 = vst [vmem:[%s6067_s28 + $0x2f0] sm:$0xff] %v4636_v44  ;;  %v3002_v41 = vmax.f32 %v2201_v4, %v2746_v15  ;;  %v2207_v7 = vadd.f32 %v2206_v0, %v5772_v50  ;;  %v2527_v58 = vadd.f32 %v2526_v51, %v964_v36  ;;  %v2747_v13 = vmul.f32 0.2, %v2205_v57  ;;  %v979_v25 = vpop.permute.xlu1 %978 }
 0x190   : > { %v3130_v40 = vmax.f32 %v2521_v32, %v2874_v55  ;;  %v2875_v52 = vmul.f32 0.2, %v2525_v53  ;;  %v2208_v3 = vpop.f32.mrf.mxu0  ;;  %v2528_v27 = vpop.f32.mrf.mxu1 }
 0x191   : > { %v4573_v11 = vpack.c.bf16 %v3002_v41, %v3001_v6  ;;  %v2748_v61 = vmul.f32 0.2, %v2207_v7  ;;  %v2876_v21 = vmul.f32 0.2, %v2527_v58  ;;  %v2209_v34 = vadd.f32 %v2208_v3, %v5770_v49 }
 0x192   : > { %v4637_v33 = vpack.c.bf16 %v3130_v40, %v3129_v30  ;;  %v3003_v19 = vmax.f32 %v2205_v57, %v2747_v13  ;;  %v3131_v60 = vmax.f32 %v2525_v53, %v2875_v52  ;;  %v2529_v63 = vadd.f32 %v2528_v27, %v969_v47  ;;  %v2210_v50 = vpop.f32.mrf.mxu0  ;;  %v2530_v10 = vpop.f32.mrf.mxu1  ;;  %v6517_v27 = vld [vmem:[#allocation7_spill] sm:$0xff] }
 0x193   : > { %3994 = vst [vmem:[%s6067_s28 + $0xf8] sm:$0xff] %v4573_v11  ;;  %v3004_v43 = vmax.f32 %v2207_v7, %v2748_v61  ;;  %v3132_v16 = vmax.f32 %v2527_v58, %v2876_v21  ;;  %v2749_v23 = vmul.f32 0.2, %v2209_v34  ;;  %v2211_v5 = vadd.f32 %v2210_v50, %v5770_v49  ;;  %v984_v30 = vpop.permute.xlu0 %983 }
 0x194   : > { %4058 = vst [vmem:[%s6067_s28 + $0x2f8] sm:$0xff] %v4637_v33  ;;  %v2877_v29 = vmul.f32 0.2, %v2529_v63  ;;  %v2531_v26 = vadd.f32 %v2530_v10, %v969_v47  ;;  %v2214_v28 = vpop.f32.mrf.mxu0  ;;  %v2534_v31 = vpop.f32.mrf.mxu1 }
 0x195   : > { %v4574_v35 = vpack.c.bf16 %v3004_v43, %v3003_v19  ;;  %v4638_v12 = vpack.c.bf16 %v3132_v16, %v3131_v60  ;;  %v2750_v54 = vmul.f32 0.2, %v2211_v5  ;;  %v2215_v38 = vadd.f32 %v2214_v28, %v5794_v62 }
 0x196   : > { %v2878_v56 = vmul.f32 0.2, %v2531_v26  ;;  %v2535_v46 = vadd.f32 %v2534_v31, %v974_v9  ;;  %v2216_v39 = vpop.f32.mrf.mxu0  ;;  %v2536_v20 = vpop.f32.mrf.mxu1  ;;  %v3005_v1 = vmax.f32 %v2209_v34, %v2749_v23  ;;  %v3133_v59 = vmax.f32 %v2529_v63, %v2877_v29  ;;  %v6518_v31 = vld [vmem:[#allocation6_spill] sm:$0xff] }
 0x197   : > { %3995 = vst [vmem:[%s6067_s28 + $0x100] sm:$0xff] %v4574_v35  ;;  %4059 = vst [vmem:[%s6067_s28 + $0x300] sm:$0xff] %v4638_v12  ;;  %v3006_v49 = vmax.f32 %v2211_v5, %v2750_v54  ;;  %v2217_v2 = vadd.f32 %v2216_v39, %v5794_v62  ;;  %v2537_v37 = vadd.f32 %v2536_v20, %v974_v9  ;;  %v2751_v42 = vmul.f32 0.2, %v2215_v38  ;;  %v989_v5 = vpop.permute.xlu1 %988 }
 0x198   : > { %v3134_v45 = vmax.f32 %v2531_v26, %v2878_v56  ;;  %v2879_v24 = vmul.f32 0.2, %v2535_v46  ;;  %v2218_v14 = vpop.f32.mrf.mxu0  ;;  %v2538_v48 = vpop.f32.mrf.mxu1 }
 0x199   : > { %v4575_v4 = vpack.c.bf16 %v3006_v49, %v3005_v1  ;;  %v2752_v18 = vmul.f32 0.2, %v2217_v2  ;;  %v2880_v32 = vmul.f32 0.2, %v2537_v37  ;;  %v2219_v17 = vadd.f32 %v2218_v14, %v6516_v8 }
 0x19a   : > { %v4639_v36 = vpack.c.bf16 %v3134_v45, %v3133_v59  ;;  %v3007_v22 = vmax.f32 %v2215_v38, %v2751_v42  ;;  %v3135_v44 = vmax.f32 %v2535_v46, %v2879_v24  ;;  %v2539_v15 = vadd.f32 %v2538_v48, %v979_v25  ;;  %v2220_v62 = vpop.f32.mrf.mxu0  ;;  %v2540_v55 = vpop.f32.mrf.mxu1 }
 0x19b   : > { %3996 = vst [vmem:[%s6067_s28 + $0x108] sm:$0xff] %v4575_v4  ;;  %v3008_v57 = vmax.f32 %v2217_v2, %v2752_v18  ;;  %v3136_v53 = vmax.f32 %v2537_v37, %v2880_v32  ;;  %v2753_v0 = vmul.f32 0.2, %v2219_v17  ;;  %v2221_v51 = vadd.f32 %v2220_v62, %v6516_v8  ;;  %v994_v42 = vpop.permute.xlu0 %993  ;;  %v6519_v4 = vld [vmem:[#allocation9_spill] sm:$0xff] }
 0x19c   : > { %4060 = vst [vmem:[%s6067_s28 + $0x308] sm:$0xff] %v4639_v36  ;;  %v2881_v6 = vmul.f32 0.2, %v2539_v15  ;;  %v2541_v41 = vadd.f32 %v2540_v55, %v979_v25  ;;  %v2224_v7 = vpop.f32.mrf.mxu0  ;;  %v2544_v58 = vpop.f32.mrf.mxu1 }
 0x19d   : > { %v4576_v40 = vpack.c.bf16 %v3008_v57, %v3007_v22  ;;  %v4640_v13 = vpack.c.bf16 %v3136_v53, %v3135_v44  ;;  %v2754_v52 = vmul.f32 0.2, %v2221_v51  ;;  %v2225_v47 = vadd.f32 %v2224_v7, %v6517_v27 }
 0x19e   : > { %v2882_v3 = vmul.f32 0.2, %v2541_v41  ;;  %v2545_v11 = vadd.f32 %v2544_v58, %v984_v30  ;;  %v2226_v61 = vpop.f32.mrf.mxu0  ;;  %v2546_v21 = vpop.f32.mrf.mxu1  ;;  %v3009_v34 = vmax.f32 %v2219_v17, %v2753_v0  ;;  %v3137_v63 = vmax.f32 %v2539_v15, %v2881_v6 }
 0x19f   : > { %3997 = vst [vmem:[%s6067_s28 + $0x110] sm:$0xff] %v4576_v40  ;;  %4061 = vst [vmem:[%s6067_s28 + $0x310] sm:$0xff] %v4640_v13  ;;  %v3010_v33 = vmax.f32 %v2221_v51, %v2754_v52  ;;  %v2227_v19 = vadd.f32 %v2226_v61, %v6517_v27  ;;  %v2547_v60 = vadd.f32 %v2546_v21, %v984_v30  ;;  %v2755_v10 = vmul.f32 0.2, %v2225_v47  ;;  %v999_v6 = vpop.permute.xlu1 %998  ;;  %v6520_v30 = vld [vmem:[#allocation8_spill] sm:$0xff] }
 0x1a0   : > { %v3138_v50 = vmax.f32 %v2541_v41, %v2882_v3  ;;  %v2883_v43 = vmul.f32 0.2, %v2545_v11  ;;  %v2228_v16 = vpop.f32.mrf.mxu0  ;;  %v2548_v23 = vpop.f32.mrf.mxu1 }
 0x1a1   : > { %v4577_v29 = vpack.c.bf16 %v3010_v33, %v3009_v34  ;;  %v2756_v26 = vmul.f32 0.2, %v2227_v19  ;;  %v2884_v28 = vmul.f32 0.2, %v2547_v60  ;;  %v2229_v9 = vadd.f32 %v2228_v16, %v6518_v31 }
 0x1a2   : > { %v4641_v35 = vpack.c.bf16 %v3138_v50, %v3137_v63  ;;  %v3011_v12 = vmax.f32 %v2225_v47, %v2755_v10  ;;  %v3139_v54 = vmax.f32 %v2545_v11, %v2883_v43  ;;  %v2549_v56 = vadd.f32 %v2548_v23, %v989_v5  ;;  %v2230_v38 = vpop.f32.mrf.mxu0  ;;  %v2550_v46 = vpop.f32.mrf.mxu1 }
 0x1a3   : > { %3998 = vst [vmem:[%s6067_s28 + $0x118] sm:$0xff] %v4577_v29  ;;  %v3012_v39 = vmax.f32 %v2227_v19, %v2756_v26  ;;  %v3140_v20 = vmax.f32 %v2547_v60, %v2884_v28  ;;  %v2757_v1 = vmul.f32 0.2, %v2229_v9  ;;  %v2231_v49 = vadd.f32 %v2230_v38, %v6518_v31  ;;  %v1004_v10 = vpop.permute.xlu0 %1003  ;;  %v6521_v29 = vld [vmem:[#allocation11_spill] sm:$0xff] }
 0x1a4   : > { %4062 = vst [vmem:[%s6067_s28 + $0x318] sm:$0xff] %v4641_v35  ;;  %v2885_v2 = vmul.f32 0.2, %v2549_v56  ;;  %v2551_v37 = vadd.f32 %v2550_v46, %v989_v5  ;;  %v2234_v59 = vpop.f32.mrf.mxu0  ;;  %v2554_v45 = vpop.f32.mrf.mxu1 }
 0x1a5   : > { %v4578_v24 = vpack.c.bf16 %v3012_v39, %v3011_v12  ;;  %v4642_v14 = vpack.c.bf16 %v3140_v20, %v3139_v54  ;;  %v2758_v48 = vmul.f32 0.2, %v2231_v49  ;;  %v2235_v18 = vadd.f32 %v2234_v59, %v6519_v4 }
 0x1a6   : > { %v2886_v25 = vmul.f32 0.2, %v2551_v37  ;;  %v2555_v32 = vadd.f32 %v2554_v45, %v994_v42  ;;  %v2236_v8 = vpop.f32.mrf.mxu0  ;;  %v2556_v17 = vpop.f32.mrf.mxu1  ;;  %v3013_v36 = vmax.f32 %v2229_v9, %v2757_v1  ;;  %v3141_v62 = vmax.f32 %v2549_v56, %v2885_v2 }
 0x1a7   : > { %3999 = vst [vmem:[%s6067_s28 + $0x120] sm:$0xff] %v4578_v24  ;;  %4063 = vst [vmem:[%s6067_s28 + $0x320] sm:$0xff] %v4642_v14  ;;  %v3014_v22 = vmax.f32 %v2231_v49, %v2758_v48  ;;  %v2237_v44 = vadd.f32 %v2236_v8, %v6519_v4  ;;  %v2557_v15 = vadd.f32 %v2556_v17, %v994_v42  ;;  %v2759_v57 = vmul.f32 0.2, %v2235_v18  ;;  %v1009_v2 = vpop.permute.xlu1 %1008  ;;  %v6522_v42 = vld [vmem:[#allocation10_spill] sm:$0xff] }
 0x1a8   : > { %v3142_v55 = vmax.f32 %v2551_v37, %v2886_v25  ;;  %v2887_v53 = vmul.f32 0.2, %v2555_v32  ;;  %v2238_v0 = vpop.f32.mrf.mxu0  ;;  %v2558_v51 = vpop.f32.mrf.mxu1 }
 0x1a9   : > { %v4579_v41 = vpack.c.bf16 %v3014_v22, %v3013_v36  ;;  %v2760_v7 = vmul.f32 0.2, %v2237_v44  ;;  %v2888_v58 = vmul.f32 0.2, %v2557_v15  ;;  %v2239_v40 = vadd.f32 %v2238_v0, %v6520_v30 }
 0x1aa   : > { %v4643_v13 = vpack.c.bf16 %v3142_v55, %v3141_v62  ;;  %v3015_v52 = vmax.f32 %v2235_v18, %v2759_v57  ;;  %v3143_v3 = vmax.f32 %v2555_v32, %v2887_v53  ;;  %v2559_v27 = vadd.f32 %v2558_v51, %v999_v6  ;;  %v2240_v47 = vpop.f32.mrf.mxu0  ;;  %v2560_v11 = vpop.f32.mrf.mxu1 }
 0x1ab   : > { %4000 = vst [vmem:[%s6067_s28 + $0x128] sm:$0xff] %v4579_v41  ;;  %v3016_v61 = vmax.f32 %v2237_v44, %v2760_v7  ;;  %v3144_v21 = vmax.f32 %v2557_v15, %v2888_v58  ;;  %v2761_v34 = vmul.f32 0.2, %v2239_v40  ;;  %v2241_v33 = vadd.f32 %v2240_v47, %v6520_v30  ;;  %v1014_v57 = vpop.permute.xlu0 %1013  ;;  %v6523_v41 = vld [vmem:[#allocation13_spill] sm:$0xff] }
 0x1ac   : > { %4064 = vst [vmem:[%s6067_s28 + $0x328] sm:$0xff] %v4643_v13  ;;  %v2889_v19 = vmul.f32 0.2, %v2559_v27  ;;  %v2561_v60 = vadd.f32 %v2560_v11, %v999_v6  ;;  %v2244_v63 = vpop.f32.mrf.mxu0  ;;  %v2564_v50 = vpop.f32.mrf.mxu1 }
 0x1ad   : > { %v4580_v43 = vpack.c.bf16 %v3016_v61, %v3015_v52  ;;  %v4644_v16 = vpack.c.bf16 %v3144_v21, %v3143_v3  ;;  %v2762_v23 = vmul.f32 0.2, %v2241_v33  ;;  %v2245_v26 = vadd.f32 %v2244_v63, %v6521_v29 }
 0x1ae   : > { %v2890_v5 = vmul.f32 0.2, %v2561_v60  ;;  %v2565_v28 = vadd.f32 %v2564_v50, %v1004_v10  ;;  %v2246_v31 = vpop.f32.mrf.mxu0  ;;  %v2566_v9 = vpop.f32.mrf.mxu1  ;;  %v3017_v35 = vmax.f32 %v2239_v40, %v2761_v34  ;;  %v3145_v38 = vmax.f32 %v2559_v27, %v2889_v19 }
 0x1af   : > { %4001 = vst [vmem:[%s6067_s28 + $0x130] sm:$0xff] %v4580_v43  ;;  %4065 = vst [vmem:[%s6067_s28 + $0x330] sm:$0xff] %v4644_v16  ;;  %v3018_v12 = vmax.f32 %v2241_v33, %v2762_v23  ;;  %v2247_v54 = vadd.f32 %v2246_v31, %v6521_v29  ;;  %v2567_v56 = vadd.f32 %v2566_v9, %v1004_v10  ;;  %v2763_v39 = vmul.f32 0.2, %v2245_v26  ;;  %v1019_v19 = vpop.permute.xlu1 %1018  ;;  %v6524_v10 = vld [vmem:[#allocation12_spill] sm:$0xff] }
 0x1b0   : > { %v3146_v46 = vmax.f32 %v2561_v60, %v2890_v5  ;;  %v2891_v20 = vmul.f32 0.2, %v2565_v28  ;;  %v2248_v1 = vpop.f32.mrf.mxu0  ;;  %v2568_v49 = vpop.f32.mrf.mxu1 }
 0x1b1   : > { %v4581_v37 = vpack.c.bf16 %v3018_v12, %v3017_v35  ;;  %v2764_v59 = vmul.f32 0.2, %v2247_v54  ;;  %v2892_v45 = vmul.f32 0.2, %v2567_v56  ;;  %v2249_v24 = vadd.f32 %v2248_v1, %v6522_v42 }
 0x1b2   : > { %v4645_v14 = vpack.c.bf16 %v3146_v46, %v3145_v38  ;;  %v3019_v48 = vmax.f32 %v2245_v26, %v2763_v39  ;;  %v3147_v25 = vmax.f32 %v2565_v28, %v2891_v20  ;;  %v2569_v4 = vadd.f32 %v2568_v49, %v1009_v2  ;;  %v2250_v18 = vpop.f32.mrf.mxu0  ;;  %v2570_v32 = vpop.f32.mrf.mxu1 }
 0x1b3   : > { %4002 = vst [vmem:[%s6067_s28 + $0x138] sm:$0xff] %v4581_v37  ;;  %v3020_v8 = vmax.f32 %v2247_v54, %v2764_v59  ;;  %v3148_v17 = vmax.f32 %v2567_v56, %v2892_v45  ;;  %v2765_v36 = vmul.f32 0.2, %v2249_v24  ;;  %v2251_v22 = vadd.f32 %v2250_v18, %v6522_v42  ;;  %v1024_v39 = vpop.permute.xlu0 %1023  ;;  %v6525_v37 = vld [vmem:[#allocation15_spill] sm:$0xff] }
 0x1b4   : > { %4066 = vst [vmem:[%s6067_s28 + $0x338] sm:$0xff] %v4645_v14  ;;  %v2893_v44 = vmul.f32 0.2, %v2569_v4  ;;  %v2571_v15 = vadd.f32 %v2570_v32, %v1009_v2  ;;  %v2254_v62 = vpop.f32.mrf.mxu0  ;;  %v2574_v55 = vpop.f32.mrf.mxu1 }
 0x1b5   : > { %v4582_v53 = vpack.c.bf16 %v3020_v8, %v3019_v48  ;;  %v4646_v0 = vpack.c.bf16 %v3148_v17, %v3147_v25  ;;  %v2766_v51 = vmul.f32 0.2, %v2251_v22  ;;  %v2255_v7 = vadd.f32 %v2254_v62, %v6523_v41 }
 0x1b6   : > { %v2894_v6 = vmul.f32 0.2, %v2571_v15  ;;  %v2575_v58 = vadd.f32 %v2574_v55, %v1014_v57  ;;  %v2256_v30 = vpop.f32.mrf.mxu0  ;;  %v2576_v40 = vpop.f32.mrf.mxu1  ;;  %v3021_v13 = vmax.f32 %v2249_v24, %v2765_v36  ;;  %v3149_v47 = vmax.f32 %v2569_v4, %v2893_v44 }
 0x1b7   : > { %4003 = vst [vmem:[%s6067_s28 + $0x140] sm:$0xff] %v4582_v53  ;;  %4067 = vst [vmem:[%s6067_s28 + $0x340] sm:$0xff] %v4646_v0  ;;  %v3022_v52 = vmax.f32 %v2251_v22, %v2766_v51  ;;  %v2257_v3 = vadd.f32 %v2256_v30, %v6523_v41  ;;  %v2577_v27 = vadd.f32 %v2576_v40, %v1014_v57  ;;  %v2767_v61 = vmul.f32 0.2, %v2255_v7  ;;  %v1029_v44 = vpop.permute.xlu1 %1028  ;;  %v6526_v57 = vld [vmem:[#allocation14_spill] sm:$0xff] }
 0x1b8   : > { %v3150_v11 = vmax.f32 %v2571_v15, %v2894_v6  ;;  %v2895_v21 = vmul.f32 0.2, %v2575_v58  ;;  %v2258_v34 = vpop.f32.mrf.mxu0  ;;  %v2578_v33 = vpop.f32.mrf.mxu1 }
 0x1b9   : > { %v4583_v60 = vpack.c.bf16 %v3022_v52, %v3021_v13  ;;  %v2768_v63 = vmul.f32 0.2, %v2257_v3  ;;  %v2896_v50 = vmul.f32 0.2, %v2577_v27  ;;  %v2259_v43 = vadd.f32 %v2258_v34, %v6524_v10 }
 0x1ba   : > { %v4647_v16 = vpack.c.bf16 %v3150_v11, %v3149_v47  ;;  %v3023_v23 = vmax.f32 %v2255_v7, %v2767_v61  ;;  %v3151_v5 = vmax.f32 %v2575_v58, %v2895_v21  ;;  %v2579_v29 = vadd.f32 %v2578_v33, %v1019_v19  ;;  %v2260_v26 = vpop.f32.mrf.mxu0  ;;  %v2580_v28 = vpop.f32.mrf.mxu1 }
 0x1bb   : > { %4004 = vst [vmem:[%s6067_s28 + $0x148] sm:$0xff] %v4583_v60  ;;  %v3024_v31 = vmax.f32 %v2257_v3, %v2768_v63  ;;  %v3152_v9 = vmax.f32 %v2577_v27, %v2896_v50  ;;  %v2769_v35 = vmul.f32 0.2, %v2259_v43  ;;  %v2261_v12 = vadd.f32 %v2260_v26, %v6524_v10  ;;  %v1034_v61 = vpop.permute.xlu0 %1033  ;;  %v6527_v60 = vld [vmem:[#allocation17_spill] sm:$0xff] }
 0x1bc   : > { %4068 = vst [vmem:[%s6067_s28 + $0x348] sm:$0xff] %v4647_v16  ;;  %v2897_v54 = vmul.f32 0.2, %v2579_v29  ;;  %v2581_v56 = vadd.f32 %v2580_v28, %v1019_v19  ;;  %v2264_v38 = vpop.f32.mrf.mxu0  ;;  %v2584_v46 = vpop.f32.mrf.mxu1 }
 0x1bd   : > { %v4584_v20 = vpack.c.bf16 %v3024_v31, %v3023_v23  ;;  %v4648_v1 = vpack.c.bf16 %v3152_v9, %v3151_v5  ;;  %v2770_v49 = vmul.f32 0.2, %v2261_v12  ;;  %v2265_v59 = vadd.f32 %v2264_v38, %v6525_v37 }
 0x1be   : > { %v2898_v2 = vmul.f32 0.2, %v2581_v56  ;;  %v2585_v45 = vadd.f32 %v2584_v46, %v1024_v39  ;;  %v2266_v42 = vpop.f32.mrf.mxu0  ;;  %v2586_v24 = vpop.f32.mrf.mxu1  ;;  %v3025_v14 = vmax.f32 %v2259_v43, %v2769_v35  ;;  %v3153_v18 = vmax.f32 %v2579_v29, %v2897_v54 }
 0x1bf   : > { %4005 = vst [vmem:[%s6067_s28 + $0x150] sm:$0xff] %v4584_v20  ;;  %4069 = vst [vmem:[%s6067_s28 + $0x350] sm:$0xff] %v4648_v1  ;;  %v3026_v48 = vmax.f32 %v2261_v12, %v2770_v49  ;;  %v2267_v25 = vadd.f32 %v2266_v42, %v6525_v37  ;;  %v2587_v4 = vadd.f32 %v2586_v24, %v1024_v39  ;;  %v2771_v8 = vmul.f32 0.2, %v2265_v59  ;;  %v1039_v54 = vpop.permute.xlu1 %1038  ;;  %v6528_v39 = vld [vmem:[#allocation16_spill] sm:$0xff] }
 0x1c0   : > { %v3154_v32 = vmax.f32 %v2581_v56, %v2898_v2  ;;  %v2899_v17 = vmul.f32 0.2, %v2585_v45  ;;  %v2268_v36 = vpop.f32.mrf.mxu0  ;;  %v2588_v22 = vpop.f32.mrf.mxu1 }
 0x1c1   : > { %v4585_v15 = vpack.c.bf16 %v3026_v48, %v3025_v14  ;;  %v2772_v62 = vmul.f32 0.2, %v2267_v25  ;;  %v2900_v55 = vmul.f32 0.2, %v2587_v4  ;;  %v2269_v53 = vadd.f32 %v2268_v36, %v6526_v57 }
 0x1c2   : > { %v4649_v0 = vpack.c.bf16 %v3154_v32, %v3153_v18  ;;  %v3027_v51 = vmax.f32 %v2265_v59, %v2771_v8  ;;  %v3155_v6 = vmax.f32 %v2585_v45, %v2899_v17  ;;  %v2589_v41 = vadd.f32 %v2588_v22, %v1029_v44  ;;  %v2270_v7 = vpop.f32.mrf.mxu0  ;;  %v2590_v58 = vpop.f32.mrf.mxu1 }
 0x1c3   : > { %4006 = vst [vmem:[%s6067_s28 + $0x158] sm:$0xff] %v4585_v15  ;;  %v3028_v30 = vmax.f32 %v2267_v25, %v2772_v62  ;;  %v3156_v40 = vmax.f32 %v2587_v4, %v2900_v55  ;;  %v2773_v13 = vmul.f32 0.2, %v2269_v53  ;;  %v2271_v52 = vadd.f32 %v2270_v7, %v6526_v57  ;;  %v1044_v8 = vpop.permute.xlu0 %1043  ;;  %v6529_v15 = vld [vmem:[#allocation19_spill] sm:$0xff] }
 0x1c4   : > { %4070 = vst [vmem:[%s6067_s28 + $0x358] sm:$0xff] %v4649_v0  ;;  %v2901_v3 = vmul.f32 0.2, %v2589_v41  ;;  %v2591_v27 = vadd.f32 %v2590_v58, %v1029_v44  ;;  %v2274_v47 = vpop.f32.mrf.mxu0  ;;  %v2594_v11 = vpop.f32.mrf.mxu1 }
 0x1c5   : > { %v4586_v21 = vpack.c.bf16 %v3028_v30, %v3027_v51  ;;  %v4650_v34 = vpack.c.bf16 %v3156_v40, %v3155_v6  ;;  %v2774_v33 = vmul.f32 0.2, %v2271_v52  ;;  %v2275_v63 = vadd.f32 %v2274_v47, %v6527_v60 }
 0x1c6   : > { %v2902_v19 = vmul.f32 0.2, %v2591_v27  ;;  %v2595_v50 = vadd.f32 %v2594_v11, %v1034_v61  ;;  %v2276_v10 = vpop.f32.mrf.mxu0  ;;  %v2596_v43 = vpop.f32.mrf.mxu1  ;;  %v3029_v16 = vmax.f32 %v2269_v53, %v2773_v13  ;;  %v3157_v26 = vmax.f32 %v2589_v41, %v2901_v3 }
 0x1c7   : > { %4007 = vst [vmem:[%s6067_s28 + $0x160] sm:$0xff] %v4586_v21  ;;  %4071 = vst [vmem:[%s6067_s28 + $0x360] sm:$0xff] %v4650_v34  ;;  %v3030_v23 = vmax.f32 %v2271_v52, %v2774_v33  ;;  %v2277_v5 = vadd.f32 %v2276_v10, %v6527_v60  ;;  %v2597_v29 = vadd.f32 %v2596_v43, %v1034_v61  ;;  %v2775_v31 = vmul.f32 0.2, %v2275_v63  ;;  %v1049_v3 = vpop.permute.xlu1 %1048  ;;  %v6530_v61 = vld [vmem:[#allocation18_spill] sm:$0xff] }
 0x1c8   : > { %v3158_v28 = vmax.f32 %v2591_v27, %v2902_v19  ;;  %v2903_v9 = vmul.f32 0.2, %v2595_v50  ;;  %v2278_v35 = vpop.f32.mrf.mxu0  ;;  %v2598_v12 = vpop.f32.mrf.mxu1 }
 0x1c9   : > { %v4587_v56 = vpack.c.bf16 %v3030_v23, %v3029_v16  ;;  %v2776_v38 = vmul.f32 0.2, %v2277_v5  ;;  %v2904_v46 = vmul.f32 0.2, %v2597_v29  ;;  %v2279_v20 = vadd.f32 %v2278_v35, %v6528_v39 }
 0x1ca   : > { %v4651_v1 = vpack.c.bf16 %v3158_v28, %v3157_v26  ;;  %v3031_v49 = vmax.f32 %v2275_v63, %v2775_v31  ;;  %v3159_v2 = vmax.f32 %v2595_v50, %v2903_v9  ;;  %v2599_v37 = vadd.f32 %v2598_v12, %v1039_v54  ;;  %v2280_v59 = vpop.f32.mrf.mxu0  ;;  %v2600_v45 = vpop.f32.mrf.mxu1 }
 0x1cb   : > { %4008 = vst [vmem:[%s6067_s28 + $0x168] sm:$0xff] %v4587_v56  ;;  %v3032_v42 = vmax.f32 %v2277_v5, %v2776_v38  ;;  %v3160_v24 = vmax.f32 %v2597_v29, %v2904_v46  ;;  %v2777_v14 = vmul.f32 0.2, %v2279_v20  ;;  %v2281_v48 = vadd.f32 %v2280_v59, %v6528_v39  ;;  %v1054_v31 = vpop.permute.xlu0 %1053  ;;  %v6531_v56 = vld [vmem:[#allocation21_spill] sm:$0xff] }
 0x1cc   : > { %4072 = vst [vmem:[%s6067_s28 + $0x368] sm:$0xff] %v4651_v1  ;;  %v2905_v25 = vmul.f32 0.2, %v2599_v37  ;;  %v2601_v4 = vadd.f32 %v2600_v45, %v1039_v54  ;;  %v2284_v18 = vpop.f32.mrf.mxu0  ;;  %v2604_v32 = vpop.f32.mrf.mxu1 }
 0x1cd   : > { %v4588_v17 = vpack.c.bf16 %v3032_v42, %v3031_v49  ;;  %v4652_v36 = vpack.c.bf16 %v3160_v24, %v3159_v2  ;;  %v2778_v22 = vmul.f32 0.2, %v2281_v48  ;;  %v2285_v62 = vadd.f32 %v2284_v18, %v6529_v15 }
 0x1ce   : > { %v2906_v44 = vmul.f32 0.2, %v2601_v4  ;;  %v2605_v55 = vadd.f32 %v2604_v32, %v1044_v8  ;;  %v2286_v57 = vpop.f32.mrf.mxu0  ;;  %v2606_v53 = vpop.f32.mrf.mxu1  ;;  %v3033_v0 = vmax.f32 %v2279_v20, %v2777_v14  ;;  %v3161_v7 = vmax.f32 %v2599_v37, %v2905_v25 }
 0x1cf   : > { %4009 = vst [vmem:[%s6067_s28 + $0x170] sm:$0xff] %v4588_v17  ;;  %4073 = vst [vmem:[%s6067_s28 + $0x370] sm:$0xff] %v4652_v36  ;;  %v3034_v51 = vmax.f32 %v2281_v48, %v2778_v22  ;;  %v2287_v6 = vadd.f32 %v2286_v57, %v6529_v15  ;;  %v2607_v41 = vadd.f32 %v2606_v53, %v1044_v8  ;;  %v2779_v30 = vmul.f32 0.2, %v2285_v62  ;;  %v1059_v25 = vpop.permute.xlu1 %1058  ;;  %v6532_v8 = vld [vmem:[#allocation20_spill] sm:$0xff] }
 0x1d0   : > { %v3162_v58 = vmax.f32 %v2601_v4, %v2906_v44  ;;  %v2907_v40 = vmul.f32 0.2, %v2605_v55  ;;  %v2288_v13 = vpop.f32.mrf.mxu0  ;;  %v2608_v52 = vpop.f32.mrf.mxu1 }
 0x1d1   : > { %v4589_v27 = vpack.c.bf16 %v3034_v51, %v3033_v0  ;;  %v2780_v47 = vmul.f32 0.2, %v2287_v6  ;;  %v2908_v11 = vmul.f32 0.2, %v2607_v41  ;;  %v2289_v21 = vadd.f32 %v2288_v13, %v6530_v61 }
 0x1d2   : > { %v4653_v34 = vpack.c.bf16 %v3162_v58, %v3161_v7  ;;  %v3035_v33 = vmax.f32 %v2285_v62, %v2779_v30  ;;  %v3163_v19 = vmax.f32 %v2605_v55, %v2907_v40  ;;  %v2609_v60 = vadd.f32 %v2608_v52, %v1049_v3  ;;  %v2290_v63 = vpop.f32.mrf.mxu0  ;;  %v2610_v50 = vpop.f32.mrf.mxu1 }
 0x1d3   : > { %4010 = vst [vmem:[%s6067_s28 + $0x178] sm:$0xff] %v4589_v27  ;;  %v3036_v10 = vmax.f32 %v2287_v6, %v2780_v47  ;;  %v3164_v43 = vmax.f32 %v2607_v41, %v2908_v11  ;;  %v2781_v16 = vmul.f32 0.2, %v2289_v21  ;;  %v2291_v23 = vadd.f32 %v2290_v63, %v6530_v61  ;;  %v1064_v30 = vpop.permute.xlu0 %1063  ;;  %v6533_v27 = vld [vmem:[#allocation23_spill] sm:$0xff] }
 0x1d4   : > { %4074 = vst [vmem:[%s6067_s28 + $0x378] sm:$0xff] %v4653_v34  ;;  %v2909_v5 = vmul.f32 0.2, %v2609_v60  ;;  %v2611_v29 = vadd.f32 %v2610_v50, %v1049_v3  ;;  %v2294_v26 = vpop.f32.mrf.mxu0  ;;  %v2614_v28 = vpop.f32.mrf.mxu1 }
 0x1d5   : > { %v4590_v9 = vpack.c.bf16 %v3036_v10, %v3035_v33  ;;  %v4654_v35 = vpack.c.bf16 %v3164_v43, %v3163_v19  ;;  %v2782_v12 = vmul.f32 0.2, %v2291_v23  ;;  %v2295_v38 = vadd.f32 %v2294_v26, %v6531_v56 }
 0x1d6   : > { %v2910_v54 = vmul.f32 0.2, %v2611_v29  ;;  %v2615_v46 = vadd.f32 %v2614_v28, %v1054_v31  ;;  %v2296_v39 = vpop.f32.mrf.mxu0  ;;  %v2616_v20 = vpop.f32.mrf.mxu1  ;;  %v3037_v1 = vmax.f32 %v2289_v21, %v2781_v16  ;;  %v3165_v59 = vmax.f32 %v2609_v60, %v2909_v5 }
 0x1d7   : > { %4011 = vst [vmem:[%s6067_s28 + $0x180] sm:$0xff] %v4590_v9  ;;  %4075 = vst [vmem:[%s6067_s28 + $0x380] sm:$0xff] %v4654_v35  ;;  %v3038_v49 = vmax.f32 %v2291_v23, %v2782_v12  ;;  %v2297_v2 = vadd.f32 %v2296_v39, %v6531_v56  ;;  %v2617_v37 = vadd.f32 %v2616_v20, %v1054_v31  ;;  %v2783_v42 = vmul.f32 0.2, %v2295_v38  ;;  %v1069_v5 = vpop.permute.xlu1 %1068  ;;  %v6534_v31 = vld [vmem:[#allocation22_spill] sm:$0xff] }
 0x1d8   : > { %v3166_v45 = vmax.f32 %v2611_v29, %v2910_v54  ;;  %v2911_v24 = vmul.f32 0.2, %v2615_v46  ;;  %v2298_v14 = vpop.f32.mrf.mxu0  ;;  %v2618_v48 = vpop.f32.mrf.mxu1 }
 0x1d9   : > { %v4591_v4 = vpack.c.bf16 %v3038_v49, %v3037_v1  ;;  %v2784_v18 = vmul.f32 0.2, %v2297_v2  ;;  %v2912_v32 = vmul.f32 0.2, %v2617_v37  ;;  %v2299_v17 = vadd.f32 %v2298_v14, %v6532_v8 }
 0x1da   : > { %v4655_v36 = vpack.c.bf16 %v3166_v45, %v3165_v59  ;;  %v3039_v22 = vmax.f32 %v2295_v38, %v2783_v42  ;;  %v3167_v44 = vmax.f32 %v2615_v46, %v2911_v24  ;;  %v2619_v15 = vadd.f32 %v2618_v48, %v1059_v25  ;;  %v2300_v62 = vpop.f32.mrf.mxu0  ;;  %v2620_v55 = vpop.f32.mrf.mxu1 }
 0x1db   : > { %4012 = vst [vmem:[%s6067_s28 + $0x188] sm:$0xff] %v4591_v4  ;;  %v3040_v57 = vmax.f32 %v2297_v2, %v2784_v18  ;;  %v3168_v53 = vmax.f32 %v2617_v37, %v2912_v32  ;;  %v2785_v0 = vmul.f32 0.2, %v2299_v17  ;;  %v2301_v51 = vadd.f32 %v2300_v62, %v6532_v8  ;;  %v1074_v42 = vpop.permute.xlu0 %1073  ;;  %v6535_v4 = vld [vmem:[#allocation25_spill] sm:$0xff] }
 0x1dc   : > { %4076 = vst [vmem:[%s6067_s28 + $0x388] sm:$0xff] %v4655_v36  ;;  %v2913_v6 = vmul.f32 0.2, %v2619_v15  ;;  %v2621_v41 = vadd.f32 %v2620_v55, %v1059_v25  ;;  %v2304_v7 = vpop.f32.mrf.mxu0  ;;  %v2624_v58 = vpop.f32.mrf.mxu1 }
 0x1dd   : > { %v4592_v40 = vpack.c.bf16 %v3040_v57, %v3039_v22  ;;  %v4656_v13 = vpack.c.bf16 %v3168_v53, %v3167_v44  ;;  %v2786_v52 = vmul.f32 0.2, %v2301_v51  ;;  %v2305_v47 = vadd.f32 %v2304_v7, %v6533_v27 }
 0x1de   : > { %v2914_v3 = vmul.f32 0.2, %v2621_v41  ;;  %v2625_v11 = vadd.f32 %v2624_v58, %v1064_v30  ;;  %v2306_v61 = vpop.f32.mrf.mxu0  ;;  %v2626_v21 = vpop.f32.mrf.mxu1  ;;  %v3041_v34 = vmax.f32 %v2299_v17, %v2785_v0  ;;  %v3169_v63 = vmax.f32 %v2619_v15, %v2913_v6 }
 0x1df   : > { %4013 = vst [vmem:[%s6067_s28 + $0x190] sm:$0xff] %v4592_v40  ;;  %4077 = vst [vmem:[%s6067_s28 + $0x390] sm:$0xff] %v4656_v13  ;;  %v3042_v33 = vmax.f32 %v2301_v51, %v2786_v52  ;;  %v2307_v19 = vadd.f32 %v2306_v61, %v6533_v27  ;;  %v2627_v60 = vadd.f32 %v2626_v21, %v1064_v30  ;;  %v2787_v10 = vmul.f32 0.2, %v2305_v47  ;;  %v1079_v6 = vpop.permute.xlu1 %1078  ;;  %v6536_v30 = vld [vmem:[#allocation24_spill] sm:$0xff] }
 0x1e0   : > { %v3170_v50 = vmax.f32 %v2621_v41, %v2914_v3  ;;  %v2915_v43 = vmul.f32 0.2, %v2625_v11  ;;  %v2308_v16 = vpop.f32.mrf.mxu0  ;;  %v2628_v23 = vpop.f32.mrf.mxu1 }
 0x1e1   : > { %v4593_v29 = vpack.c.bf16 %v3042_v33, %v3041_v34  ;;  %v2788_v26 = vmul.f32 0.2, %v2307_v19  ;;  %v2916_v28 = vmul.f32 0.2, %v2627_v60  ;;  %v2309_v9 = vadd.f32 %v2308_v16, %v6534_v31 }
 0x1e2   : > { %v4657_v35 = vpack.c.bf16 %v3170_v50, %v3169_v63  ;;  %v3043_v12 = vmax.f32 %v2305_v47, %v2787_v10  ;;  %v3171_v54 = vmax.f32 %v2625_v11, %v2915_v43  ;;  %v2629_v56 = vadd.f32 %v2628_v23, %v1069_v5  ;;  %v2310_v38 = vpop.f32.mrf.mxu0  ;;  %v2630_v46 = vpop.f32.mrf.mxu1 }
 0x1e3   : > { %4014 = vst [vmem:[%s6067_s28 + $0x198] sm:$0xff] %v4593_v29  ;;  %v3044_v39 = vmax.f32 %v2307_v19, %v2788_v26  ;;  %v3172_v20 = vmax.f32 %v2627_v60, %v2916_v28  ;;  %v2789_v1 = vmul.f32 0.2, %v2309_v9  ;;  %v2311_v49 = vadd.f32 %v2310_v38, %v6534_v31  ;;  %v1084_v10 = vpop.permute.xlu0 %1083  ;;  %v6537_v29 = vld [vmem:[#allocation27_spill] sm:$0xff] }
 0x1e4   : > { %4078 = vst [vmem:[%s6067_s28 + $0x398] sm:$0xff] %v4657_v35  ;;  %v2917_v2 = vmul.f32 0.2, %v2629_v56  ;;  %v2631_v37 = vadd.f32 %v2630_v46, %v1069_v5  ;;  %v2314_v59 = vpop.f32.mrf.mxu0  ;;  %v2634_v45 = vpop.f32.mrf.mxu1 }
 0x1e5   : > { %v4594_v24 = vpack.c.bf16 %v3044_v39, %v3043_v12  ;;  %v4658_v14 = vpack.c.bf16 %v3172_v20, %v3171_v54  ;;  %v2790_v48 = vmul.f32 0.2, %v2311_v49  ;;  %v2315_v18 = vadd.f32 %v2314_v59, %v6535_v4 }
 0x1e6   : > { %v2918_v25 = vmul.f32 0.2, %v2631_v37  ;;  %v2635_v32 = vadd.f32 %v2634_v45, %v1074_v42  ;;  %v2316_v8 = vpop.f32.mrf.mxu0  ;;  %v2636_v17 = vpop.f32.mrf.mxu1  ;;  %v3045_v36 = vmax.f32 %v2309_v9, %v2789_v1  ;;  %v3173_v62 = vmax.f32 %v2629_v56, %v2917_v2 }
 0x1e7   : > { %4015 = vst [vmem:[%s6067_s28 + $0x1a0] sm:$0xff] %v4594_v24  ;;  %4079 = vst [vmem:[%s6067_s28 + $0x3a0] sm:$0xff] %v4658_v14  ;;  %v3046_v22 = vmax.f32 %v2311_v49, %v2790_v48  ;;  %v2317_v44 = vadd.f32 %v2316_v8, %v6535_v4  ;;  %v2637_v15 = vadd.f32 %v2636_v17, %v1074_v42  ;;  %v2791_v57 = vmul.f32 0.2, %v2315_v18  ;;  %v1089_v2 = vpop.permute.xlu1 %1088  ;;  %v6538_v42 = vld [vmem:[#allocation26_spill] sm:$0xff] }
 0x1e8   : > { %v3174_v55 = vmax.f32 %v2631_v37, %v2918_v25  ;;  %v2919_v53 = vmul.f32 0.2, %v2635_v32  ;;  %v2318_v0 = vpop.f32.mrf.mxu0  ;;  %v2638_v51 = vpop.f32.mrf.mxu1 }
 0x1e9   : > { %v4595_v41 = vpack.c.bf16 %v3046_v22, %v3045_v36  ;;  %v2792_v7 = vmul.f32 0.2, %v2317_v44  ;;  %v2920_v58 = vmul.f32 0.2, %v2637_v15  ;;  %v2319_v40 = vadd.f32 %v2318_v0, %v6536_v30 }
 0x1ea   : > { %v4659_v13 = vpack.c.bf16 %v3174_v55, %v3173_v62  ;;  %v3047_v52 = vmax.f32 %v2315_v18, %v2791_v57  ;;  %v3175_v3 = vmax.f32 %v2635_v32, %v2919_v53  ;;  %v2639_v27 = vadd.f32 %v2638_v51, %v1079_v6  ;;  %v2320_v47 = vpop.f32.mrf.mxu0  ;;  %v2640_v11 = vpop.f32.mrf.mxu1 }
 0x1eb   : > { %4016 = vst [vmem:[%s6067_s28 + $0x1a8] sm:$0xff] %v4595_v41  ;;  %v3048_v61 = vmax.f32 %v2317_v44, %v2792_v7  ;;  %v3176_v21 = vmax.f32 %v2637_v15, %v2920_v58  ;;  %v2793_v34 = vmul.f32 0.2, %v2319_v40  ;;  %v2321_v33 = vadd.f32 %v2320_v47, %v6536_v30  ;;  %v1094_v57 = vpop.permute.xlu0 %1093  ;;  %v6539_v41 = vld [vmem:[#allocation29_spill] sm:$0xff] }
 0x1ec   : > { %4080 = vst [vmem:[%s6067_s28 + $0x3a8] sm:$0xff] %v4659_v13  ;;  %v2921_v19 = vmul.f32 0.2, %v2639_v27  ;;  %v2641_v60 = vadd.f32 %v2640_v11, %v1079_v6  ;;  %v2324_v63 = vpop.f32.mrf.mxu0  ;;  %v2644_v50 = vpop.f32.mrf.mxu1 }
 0x1ed   : > { %v4596_v43 = vpack.c.bf16 %v3048_v61, %v3047_v52  ;;  %v4660_v16 = vpack.c.bf16 %v3176_v21, %v3175_v3  ;;  %v2794_v23 = vmul.f32 0.2, %v2321_v33  ;;  %v2325_v26 = vadd.f32 %v2324_v63, %v6537_v29 }
 0x1ee   : > { %v2922_v5 = vmul.f32 0.2, %v2641_v60  ;;  %v2645_v28 = vadd.f32 %v2644_v50, %v1084_v10  ;;  %v2326_v31 = vpop.f32.mrf.mxu0  ;;  %v2646_v9 = vpop.f32.mrf.mxu1  ;;  %v3049_v35 = vmax.f32 %v2319_v40, %v2793_v34  ;;  %v3177_v38 = vmax.f32 %v2639_v27, %v2921_v19 }
 0x1ef   : > { %4017 = vst [vmem:[%s6067_s28 + $0x1b0] sm:$0xff] %v4596_v43  ;;  %4081 = vst [vmem:[%s6067_s28 + $0x3b0] sm:$0xff] %v4660_v16  ;;  %v3050_v12 = vmax.f32 %v2321_v33, %v2794_v23  ;;  %v2327_v54 = vadd.f32 %v2326_v31, %v6537_v29  ;;  %v2647_v56 = vadd.f32 %v2646_v9, %v1084_v10  ;;  %v2795_v39 = vmul.f32 0.2, %v2325_v26  ;;  %v1099_v19 = vpop.permute.xlu1 %1098  ;;  %v6540_v10 = vld [vmem:[#allocation28_spill] sm:$0xff] }
 0x1f0   : > { %v3178_v46 = vmax.f32 %v2641_v60, %v2922_v5  ;;  %v2923_v20 = vmul.f32 0.2, %v2645_v28  ;;  %v2328_v1 = vpop.f32.mrf.mxu0  ;;  %v2648_v49 = vpop.f32.mrf.mxu1 }
 0x1f1   : > { %v4597_v37 = vpack.c.bf16 %v3050_v12, %v3049_v35  ;;  %v2796_v59 = vmul.f32 0.2, %v2327_v54  ;;  %v2924_v45 = vmul.f32 0.2, %v2647_v56  ;;  %v2329_v24 = vadd.f32 %v2328_v1, %v6538_v42 }
 0x1f2   : > { %v4661_v14 = vpack.c.bf16 %v3178_v46, %v3177_v38  ;;  %v3051_v48 = vmax.f32 %v2325_v26, %v2795_v39  ;;  %v3179_v25 = vmax.f32 %v2645_v28, %v2923_v20  ;;  %v2649_v4 = vadd.f32 %v2648_v49, %v1089_v2  ;;  %v2330_v18 = vpop.f32.mrf.mxu0  ;;  %v2650_v32 = vpop.f32.mrf.mxu1 }
 0x1f3   : > { %4018 = vst [vmem:[%s6067_s28 + $0x1b8] sm:$0xff] %v4597_v37  ;;  %v3052_v8 = vmax.f32 %v2327_v54, %v2796_v59  ;;  %v3180_v17 = vmax.f32 %v2647_v56, %v2924_v45  ;;  %v2797_v36 = vmul.f32 0.2, %v2329_v24  ;;  %v2331_v22 = vadd.f32 %v2330_v18, %v6538_v42  ;;  %v1104_v39 = vpop.permute.xlu0 %1103  ;;  %v6541_v37 = vld [vmem:[#allocation31_spill] sm:$0xff] }
 0x1f4   : > { %4082 = vst [vmem:[%s6067_s28 + $0x3b8] sm:$0xff] %v4661_v14  ;;  %v2925_v44 = vmul.f32 0.2, %v2649_v4  ;;  %v2651_v15 = vadd.f32 %v2650_v32, %v1089_v2  ;;  %v2334_v62 = vpop.f32.mrf.mxu0  ;;  %v2654_v55 = vpop.f32.mrf.mxu1 }
 0x1f5   : > { %v4598_v53 = vpack.c.bf16 %v3052_v8, %v3051_v48  ;;  %v4662_v0 = vpack.c.bf16 %v3180_v17, %v3179_v25  ;;  %v2798_v51 = vmul.f32 0.2, %v2331_v22  ;;  %v2335_v7 = vadd.f32 %v2334_v62, %v6539_v41 }
 0x1f6   : > { %v2926_v6 = vmul.f32 0.2, %v2651_v15  ;;  %v2655_v58 = vadd.f32 %v2654_v55, %v1094_v57  ;;  %v2336_v30 = vpop.f32.mrf.mxu0  ;;  %v2656_v40 = vpop.f32.mrf.mxu1  ;;  %v3053_v13 = vmax.f32 %v2329_v24, %v2797_v36  ;;  %v3181_v47 = vmax.f32 %v2649_v4, %v2925_v44 }
 0x1f7   : > { %4019 = vst [vmem:[%s6067_s28 + $0x1c0] sm:$0xff] %v4598_v53  ;;  %4083 = vst [vmem:[%s6067_s28 + $0x3c0] sm:$0xff] %v4662_v0  ;;  %v3054_v52 = vmax.f32 %v2331_v22, %v2798_v51  ;;  %v2337_v3 = vadd.f32 %v2336_v30, %v6539_v41  ;;  %v2657_v27 = vadd.f32 %v2656_v40, %v1094_v57  ;;  %v2799_v61 = vmul.f32 0.2, %v2335_v7  ;;  %v1109_v44 = vpop.permute.xlu1 %1108  ;;  %v6542_v57 = vld [vmem:[#allocation30_spill] sm:$0xff] }
 0x1f8   : > { %v3182_v11 = vmax.f32 %v2651_v15, %v2926_v6  ;;  %v2927_v21 = vmul.f32 0.2, %v2655_v58  ;;  %v2338_v34 = vpop.f32.mrf.mxu0  ;;  %v2658_v33 = vpop.f32.mrf.mxu1 }
 0x1f9   : > { %v4599_v60 = vpack.c.bf16 %v3054_v52, %v3053_v13  ;;  %v2800_v63 = vmul.f32 0.2, %v2337_v3  ;;  %v2928_v50 = vmul.f32 0.2, %v2657_v27  ;;  %v2339_v43 = vadd.f32 %v2338_v34, %v6540_v10 }
 0x1fa   : > { %v4663_v16 = vpack.c.bf16 %v3182_v11, %v3181_v47  ;;  %v3055_v23 = vmax.f32 %v2335_v7, %v2799_v61  ;;  %v3183_v5 = vmax.f32 %v2655_v58, %v2927_v21  ;;  %v2659_v29 = vadd.f32 %v2658_v33, %v1099_v19  ;;  %v2340_v26 = vpop.f32.mrf.mxu0  ;;  %v2660_v28 = vpop.f32.mrf.mxu1 }
 0x1fb   : > { %4020 = vst [vmem:[%s6067_s28 + $0x1c8] sm:$0xff] %v4599_v60  ;;  %v3056_v31 = vmax.f32 %v2337_v3, %v2800_v63  ;;  %v3184_v9 = vmax.f32 %v2657_v27, %v2928_v50  ;;  %v2801_v35 = vmul.f32 0.2, %v2339_v43  ;;  %v2341_v12 = vadd.f32 %v2340_v26, %v6540_v10  ;;  %v1114_v61 = vpop.permute.xlu0 %1113  ;;  %v6543_v60 = vld [vmem:[#allocation33_spill] sm:$0xff] }
 0x1fc   : > { %4084 = vst [vmem:[%s6067_s28 + $0x3c8] sm:$0xff] %v4663_v16  ;;  %v2929_v54 = vmul.f32 0.2, %v2659_v29  ;;  %v2661_v56 = vadd.f32 %v2660_v28, %v1099_v19  ;;  %v2344_v38 = vpop.f32.mrf.mxu0  ;;  %v2664_v46 = vpop.f32.mrf.mxu1 }
 0x1fd   : > { %v4600_v20 = vpack.c.bf16 %v3056_v31, %v3055_v23  ;;  %v4664_v1 = vpack.c.bf16 %v3184_v9, %v3183_v5  ;;  %v2802_v49 = vmul.f32 0.2, %v2341_v12  ;;  %v2345_v59 = vadd.f32 %v2344_v38, %v6541_v37 }
 0x1fe   : > { %v2930_v2 = vmul.f32 0.2, %v2661_v56  ;;  %v2665_v45 = vadd.f32 %v2664_v46, %v1104_v39  ;;  %v2346_v42 = vpop.f32.mrf.mxu0  ;;  %v2666_v24 = vpop.f32.mrf.mxu1  ;;  %v3057_v14 = vmax.f32 %v2339_v43, %v2801_v35  ;;  %v3185_v18 = vmax.f32 %v2659_v29, %v2929_v54 }
 0x1ff   : > { %4021 = vst [vmem:[%s6067_s28 + $0x1d0] sm:$0xff] %v4600_v20  ;;  %4085 = vst [vmem:[%s6067_s28 + $0x3d0] sm:$0xff] %v4664_v1  ;;  %v3058_v48 = vmax.f32 %v2341_v12, %v2802_v49  ;;  %v2347_v25 = vadd.f32 %v2346_v42, %v6541_v37  ;;  %v2667_v4 = vadd.f32 %v2666_v24, %v1104_v39  ;;  %v2803_v8 = vmul.f32 0.2, %v2345_v59  ;;  %v1119_v54 = vpop.permute.xlu1 %1118  ;;  %v6544_v39 = vld [vmem:[#allocation32_spill] sm:$0xff] }
 0x200   : > { %v3186_v32 = vmax.f32 %v2661_v56, %v2930_v2  ;;  %v2931_v17 = vmul.f32 0.2, %v2665_v45  ;;  %v2348_v36 = vpop.f32.mrf.mxu0  ;;  %v2668_v22 = vpop.f32.mrf.mxu1 }
 0x201   : > { %v4601_v15 = vpack.c.bf16 %v3058_v48, %v3057_v14  ;;  %v2804_v62 = vmul.f32 0.2, %v2347_v25  ;;  %v2932_v55 = vmul.f32 0.2, %v2667_v4  ;;  %v2349_v53 = vadd.f32 %v2348_v36, %v6542_v57 }
 0x202   : > { %v4665_v0 = vpack.c.bf16 %v3186_v32, %v3185_v18  ;;  %v3059_v51 = vmax.f32 %v2345_v59, %v2803_v8  ;;  %v3187_v6 = vmax.f32 %v2665_v45, %v2931_v17  ;;  %v2669_v41 = vadd.f32 %v2668_v22, %v1109_v44  ;;  %v2350_v7 = vpop.f32.mrf.mxu0  ;;  %v2670_v58 = vpop.f32.mrf.mxu1 }
 0x203   : > { %4022 = vst [vmem:[%s6067_s28 + $0x1d8] sm:$0xff] %v4601_v15  ;;  %v3060_v30 = vmax.f32 %v2347_v25, %v2804_v62  ;;  %v3188_v40 = vmax.f32 %v2667_v4, %v2932_v55  ;;  %v2805_v13 = vmul.f32 0.2, %v2349_v53  ;;  %v2351_v52 = vadd.f32 %v2350_v7, %v6542_v57 }
 0x204   : > { %4086 = vst [vmem:[%s6067_s28 + $0x3d8] sm:$0xff] %v4665_v0  ;;  %v2933_v3 = vmul.f32 0.2, %v2669_v41  ;;  %v2671_v27 = vadd.f32 %v2670_v58, %v1109_v44  ;;  %v2354_v47 = vpop.f32.mrf.mxu0  ;;  %v2674_v11 = vpop.f32.mrf.mxu1 }
 0x205   : > { %v4602_v21 = vpack.c.bf16 %v3060_v30, %v3059_v51  ;;  %v4666_v34 = vpack.c.bf16 %v3188_v40, %v3187_v6  ;;  %v2806_v33 = vmul.f32 0.2, %v2351_v52  ;;  %v2355_v63 = vadd.f32 %v2354_v47, %v6543_v60 }
 0x206   : > { %v2934_v19 = vmul.f32 0.2, %v2671_v27  ;;  %v2675_v50 = vadd.f32 %v2674_v11, %v1114_v61  ;;  %v2356_v10 = vpop.f32.mrf.mxu0  ;;  %v2676_v43 = vpop.f32.mrf.mxu1  ;;  %v3061_v16 = vmax.f32 %v2349_v53, %v2805_v13  ;;  %v3189_v26 = vmax.f32 %v2669_v41, %v2933_v3 }
 0x207   : > { %4023 = vst [vmem:[%s6067_s28 + $0x1e0] sm:$0xff] %v4602_v21  ;;  %4087 = vst [vmem:[%s6067_s28 + $0x3e0] sm:$0xff] %v4666_v34  ;;  %v3062_v23 = vmax.f32 %v2351_v52, %v2806_v33  ;;  %v2357_v5 = vadd.f32 %v2356_v10, %v6543_v60  ;;  %v2677_v29 = vadd.f32 %v2676_v43, %v1114_v61  ;;  %v2807_v31 = vmul.f32 0.2, %v2355_v63 }
 0x208   : > { %v3190_v28 = vmax.f32 %v2671_v27, %v2934_v19  ;;  %v2935_v9 = vmul.f32 0.2, %v2675_v50  ;;  %v2358_v35 = vpop.f32.mrf.mxu0  ;;  %v2678_v12 = vpop.f32.mrf.mxu1 }
 0x209   : > { %v4603_v56 = vpack.c.bf16 %v3062_v23, %v3061_v16  ;;  %v2808_v38 = vmul.f32 0.2, %v2357_v5  ;;  %v2936_v46 = vmul.f32 0.2, %v2677_v29  ;;  %v2359_v20 = vadd.f32 %v2358_v35, %v6544_v39 }
 0x20a   : > { %v4667_v1 = vpack.c.bf16 %v3190_v28, %v3189_v26  ;;  %v3063_v49 = vmax.f32 %v2355_v63, %v2807_v31  ;;  %v3191_v2 = vmax.f32 %v2675_v50, %v2935_v9  ;;  %v2679_v37 = vadd.f32 %v2678_v12, %v1119_v54  ;;  %v2360_v59 = vpop.f32.mrf.mxu0  ;;  %v2680_v45 = vpop.f32.mrf.mxu1 }
 0x20b   : > { %4024 = vst [vmem:[%s6067_s28 + $0x1e8] sm:$0xff] %v4603_v56  ;;  %v3064_v42 = vmax.f32 %v2357_v5, %v2808_v38  ;;  %v3192_v24 = vmax.f32 %v2677_v29, %v2936_v46  ;;  %v2809_v14 = vmul.f32 0.2, %v2359_v20  ;;  %v2361_v48 = vadd.f32 %v2360_v59, %v6544_v39 }
 0x20c   : > { %4088 = vst [vmem:[%s6067_s28 + $0x3e8] sm:$0xff] %v4667_v1  ;;  %v2937_v25 = vmul.f32 0.2, %v2679_v37  ;;  %v2681_v4 = vadd.f32 %v2680_v45, %v1119_v54 }
 0x20d   : > { %v4604_v18 = vpack.c.bf16 %v3064_v42, %v3063_v49  ;;  %v4668_v32 = vpack.c.bf16 %v3192_v24, %v3191_v2  ;;  %v2810_v8 = vmul.f32 0.2, %v2361_v48  ;;  %v3065_v36 = vmax.f32 %v2359_v20, %v2809_v14 }
 0x20e   : > { %v2938_v17 = vmul.f32 0.2, %v2681_v4  ;;  %v3193_v44 = vmax.f32 %v2679_v37, %v2937_v25 }
 0x20f   : > { %4025 = vst [vmem:[%s6067_s28 + $0x1f0] sm:$0xff] %v4604_v18  ;;  %4089 = vst [vmem:[%s6067_s28 + $0x3f0] sm:$0xff] %v4668_v32  ;;  %v3066_v22 = vmax.f32 %v2361_v48, %v2810_v8 }
 0x210   : > { %v3194_v15 = vmax.f32 %v2681_v4, %v2938_v17 }
 0x211   : > { %v4605_v62 = vpack.c.bf16 %v3066_v22, %v3065_v36 }
 0x212   : > { %v4669_v55 = vpack.c.bf16 %v3194_v15, %v3193_v44 }
 0x213   : > { %4026 = vst [vmem:[%s6067_s28 + $0x1f8] sm:$0xff] %v4605_v62 }
 0x214   : > { %4090 = vst [vmem:[%s6067_s28 + $0x3f8] sm:$0xff] %v4669_v55 }
 0x215   : > { %4997 = shalt.err (!%p4994_p5)
}
 0x216   : > { %s4998_s7 = scalar_lea.hbm %s6399_s5, 16384  ;;  %s5002_s11 = scalar_lea.hbm %s6455_s3, 32768 }
 0x217   : > { %p4999_p6 = scmp.ne.s32.totalorder %s6399_s5, %s4998_s7  ;;  %p5003_p10 = scmp.lt.s32.totalorder %s6399_s5, %s6455_s3 }
 0x218   : > { %p5004_p11 = scmp.lt.s32.totalorder %s5002_s11, %s4998_s7 }
 0x219   : > { %p5000_p7 = pnand %p4999_p6, %p5126_p4 }
 0x21a   : > { %p5005_p12 = por %p5004_p11, %p5003_p10 }
 0x21b   : > { %p5001_p9 = pneg %p5000_p7 }
 0x21d   : > { %p5006_p13 = pnand %p5005_p12, %p5001_p9 }
 0x21f   : > { %5009 = shalt.err (!%p5006_p13)
}
 0x220   : > { %s5064_s21 = smov 128   ;;  %s5065_s26 = smov 8  }
 0x221   : > { %4696 = dma.vmem_to_hbm [thread:$0]  (%p5126_p4), %s6401_s29, 16384, %s6399_s5, %s6407_s15, %s5064_s21, %s5064_s21, %s5065_s26  }
 0x222 PF: > { %p4702_p0 = scmp.ge.s32.totalorder %s5060_s17, 2  ;;  %s4122_s27 = sand.u32 1, %s5040_s12  }
 0x223   : > { %s4123_s30 = scalar_lea.sflag [#allocation3], %s4122_s27 }
 0x224   : > { %p4699_p1 = pnand %p4702_p0, %p5133_p8 }
 0x226   : > { %p4700_p2 = pneg %p4699_p1 }
 0x228   : > { %5035 = dma.done.wait (%p4700_p2), %s4123_s30, 16384  }
 0x229   : > { %5037 = vsyncadd (%p4700_p2), %s4123_s30, 4294950912  ;;  %s16_s17 = sadd.s32 1, %s5060_s17   ;;  %s6545_s12 = smov %s5044_s13 }
 0x22a   : > { %p13_p3 = scmp.ge.s32.totalorder %s16_s17, 4   ;;  %s6546_s13 = smov %s5048_s14 }
 0x22b   : > { %s6547_s14 = smov %s5139_s25  ;;  %s6548_s15 = smov %s5056_s16 }
 0x22c   : > { %s6549_s16 = smov %s6551_s20  ;;  %15 = sbr.rel (!%p13_p3) target bundleno = 4 (0x4), region = 67 }
 0x231   :  { %4128 = vsyncpa [#allocation3], 1 }
 0x232   :  { %4130 = vsyncpa [#allocation3 + $0x1], 1 }

</bundles_post_ra>
